<compile_context>
chip_gen: v7x
topology: tpu7x:2x2x1
jax: 0.10.0
libtpu: 0.0.40
codegen_flags: <defaults>
</compile_context>

<pallas_src>
import functools

import jax
import jax.numpy as jnp
from jax import lax
from jax.experimental import pallas as pl
from jax.experimental.pallas import tpu as pltpu


def _round_up(x, m):
    return (x + m - 1) // m * m


# Fixed geometry implied by fc1 = Linear(64*7*7, 128): 28x28 single-channel.
H1, W1, WP1 = 28, 28, 32          # conv1 pre-pool slab: n = h*32 + w
HWP1 = H1 * WP1                   # 896
H2, W2, WP2 = 14, 14, 16          # conv2 resolution; padded row width 16
HWP2 = H2 * WP2                   # 224
L2 = 17 * WP2                     # conv2 padded flat slab length (272)
HH, WW = 7, 7                     # final pooled resolution


# ----------------------------------------------------------------------------
# Kernel 1: conv1 (single tap-stacked matmul) + bias + ReLU + 2x2 max-pool,
# writing the pooled result directly as conv2's zero-padded flat input slab.
# ----------------------------------------------------------------------------
def _conv1_kernel(xcol_ref, w_ref, b_ref, s_ref, o_ref, acc_ref, *, bt):
    # Zero the scratch tail (pooling shift reads of the last image land here;
    # must be finite so the 0-weighted selection columns stay exactly 0).
    acc_ref[bt * HWP1:, :] = jnp.zeros((40, 32), jnp.float32)

    # Phase 1: conv as one (896, 128) x (128, 32) MXU matmul per image
    # (taps 9..127 are zero-padded), bias + ReLU, staged in VMEM.
    for b in range(bt):
        a = jnp.dot(xcol_ref[b], w_ref[...], preferred_element_type=jnp.float32)
        acc_ref[b * HWP1:(b + 1) * HWP1, :] = jnp.maximum(a + b_ref[...], 0.0)

    # Phase 2: 2x2/2 max pool = elementwise max of 4 shifted slabs (VPU),
    # then one selection matmul (bf16) compacting into conv2's padded slab.
    for b in range(bt):
        r0 = b * HWP1
        bw = jnp.maximum(
            jnp.maximum(acc_ref[r0:r0 + HWP1, :],
                        acc_ref[r0 + 1:r0 + 1 + HWP1, :]),
            jnp.maximum(acc_ref[r0 + WP1:r0 + WP1 + HWP1, :],
                        acc_ref[r0 + WP1 + 1:r0 + WP1 + 1 + HWP1, :]),
        ).astype(jnp.bfloat16)
        p = jnp.dot(s_ref[...], bw, preferred_element_type=jnp.float32)
        # conv2's padded slab: top pad row + left pad of row 1 -> zeros,
        # interior (incl. right/left pad columns via zero selection rows),
        # bottom pad rows -> zeros.
        o_ref[b, 0:WP2, :] = jnp.zeros((WP2, 32), o_ref.dtype)
        o_ref[b, WP2:WP2 + HWP2, :] = p.astype(o_ref.dtype)
        o_ref[b, WP2 + HWP2:L2, :] = jnp.zeros((L2 - WP2 - HWP2, 32), o_ref.dtype)


def conv1_relu_pool(x_col, w_mat, b_row, s_mat, bt):
    Bp = x_col.shape[0]
    return pl.pallas_call(
        functools.partial(_conv1_kernel, bt=bt),
        out_shape=jax.ShapeDtypeStruct((Bp, L2, 32), jnp.bfloat16),
        grid=(Bp // bt,),
        in_specs=[
            pl.BlockSpec((bt, HWP1, 128), lambda n: (n, 0, 0)),
            pl.BlockSpec((128, 32), lambda n: (0, 0)),
            pl.BlockSpec((1, 32), lambda n: (0, 0)),
            pl.BlockSpec((HWP2, HWP1), lambda n: (0, 0)),
        ],
        out_specs=pl.BlockSpec((bt, L2, 32), lambda n: (n, 0, 0)),
        scratch_shapes=[pltpu.VMEM((bt * HWP1 + 40, 32), jnp.float32)],
        compiler_params=pltpu.CompilerParams(
            dimension_semantics=("parallel",),
            vmem_limit_bytes=32 * 1024 * 1024),
    )(x_col, w_mat, b_row, s_mat)


# ----------------------------------------------------------------------------
# Kernel 2: conv2 (9 tap matmuls, vreg-resident f32 accumulator) + bias +
# ReLU + 2x2 max-pool (shifted maxes + one selection matmul per image).
# ----------------------------------------------------------------------------
def _conv2_kernel(x_ref, w_ref, b_ref, s_ref, o_ref, acc_ref, *, bt):
    acc_ref[bt * HWP2:, :] = jnp.zeros((24, 64), jnp.float32)

    offs = tuple(dy * WP2 + dx for dy in range(3) for dx in range(3))

    # Phase 1: direct conv.  The per-image accumulator is (224, 64) f32
    # (~28 vregs) so it stays register-resident across the 9-tap chain.
    for b in range(bt):
        acc = jnp.zeros((HWP2, 64), jnp.float32)
        for tap, off in enumerate(offs):
            acc = acc + jnp.dot(x_ref[b, off:off + HWP2, :],
                                w_ref[tap * 32:(tap + 1) * 32, :],
                                preferred_element_type=jnp.float32)
        acc_ref[b * HWP2:(b + 1) * HWP2, :] = jnp.maximum(acc + b_ref[...], 0.0)

    # Phase 2: fused 2x2/2 max pool + compaction to (49, 64) (h, w, c order).
    for b in range(bt):
        r0 = b * HWP2
        bw = jnp.maximum(
            jnp.maximum(acc_ref[r0:r0 + HWP2, :],
                        acc_ref[r0 + 1:r0 + 1 + HWP2, :]),
            jnp.maximum(acc_ref[r0 + WP2:r0 + WP2 + HWP2, :],
                        acc_ref[r0 + WP2 + 1:r0 + WP2 + 1 + HWP2, :]),
        ).astype(jnp.bfloat16)
        p = jnp.dot(s_ref[...], bw, preferred_element_type=jnp.float32)
        o_ref[b] = p.astype(o_ref.dtype)


def conv2_relu_pool(x_slab, w_mat, b_row, s_mat, bt):
    Bp = x_slab.shape[0]
    return pl.pallas_call(
        functools.partial(_conv2_kernel, bt=bt),
        out_shape=jax.ShapeDtypeStruct((Bp, HH * WW, 64), jnp.bfloat16),
        grid=(Bp // bt,),
        in_specs=[
            pl.BlockSpec((bt, L2, 32), lambda n: (n, 0, 0)),
            pl.BlockSpec((288, 64), lambda n: (0, 0)),
            pl.BlockSpec((1, 64), lambda n: (0, 0)),
            pl.BlockSpec((HH * WW, HWP2), lambda n: (0, 0)),
        ],
        out_specs=pl.BlockSpec((bt, HH * WW, 64), lambda n: (n, 0, 0)),
        scratch_shapes=[pltpu.VMEM((bt * HWP2 + 24, 64), jnp.float32)],
        compiler_params=pltpu.CompilerParams(
            dimension_semantics=("parallel",),
            vmem_limit_bytes=32 * 1024 * 1024),
    )(x_slab, w_mat, b_row, s_mat)


# ----------------------------------------------------------------------------
# Kernel 3: fused fc1 + ReLU + fc2, tiled over rows.
# ----------------------------------------------------------------------------
def _mlp_kernel(x_ref, w1_ref, b1_ref, w2_ref, b2_ref, o_ref):
    h = jnp.dot(x_ref[...], w1_ref[...], preferred_element_type=jnp.float32)
    h = jnp.maximum(h + b1_ref[...], 0.0)
    y = jnp.dot(h.astype(w2_ref.dtype), w2_ref[...],
                preferred_element_type=jnp.float32)
    o_ref[...] = (y + b2_ref[...]).astype(o_ref.dtype)


def mlp_head(x, w1_t, b1_row, w2_t, b2_row):
    B, K = x.shape
    N1 = w1_t.shape[1]
    N2 = w2_t.shape[1]
    # Keep >=2 grid steps when B is large (v7x megacore), cap the tile at 256.
    tm = min(256, _round_up(max(B // 2, 1), 8))
    Mp = _round_up(B, tm)
    xp = jnp.pad(x, ((0, Mp - B), (0, 0)))
    out = pl.pallas_call(
        _mlp_kernel,
        out_shape=jax.ShapeDtypeStruct((Mp, N2), jnp.float32),
        grid=(Mp // tm,),
        in_specs=[
            pl.BlockSpec((tm, K), lambda m: (m, 0)),
            pl.BlockSpec((K, N1), lambda m: (0, 0)),
            pl.BlockSpec((1, N1), lambda m: (0, 0)),
            pl.BlockSpec((N1, N2), lambda m: (0, 0)),
            pl.BlockSpec((1, N2), lambda m: (0, 0)),
        ],
        out_specs=pl.BlockSpec((tm, N2), lambda m: (m, 0)),
        compiler_params=pltpu.CompilerParams(
            dimension_semantics=("parallel",),
            vmem_limit_bytes=32 * 1024 * 1024),
    )(xp, w1_t, b1_row, w2_t, b2_row)
    return out[:B]


# ----------------------------------------------------------------------------
# One-time parameter preparation (hoisted out of the forward pass).
# ----------------------------------------------------------------------------
def prepare_params(params):
    f32, bf16 = jnp.float32, jnp.bfloat16

    # conv1: (dy, dx) tap-major weight rows, K zero-padded 9 -> 128.
    w1 = jnp.transpose(params["conv1_w"], (2, 3, 1, 0)).reshape(9, 32)
    w1_mat = jnp.pad(w1, ((0, 128 - 9), (0, 0))).astype(bf16)
    b1_row = params["conv1_b"].reshape(1, 32).astype(f32)

    # conv2: (dy, dx, cin) tap-major weight matrix, K = 288.
    w2_mat = jnp.transpose(params["conv2_w"], (2, 3, 1, 0)).reshape(288, 64)
    w2_mat = w2_mat.astype(bf16)
    b2_row = params["conv2_b"].reshape(1, 64).astype(f32)

    # conv1 pooling/compaction selection matrix (0/1, bf16): output row m is
    # conv2-slab position 16+m; zero rows at left/right pad columns.
    m1 = jnp.arange(HWP2)[:, None]
    n1 = jnp.arange(HWP1)[None, :]
    hh1, wc1 = m1 // WP2, m1 % WP2
    valid1 = (wc1 >= 1) & (wc1 <= 14)
    nsel1 = 2 * hh1 * WP1 + 2 * (wc1 - 1)
    s1 = jnp.where(valid1 & (n1 == nsel1), 1.0, 0.0).astype(bf16)

    # conv2 pooling/compaction selection matrix (49 x 224).
    m2 = jnp.arange(HH * WW)[:, None]
    n2 = jnp.arange(HWP2)[None, :]
    nsel2 = 2 * (m2 // WW) * WP2 + 2 * (m2 % WW)
    s2 = (n2 == nsel2).astype(bf16)

    # fc1: permute input features from torch's (c, h, w) flatten order to the
    # kernel's (h, w, c) order; both fcs transposed to (in, out), bf16.
    w_fc1 = params["fc1_w"].reshape(128, 64, HH, WW)
    w_fc1 = jnp.transpose(w_fc1, (2, 3, 1, 0)).reshape(HH * WW * 64, 128)
    prep = {
        "w1_mat": w1_mat, "b1_row": b1_row, "s1": s1,
        "w2_mat": w2_mat, "b2_row": b2_row, "s2": s2,
        "w_fc1": w_fc1.astype(bf16),
        "b_fc1": params["fc1_b"].reshape(1, 128).astype(f32),
        "w_fc2": jnp.transpose(params["fc2_w"]).astype(bf16),
        "b_fc2": params["fc2_b"].reshape(1, 2).astype(f32),
    }
    return prep


# ----------------------------------------------------------------------------
# Forward pass.
# ----------------------------------------------------------------------------
def net_forward(x_nchw, prep):
    B = x_nchw.shape[0]
    assert x_nchw.shape[1:] == (1, 28, 28)
    bt = min(8, max(1, B // 2))          # batch tile; >=2 grid steps when B>=2
    Bp = _round_up(B, bt)

    # Host-side tap stacking (im2col) for conv1's single input channel; taps
    # are zero-padded to 128 so HBM rows and the VMEM block are lane-dense.
    x = x_nchw.reshape(B, 28, 28)
    if Bp != B:
        x = jnp.pad(x, ((0, Bp - B), (0, 0), (0, 0)))
    xp = jnp.pad(x, ((0, 0), (1, 1), (1, 5)))        # (Bp, 30, 34)
    taps = [xp[:, dy:dy + H1, dx:dx + WP1]
            for dy in range(3) for dx in range(3)]
    x_col = jnp.stack(taps, axis=-1).reshape(Bp, HWP1, 9)
    x_col = jnp.pad(x_col, ((0, 0), (0, 0), (0, 128 - 9))).astype(jnp.bfloat16)

    # conv1 writes its pooled output directly as conv2's padded flat slab.
    slab2 = conv1_relu_pool(x_col, prep["w1_mat"], prep["b1_row"],
                            prep["s1"], bt)                      # (Bp, 272, 32)
    pooled2 = conv2_relu_pool(slab2, prep["w2_mat"], prep["b2_row"],
                              prep["s2"], bt)                    # (Bp, 49, 64)
    feats = pooled2.reshape(Bp, HH * WW * 64)                    # (h, w, c) order
    out = mlp_head(feats, prep["w_fc1"], prep["b_fc1"],
                   prep["w_fc2"], prep["b_fc2"])
    return out[:B]


def init_params(key):
    ks = jax.random.split(key, 8)
    f32 = jnp.float32
    return {
        # PyTorch layouts: conv OIHW, linear (out_features, in_features).
        "conv1_w": jax.random.normal(ks[0], (32, 1, 3, 3), f32) * 0.1,
        "conv1_b": jax.random.normal(ks[1], (32,), f32) * 0.01,
        "conv2_w": jax.random.normal(ks[2], (64, 32, 3, 3), f32) * 0.05,
        "conv2_b": jax.random.normal(ks[3], (64,), f32) * 0.01,
        "fc1_w": jax.random.normal(ks[4], (128, 64 * 7 * 7), f32) * 0.02,
        "fc1_b": jax.random.normal(ks[5], (128,), f32) * 0.01,
        "fc2_w": jax.random.normal(ks[6], (2, 128), f32) * 0.05,
        "fc2_b": jax.random.normal(ks[7], (2,), f32) * 0.01,
    }


def net_reference(x_nchw, params):
    """Pure-JAX f32 reference matching the PyTorch forward."""
    dn = ("NCHW", "OIHW", "NCHW")
    x = lax.conv_general_dilated(x_nchw, params["conv1_w"], (1, 1),
                                 ((1, 1), (1, 1)), dimension_numbers=dn)
    x = jnp.maximum(x + params["conv1_b"][None, :, None, None], 0.0)
    x = lax.reduce_window(x, -jnp.inf, lax.max, (1, 1, 2, 2), (1, 1, 2, 2), "VALID")
    x = lax.conv_general_dilated(x, params["conv2_w"], (1, 1),
                                 ((1, 1), (1, 1)), dimension_numbers=dn)
    x = jnp.maximum(x + params["conv2_b"][None, :, None, None], 0.0)
    x = lax.reduce_window(x, -jnp.inf, lax.max, (1, 1, 2, 2), (1, 1, 2, 2), "VALID")
    x = x.reshape(x.shape[0], -1)                                  # (c,h,w) order
    x = jnp.maximum(x @ params["fc1_w"].T + params["fc1_b"], 0.0)
    return x @ params["fc2_w"].T + params["fc2_b"]


if __name__ == "__main__":
    key = jax.random.PRNGKey(0)
    k_params, k_x = jax.random.split(key)
    params = init_params(k_params)
    # fc1 expects 64*7*7 in_features => 28x28 single-channel input.
    x = jax.random.normal(k_x, (2, 1, 28, 28), jnp.float32)

    prep = prepare_params(params)          # one-time weight preparation
    out = jax.block_until_ready(jax.jit(net_forward)(x, prep))
    assert out.shape == (2, 2), out.shape

    # Loose tolerance: kernels use bf16 matmul operands (f32 accumulation).
    ref = net_reference(x, params)
    err = float(jnp.max(jnp.abs(out - ref)))
    assert err < 1e-1, f"max abs error vs f32 reference too large: {err}"
    print("KERNEL_OK")
</pallas_src>

<mosaic_0001>
module attributes {stable_mosaic.version = 11 : i64} {
  func.func @_conv1_kernel(%arg0: i32, %arg1: memref<1x896x128xbf16, #tpu.memory_space<vmem>>, %arg2: memref<128x32xbf16, #tpu.memory_space<vmem>>, %arg3: memref<1x32xf32, #tpu.memory_space<vmem>>, %arg4: memref<224x896xbf16, #tpu.memory_space<vmem>>, %arg5: memref<1x272x32xbf16, #tpu.memory_space<vmem>>, %arg6: memref<936x32xf32, #tpu.memory_space<vmem>>) attributes {dimension_semantics = [#tpu.dimension_semantics<parallel>], iteration_bounds = array<i64: 2>, scalar_prefetch = 0 : i64, scratch_operands = 1 : i64, tpu.core_type = #tpu.core_type<tc>, window_params = [{transform_indices = @transform_0, window_bounds = array<i64: 1, 896, 128>}, {pipeline_mode = #tpu.pipeline_mode<synchronous>, transform_indices = @transform_1, window_bounds = array<i64: 128, 32>}, {pipeline_mode = #tpu.pipeline_mode<synchronous>, transform_indices = @transform_2, window_bounds = array<i64: 1, 32>}, {pipeline_mode = #tpu.pipeline_mode<synchronous>, transform_indices = @transform_3, window_bounds = array<i64: 224, 896>}, {transform_indices = @transform_4, window_bounds = array<i64: 1, 272, 32>}]} {
    %cst = arith.constant 0.000000e+00 : f32
    %0 = vector.broadcast %cst : f32 to vector<40x32xf32>
    %c896 = arith.constant 896 : index
    %c0 = arith.constant 0 : index
    %1 = vector.load %arg6[%c896, %c0] : memref<936x32xf32, #tpu.memory_space<vmem>>, vector<40x32xf32>
    tpu.vector_store %arg6[%c896, %c0], %0 {strides = array<i32>} : memref<936x32xf32, #tpu.memory_space<vmem>>, vector<40x32xf32>,
    %c0_0 = arith.constant 0 : index
    %c0_1 = arith.constant 0 : index
    %c0_2 = arith.constant 0 : index
    %2 = vector.load %arg1[%c0_0, %c0_1, %c0_2] : memref<1x896x128xbf16, #tpu.memory_space<vmem>>, vector<1x896x128xbf16>
    %3 = vector.shape_cast %2 : vector<1x896x128xbf16> to vector<896x128xbf16>
    %c0_3 = arith.constant 0 : index
    %c0_4 = arith.constant 0 : index
    %4 = vector.load %arg2[%c0_3, %c0_4] : memref<128x32xbf16, #tpu.memory_space<vmem>>, vector<128x32xbf16>
    %cst_5 = arith.constant dense<0.000000e+00> : vector<896x32xf32>
    %5 = tpu.matmul %3, %4, %cst_5 {dimension_numbers = #tpu.dot_dimension_numbers<[1], [0], [0], [1], [0, 0, 1, 1], [], []>} : vector<896x128xbf16>, vector<128x32xbf16>, vector<896x32xf32> -> vector<896x32xf32>
    %c0_6 = arith.constant 0 : index
    %c0_7 = arith.constant 0 : index
    %6 = vector.load %arg3[%c0_6, %c0_7] : memref<1x32xf32, #tpu.memory_space<vmem>>, vector<1x32xf32>
    %7 = vector.broadcast %6 : vector<1x32xf32> to vector<896x32xf32>
    %8 = arith.addf %5, %7 : vector<896x32xf32>
    %cst_8 = arith.constant 0.000000e+00 : f32
    %9 = vector.broadcast %cst_8 : f32 to vector<896x32xf32>
    %10 = arith.maximumf %8, %9 : vector<896x32xf32>
    %c0_9 = arith.constant 0 : index
    %c0_10 = arith.constant 0 : index
    %11 = vector.load %arg6[%c0_9, %c0_10] : memref<936x32xf32, #tpu.memory_space<vmem>>, vector<896x32xf32>
    tpu.vector_store %arg6[%c0_9, %c0_10], %10 {strides = array<i32>} : memref<936x32xf32, #tpu.memory_space<vmem>>, vector<896x32xf32>,
    %c0_11 = arith.constant 0 : index
    %c0_12 = arith.constant 0 : index
    %12 = vector.load %arg6[%c0_11, %c0_12] : memref<936x32xf32, #tpu.memory_space<vmem>>, vector<896x32xf32>
    %c1 = arith.constant 1 : index
    %c0_13 = arith.constant 0 : index
    %13 = vector.load %arg6[%c1, %c0_13] : memref<936x32xf32, #tpu.memory_space<vmem>>, vector<896x32xf32>
    %14 = arith.maximumf %12, %13 : vector<896x32xf32>
    %c32 = arith.constant 32 : index
    %c0_14 = arith.constant 0 : index
    %15 = vector.load %arg6[%c32, %c0_14] : memref<936x32xf32, #tpu.memory_space<vmem>>, vector<896x32xf32>
    %c33 = arith.constant 33 : index
    %c0_15 = arith.constant 0 : index
    %16 = vector.load %arg6[%c33, %c0_15] : memref<936x32xf32, #tpu.memory_space<vmem>>, vector<896x32xf32>
    %17 = arith.maximumf %15, %16 : vector<896x32xf32>
    %18 = arith.maximumf %14, %17 : vector<896x32xf32>
    %19 = arith.truncf %18 : vector<896x32xf32> to vector<896x32xbf16>
    %c0_16 = arith.constant 0 : index
    %c0_17 = arith.constant 0 : index
    %20 = vector.load %arg4[%c0_16, %c0_17] : memref<224x896xbf16, #tpu.memory_space<vmem>>, vector<224x896xbf16>
    %cst_18 = arith.constant dense<0.000000e+00> : vector<224x32xf32>
    %21 = tpu.matmul %20, %19, %cst_18 {dimension_numbers = #tpu.dot_dimension_numbers<[1], [0], [0], [1], [0, 0, 1, 1], [], []>} : vector<224x896xbf16>, vector<896x32xbf16>, vector<224x32xf32> -> vector<224x32xf32>
    %cst_19 = arith.constant 0.000000e+00 : bf16
    %22 = vector.broadcast %cst_19 : bf16 to vector<16x32xbf16>
    %c0_20 = arith.constant 0 : index
    %c0_21 = arith.constant 0 : index
    %c0_22 = arith.constant 0 : index
    %23 = vector.load %arg5[%c0_20, %c0_21, %c0_22] : memref<1x272x32xbf16, #tpu.memory_space<vmem>>, vector<1x16x32xbf16>
    %24 = vector.shape_cast %23 : vector<1x16x32xbf16> to vector<16x32xbf16>
    %25 = vector.shape_cast %22 : vector<16x32xbf16> to vector<1x16x32xbf16>
    tpu.vector_store %arg5[%c0_20, %c0_21, %c0_22], %25 {strides = array<i32>} : memref<1x272x32xbf16, #tpu.memory_space<vmem>>, vector<1x16x32xbf16>,
    %26 = arith.truncf %21 : vector<224x32xf32> to vector<224x32xbf16>
    %c0_23 = arith.constant 0 : index
    %c16 = arith.constant 16 : index
    %c0_24 = arith.constant 0 : index
    %27 = vector.load %arg5[%c0_23, %c16, %c0_24] : memref<1x272x32xbf16, #tpu.memory_space<vmem>>, vector<1x224x32xbf16>
    %28 = vector.shape_cast %27 : vector<1x224x32xbf16> to vector<224x32xbf16>
    %29 = vector.shape_cast %26 : vector<224x32xbf16> to vector<1x224x32xbf16>
    tpu.vector_store %arg5[%c0_23, %c16, %c0_24], %29 {strides = array<i32>} : memref<1x272x32xbf16, #tpu.memory_space<vmem>>, vector<1x224x32xbf16>,
    %cst_25 = arith.constant 0.000000e+00 : bf16
    %30 = vector.broadcast %cst_25 : bf16 to vector<32x32xbf16>
    %c0_26 = arith.constant 0 : index
    %c240 = arith.constant 240 : index
    %c0_27 = arith.constant 0 : index
    %31 = vector.load %arg5[%c0_26, %c240, %c0_27] : memref<1x272x32xbf16, #tpu.memory_space<vmem>>, vector<1x32x32xbf16>
    %32 = vector.shape_cast %31 : vector<1x32x32xbf16> to vector<32x32xbf16>
    %33 = vector.shape_cast %30 : vector<32x32xbf16> to vector<1x32x32xbf16>
    tpu.vector_store %arg5[%c0_26, %c240, %c0_27], %33 {strides = array<i32>} : memref<1x272x32xbf16, #tpu.memory_space<vmem>>, vector<1x32x32xbf16>,
    return
  }
  func.func @transform_0(%arg0: i32) -> (i32, i32, i32) {
    %c0_i32 = arith.constant 0 : i32
    %c0_i32_0 = arith.constant 0 : i32
    %c0_i32_1 = arith.constant 0 : i32
    return %arg0, %c0_i32, %c0_i32_0 : i32, i32, i32
  }
  func.func @transform_1(%arg0: i32) -> (i32, i32) {
    %c0_i32 = arith.constant 0 : i32
    %c0_i32_0 = arith.constant 0 : i32
    %c0_i32_1 = arith.constant 0 : i32
    return %c0_i32, %c0_i32_0 : i32, i32
  }
  func.func @transform_2(%arg0: i32) -> (i32, i32) {
    %c0_i32 = arith.constant 0 : i32
    %c0_i32_0 = arith.constant 0 : i32
    %c0_i32_1 = arith.constant 0 : i32
    return %c0_i32, %c0_i32_0 : i32, i32
  }
  func.func @transform_3(%arg0: i32) -> (i32, i32) {
    %c0_i32 = arith.constant 0 : i32
    %c0_i32_0 = arith.constant 0 : i32
    %c0_i32_1 = arith.constant 0 : i32
    return %c0_i32, %c0_i32_0 : i32, i32
  }
  func.func @transform_4(%arg0: i32) -> (i32, i32, i32) {
    %c0_i32 = arith.constant 0 : i32
    %c0_i32_0 = arith.constant 0 : i32
    %c0_i32_1 = arith.constant 0 : i32
    return %arg0, %c0_i32, %c0_i32_0 : i32, i32, i32
  }
}

module attributes {stable_mosaic.version = 11 : i64} {
  func.func @_conv2_kernel(%arg0: i32, %arg1: memref<1x272x32xbf16, #tpu.memory_space<vmem>>, %arg2: memref<288x64xbf16, #tpu.memory_space<vmem>>, %arg3: memref<1x64xf32, #tpu.memory_space<vmem>>, %arg4: memref<49x224xbf16, #tpu.memory_space<vmem>>, %arg5: memref<1x49x64xbf16, #tpu.memory_space<vmem>>, %arg6: memref<248x64xf32, #tpu.memory_space<vmem>>) attributes {dimension_semantics = [#tpu.dimension_semantics<parallel>], iteration_bounds = array<i64: 2>, scalar_prefetch = 0 : i64, scratch_operands = 1 : i64, tpu.core_type = #tpu.core_type<tc>, window_params = [{transform_indices = @transform_0, window_bounds = array<i64: 1, 272, 32>}, {pipeline_mode = #tpu.pipeline_mode<synchronous>, transform_indices = @transform_1, window_bounds = array<i64: 288, 64>}, {pipeline_mode = #tpu.pipeline_mode<synchronous>, transform_indices = @transform_2, window_bounds = array<i64: 1, 64>}, {pipeline_mode = #tpu.pipeline_mode<synchronous>, transform_indices = @transform_3, window_bounds = array<i64: 49, 224>}, {transform_indices = @transform_4, window_bounds = array<i64: 1, 49, 64>}]} {
    %cst = arith.constant 0.000000e+00 : f32
    %0 = vector.broadcast %cst : f32 to vector<24x64xf32>
    %c224 = arith.constant 224 : index
    %c0 = arith.constant 0 : index
    %1 = vector.load %arg6[%c224, %c0] : memref<248x64xf32, #tpu.memory_space<vmem>>, vector<24x64xf32>
    tpu.vector_store %arg6[%c224, %c0], %0 {strides = array<i32>} : memref<248x64xf32, #tpu.memory_space<vmem>>, vector<24x64xf32>,
    %cst_0 = arith.constant 0.000000e+00 : f32
    %2 = vector.broadcast %cst_0 : f32 to vector<224x64xf32>
    %c0_1 = arith.constant 0 : index
    %c0_2 = arith.constant 0 : index
    %c0_3 = arith.constant 0 : index
    %3 = vector.load %arg1[%c0_1, %c0_2, %c0_3] : memref<1x272x32xbf16, #tpu.memory_space<vmem>>, vector<1x224x32xbf16>
    %4 = vector.shape_cast %3 : vector<1x224x32xbf16> to vector<224x32xbf16>
    %c0_4 = arith.constant 0 : index
    %c0_5 = arith.constant 0 : index
    %5 = vector.load %arg2[%c0_4, %c0_5] : memref<288x64xbf16, #tpu.memory_space<vmem>>, vector<32x64xbf16>
    %cst_6 = arith.constant dense<0.000000e+00> : vector<224x64xf32>
    %6 = tpu.matmul %4, %5, %cst_6 {dimension_numbers = #tpu.dot_dimension_numbers<[1], [0], [0], [1], [0, 0, 1, 1], [], []>} : vector<224x32xbf16>, vector<32x64xbf16>, vector<224x64xf32> -> vector<224x64xf32>
    %7 = arith.addf %2, %6 : vector<224x64xf32>
    %c0_7 = arith.constant 0 : index
    %c1 = arith.constant 1 : index
    %c0_8 = arith.constant 0 : index
    %8 = vector.load %arg1[%c0_7, %c1, %c0_8] : memref<1x272x32xbf16, #tpu.memory_space<vmem>>, vector<1x224x32xbf16>
    %9 = vector.shape_cast %8 : vector<1x224x32xbf16> to vector<224x32xbf16>
    %c32 = arith.constant 32 : index
    %c0_9 = arith.constant 0 : index
    %10 = vector.load %arg2[%c32, %c0_9] : memref<288x64xbf16, #tpu.memory_space<vmem>>, vector<32x64xbf16>
    %cst_10 = arith.constant dense<0.000000e+00> : vector<224x64xf32>
    %11 = tpu.matmul %9, %10, %cst_10 {dimension_numbers = #tpu.dot_dimension_numbers<[1], [0], [0], [1], [0, 0, 1, 1], [], []>} : vector<224x32xbf16>, vector<32x64xbf16>, vector<224x64xf32> -> vector<224x64xf32>
    %12 = arith.addf %7, %11 : vector<224x64xf32>
    %c0_11 = arith.constant 0 : index
    %c2 = arith.constant 2 : index
    %c0_12 = arith.constant 0 : index
    %13 = vector.load %arg1[%c0_11, %c2, %c0_12] : memref<1x272x32xbf16, #tpu.memory_space<vmem>>, vector<1x224x32xbf16>
    %14 = vector.shape_cast %13 : vector<1x224x32xbf16> to vector<224x32xbf16>
    %c64 = arith.constant 64 : index
    %c0_13 = arith.constant 0 : index
    %15 = vector.load %arg2[%c64, %c0_13] : memref<288x64xbf16, #tpu.memory_space<vmem>>, vector<32x64xbf16>
    %cst_14 = arith.constant dense<0.000000e+00> : vector<224x64xf32>
    %16 = tpu.matmul %14, %15, %cst_14 {dimension_numbers = #tpu.dot_dimension_numbers<[1], [0], [0], [1], [0, 0, 1, 1], [], []>} : vector<224x32xbf16>, vector<32x64xbf16>, vector<224x64xf32> -> vector<224x64xf32>
    %17 = arith.addf %12, %16 : vector<224x64xf32>
    %c0_15 = arith.constant 0 : index
    %c16 = arith.constant 16 : index
    %c0_16 = arith.constant 0 : index
    %18 = vector.load %arg1[%c0_15, %c16, %c0_16] : memref<1x272x32xbf16, #tpu.memory_space<vmem>>, vector<1x224x32xbf16>
    %19 = vector.shape_cast %18 : vector<1x224x32xbf16> to vector<224x32xbf16>
    %c96 = arith.constant 96 : index
    %c0_17 = arith.constant 0 : index
    %20 = vector.load %arg2[%c96, %c0_17] : memref<288x64xbf16, #tpu.memory_space<vmem>>, vector<32x64xbf16>
    %cst_18 = arith.constant dense<0.000000e+00> : vector<224x64xf32>
    %21 = tpu.matmul %19, %20, %cst_18 {dimension_numbers = #tpu.dot_dimension_numbers<[1], [0], [0], [1], [0, 0, 1, 1], [], []>} : vector<224x32xbf16>, vector<32x64xbf16>, vector<224x64xf32> -> vector<224x64xf32>
    %22 = arith.addf %17, %21 : vector<224x64xf32>
    %c0_19 = arith.constant 0 : index
    %c17 = arith.constant 17 : index
    %c0_20 = arith.constant 0 : index
    %23 = vector.load %arg1[%c0_19, %c17, %c0_20] : memref<1x272x32xbf16, #tpu.memory_space<vmem>>, vector<1x224x32xbf16>
    %24 = vector.shape_cast %23 : vector<1x224x32xbf16> to vector<224x32xbf16>
    %c128 = arith.constant 128 : index
    %c0_21 = arith.constant 0 : index
    %25 = vector.load %arg2[%c128, %c0_21] : memref<288x64xbf16, #tpu.memory_space<vmem>>, vector<32x64xbf16>
    %cst_22 = arith.constant dense<0.000000e+00> : vector<224x64xf32>
    %26 = tpu.matmul %24, %25, %cst_22 {dimension_numbers = #tpu.dot_dimension_numbers<[1], [0], [0], [1], [0, 0, 1, 1], [], []>} : vector<224x32xbf16>, vector<32x64xbf16>, vector<224x64xf32> -> vector<224x64xf32>
    %27 = arith.addf %22, %26 : vector<224x64xf32>
    %c0_23 = arith.constant 0 : index
    %c18 = arith.constant 18 : index
    %c0_24 = arith.constant 0 : index
    %28 = vector.load %arg1[%c0_23, %c18, %c0_24] : memref<1x272x32xbf16, #tpu.memory_space<vmem>>, vector<1x224x32xbf16>
    %29 = vector.shape_cast %28 : vector<1x224x32xbf16> to vector<224x32xbf16>
    %c160 = arith.constant 160 : index
    %c0_25 = arith.constant 0 : index
    %30 = vector.load %arg2[%c160, %c0_25] : memref<288x64xbf16, #tpu.memory_space<vmem>>, vector<32x64xbf16>
    %cst_26 = arith.constant dense<0.000000e+00> : vector<224x64xf32>
    %31 = tpu.matmul %29, %30, %cst_26 {dimension_numbers = #tpu.dot_dimension_numbers<[1], [0], [0], [1], [0, 0, 1, 1], [], []>} : vector<224x32xbf16>, vector<32x64xbf16>, vector<224x64xf32> -> vector<224x64xf32>
    %32 = arith.addf %27, %31 : vector<224x64xf32>
    %c0_27 = arith.constant 0 : index
    %c32_28 = arith.constant 32 : index
    %c0_29 = arith.constant 0 : index
    %33 = vector.load %arg1[%c0_27, %c32_28, %c0_29] : memref<1x272x32xbf16, #tpu.memory_space<vmem>>, vector<1x224x32xbf16>
    %34 = vector.shape_cast %33 : vector<1x224x32xbf16> to vector<224x32xbf16>
    %c192 = arith.constant 192 : index
    %c0_30 = arith.constant 0 : index
    %35 = vector.load %arg2[%c192, %c0_30] : memref<288x64xbf16, #tpu.memory_space<vmem>>, vector<32x64xbf16>
    %cst_31 = arith.constant dense<0.000000e+00> : vector<224x64xf32>
    %36 = tpu.matmul %34, %35, %cst_31 {dimension_numbers = #tpu.dot_dimension_numbers<[1], [0], [0], [1], [0, 0, 1, 1], [], []>} : vector<224x32xbf16>, vector<32x64xbf16>, vector<224x64xf32> -> vector<224x64xf32>
    %37 = arith.addf %32, %36 : vector<224x64xf32>
    %c0_32 = arith.constant 0 : index
    %c33 = arith.constant 33 : index
    %c0_33 = arith.constant 0 : index
    %38 = vector.load %arg1[%c0_32, %c33, %c0_33] : memref<1x272x32xbf16, #tpu.memory_space<vmem>>, vector<1x224x32xbf16>
    %39 = vector.shape_cast %38 : vector<1x224x32xbf16> to vector<224x32xbf16>
    %c224_34 = arith.constant 224 : index
    %c0_35 = arith.constant 0 : index
    %40 = vector.load %arg2[%c224_34, %c0_35] : memref<288x64xbf16, #tpu.memory_space<vmem>>, vector<32x64xbf16>
    %cst_36 = arith.constant dense<0.000000e+00> : vector<224x64xf32>
    %41 = tpu.matmul %39, %40, %cst_36 {dimension_numbers = #tpu.dot_dimension_numbers<[1], [0], [0], [1], [0, 0, 1, 1], [], []>} : vector<224x32xbf16>, vector<32x64xbf16>, vector<224x64xf32> -> vector<224x64xf32>
    %42 = arith.addf %37, %41 : vector<224x64xf32>
    %c0_37 = arith.constant 0 : index
    %c34 = arith.constant 34 : index
    %c0_38 = arith.constant 0 : index
    %43 = vector.load %arg1[%c0_37, %c34, %c0_38] : memref<1x272x32xbf16, #tpu.memory_space<vmem>>, vector<1x224x32xbf16>
    %44 = vector.shape_cast %43 : vector<1x224x32xbf16> to vector<224x32xbf16>
    %c256 = arith.constant 256 : index
    %c0_39 = arith.constant 0 : index
    %45 = vector.load %arg2[%c256, %c0_39] : memref<288x64xbf16, #tpu.memory_space<vmem>>, vector<32x64xbf16>
    %cst_40 = arith.constant dense<0.000000e+00> : vector<224x64xf32>
    %46 = tpu.matmul %44, %45, %cst_40 {dimension_numbers = #tpu.dot_dimension_numbers<[1], [0], [0], [1], [0, 0, 1, 1], [], []>} : vector<224x32xbf16>, vector<32x64xbf16>, vector<224x64xf32> -> vector<224x64xf32>
    %47 = arith.addf %42, %46 : vector<224x64xf32>
    %c0_41 = arith.constant 0 : index
    %c0_42 = arith.constant 0 : index
    %48 = vector.load %arg3[%c0_41, %c0_42] : memref<1x64xf32, #tpu.memory_space<vmem>>, vector<1x64xf32>
    %49 = vector.broadcast %48 : vector<1x64xf32> to vector<224x64xf32>
    %50 = arith.addf %47, %49 : vector<224x64xf32>
    %cst_43 = arith.constant 0.000000e+00 : f32
    %51 = vector.broadcast %cst_43 : f32 to vector<224x64xf32>
    %52 = arith.maximumf %50, %51 : vector<224x64xf32>
    %c0_44 = arith.constant 0 : index
    %c0_45 = arith.constant 0 : index
    %53 = vector.load %arg6[%c0_44, %c0_45] : memref<248x64xf32, #tpu.memory_space<vmem>>, vector<224x64xf32>
    tpu.vector_store %arg6[%c0_44, %c0_45], %52 {strides = array<i32>} : memref<248x64xf32, #tpu.memory_space<vmem>>, vector<224x64xf32>,
    %c0_46 = arith.constant 0 : index
    %c0_47 = arith.constant 0 : index
    %54 = vector.load %arg6[%c0_46, %c0_47] : memref<248x64xf32, #tpu.memory_space<vmem>>, vector<224x64xf32>
    %c1_48 = arith.constant 1 : index
    %c0_49 = arith.constant 0 : index
    %55 = vector.load %arg6[%c1_48, %c0_49] : memref<248x64xf32, #tpu.memory_space<vmem>>, vector<224x64xf32>
    %56 = arith.maximumf %54, %55 : vector<224x64xf32>
    %c16_50 = arith.constant 16 : index
    %c0_51 = arith.constant 0 : index
    %57 = vector.load %arg6[%c16_50, %c0_51] : memref<248x64xf32, #tpu.memory_space<vmem>>, vector<224x64xf32>
    %c17_52 = arith.constant 17 : index
    %c0_53 = arith.constant 0 : index
    %58 = vector.load %arg6[%c17_52, %c0_53] : memref<248x64xf32, #tpu.memory_space<vmem>>, vector<224x64xf32>
    %59 = arith.maximumf %57, %58 : vector<224x64xf32>
    %60 = arith.maximumf %56, %59 : vector<224x64xf32>
    %61 = arith.truncf %60 : vector<224x64xf32> to vector<224x64xbf16>
    %c0_54 = arith.constant 0 : index
    %c0_55 = arith.constant 0 : index
    %62 = vector.load %arg4[%c0_54, %c0_55] : memref<49x224xbf16, #tpu.memory_space<vmem>>, vector<49x224xbf16>
    %cst_56 = arith.constant dense<0.000000e+00> : vector<49x64xf32>
    %63 = tpu.matmul %62, %61, %cst_56 {dimension_numbers = #tpu.dot_dimension_numbers<[1], [0], [0], [1], [0, 0, 1, 1], [], []>} : vector<49x224xbf16>, vector<224x64xbf16>, vector<49x64xf32> -> vector<49x64xf32>
    %64 = arith.truncf %63 : vector<49x64xf32> to vector<49x64xbf16>
    %c0_57 = arith.constant 0 : index
    %c0_58 = arith.constant 0 : index
    %c0_59 = arith.constant 0 : index
    %65 = vector.load %arg5[%c0_57, %c0_58, %c0_59] : memref<1x49x64xbf16, #tpu.memory_space<vmem>>, vector<1x49x64xbf16>
    %66 = vector.shape_cast %65 : vector<1x49x64xbf16> to vector<49x64xbf16>
    %67 = vector.shape_cast %64 : vector<49x64xbf16> to vector<1x49x64xbf16>
    tpu.vector_store %arg5[%c0_57, %c0_58, %c0_59], %67 {strides = array<i32>} : memref<1x49x64xbf16, #tpu.memory_space<vmem>>, vector<1x49x64xbf16>,
    return
  }
  func.func @transform_0(%arg0: i32) -> (i32, i32, i32) {
    %c0_i32 = arith.constant 0 : i32
    %c0_i32_0 = arith.constant 0 : i32
    %c0_i32_1 = arith.constant 0 : i32
    return %arg0, %c0_i32, %c0_i32_0 : i32, i32, i32
  }
  func.func @transform_1(%arg0: i32) -> (i32, i32) {
    %c0_i32 = arith.constant 0 : i32
    %c0_i32_0 = arith.constant 0 : i32
    %c0_i32_1 = arith.constant 0 : i32
    return %c0_i32, %c0_i32_0 : i32, i32
  }
  func.func @transform_2(%arg0: i32) -> (i32, i32) {
    %c0_i32 = arith.constant 0 : i32
    %c0_i32_0 = arith.constant 0 : i32
    %c0_i32_1 = arith.constant 0 : i32
    return %c0_i32, %c0_i32_0 : i32, i32
  }
  func.func @transform_3(%arg0: i32) -> (i32, i32) {
    %c0_i32 = arith.constant 0 : i32
    %c0_i32_0 = arith.constant 0 : i32
    %c0_i32_1 = arith.constant 0 : i32
    return %c0_i32, %c0_i32_0 : i32, i32
  }
  func.func @transform_4(%arg0: i32) -> (i32, i32, i32) {
    %c0_i32 = arith.constant 0 : i32
    %c0_i32_0 = arith.constant 0 : i32
    %c0_i32_1 = arith.constant 0 : i32
    return %arg0, %c0_i32, %c0_i32_0 : i32, i32, i32
  }
}

module attributes {stable_mosaic.version = 11 : i64} {
  func.func @_mlp_kernel(%arg0: i32, %arg1: memref<8x3136xbf16, #tpu.memory_space<vmem>>, %arg2: memref<3136x128xbf16, #tpu.memory_space<vmem>>, %arg3: memref<1x128xf32, #tpu.memory_space<vmem>>, %arg4: memref<128x2xbf16, #tpu.memory_space<vmem>>, %arg5: memref<1x2xf32, #tpu.memory_space<vmem>>, %arg6: memref<8x2xf32, #tpu.memory_space<vmem>>) attributes {dimension_semantics = [#tpu.dimension_semantics<parallel>], iteration_bounds = array<i64: 1>, scalar_prefetch = 0 : i64, scratch_operands = 0 : i64, tpu.core_type = #tpu.core_type<tc>, window_params = [{transform_indices = @transform_0, window_bounds = array<i64: 8, 3136>}, {pipeline_mode = #tpu.pipeline_mode<synchronous>, transform_indices = @transform_1, window_bounds = array<i64: 3136, 128>}, {pipeline_mode = #tpu.pipeline_mode<synchronous>, transform_indices = @transform_2, window_bounds = array<i64: 1, 128>}, {pipeline_mode = #tpu.pipeline_mode<synchronous>, transform_indices = @transform_3, window_bounds = array<i64: 128, 2>}, {pipeline_mode = #tpu.pipeline_mode<synchronous>, transform_indices = @transform_4, window_bounds = array<i64: 1, 2>}, {transform_indices = @transform_5, window_bounds = array<i64: 8, 2>}]} {
    %c0 = arith.constant 0 : index
    %c0_0 = arith.constant 0 : index
    %0 = vector.load %arg1[%c0, %c0_0] : memref<8x3136xbf16, #tpu.memory_space<vmem>>, vector<8x3136xbf16>
    %c0_1 = arith.constant 0 : index
    %c0_2 = arith.constant 0 : index
    %1 = vector.load %arg2[%c0_1, %c0_2] : memref<3136x128xbf16, #tpu.memory_space<vmem>>, vector<3136x128xbf16>
    %cst = arith.constant dense<0.000000e+00> : vector<8x128xf32>
    %2 = tpu.matmul %0, %1, %cst {dimension_numbers = #tpu.dot_dimension_numbers<[1], [0], [0], [1], [0, 0, 1, 1], [], []>} : vector<8x3136xbf16>, vector<3136x128xbf16>, vector<8x128xf32> -> vector<8x128xf32>
    %c0_3 = arith.constant 0 : index
    %c0_4 = arith.constant 0 : index
    %3 = vector.load %arg3[%c0_3, %c0_4] : memref<1x128xf32, #tpu.memory_space<vmem>>, vector<1x128xf32>
    %4 = vector.broadcast %3 : vector<1x128xf32> to vector<8x128xf32>
    %5 = arith.addf %2, %4 : vector<8x128xf32>
    %cst_5 = arith.constant 0.000000e+00 : f32
    %6 = vector.broadcast %cst_5 : f32 to vector<8x128xf32>
    %7 = arith.maximumf %5, %6 : vector<8x128xf32>
    %8 = arith.truncf %7 : vector<8x128xf32> to vector<8x128xbf16>
    %c0_6 = arith.constant 0 : index
    %c0_7 = arith.constant 0 : index
    %9 = vector.load %arg4[%c0_6, %c0_7] : memref<128x2xbf16, #tpu.memory_space<vmem>>, vector<128x2xbf16>
    %cst_8 = arith.constant dense<0.000000e+00> : vector<8x2xf32>
    %10 = tpu.matmul %8, %9, %cst_8 {dimension_numbers = #tpu.dot_dimension_numbers<[1], [0], [0], [1], [0, 0, 1, 1], [], []>} : vector<8x128xbf16>, vector<128x2xbf16>, vector<8x2xf32> -> vector<8x2xf32>
    %c0_9 = arith.constant 0 : index
    %c0_10 = arith.constant 0 : index
    %11 = vector.load %arg5[%c0_9, %c0_10] : memref<1x2xf32, #tpu.memory_space<vmem>>, vector<1x2xf32>
    %12 = vector.broadcast %11 : vector<1x2xf32> to vector<8x2xf32>
    %13 = arith.addf %10, %12 : vector<8x2xf32>
    %c0_11 = arith.constant 0 : index
    %c0_12 = arith.constant 0 : index
    %14 = vector.load %arg6[%c0_11, %c0_12] : memref<8x2xf32, #tpu.memory_space<vmem>>, vector<8x2xf32>
    tpu.vector_store %arg6[%c0_11, %c0_12], %13 {strides = array<i32>} : memref<8x2xf32, #tpu.memory_space<vmem>>, vector<8x2xf32>,
    return
  }
  func.func @transform_0(%arg0: i32) -> (i32, i32) {
    %c0_i32 = arith.constant 0 : i32
    %c0_i32_0 = arith.constant 0 : i32
    return %arg0, %c0_i32 : i32, i32
  }
  func.func @transform_1(%arg0: i32) -> (i32, i32) {
    %c0_i32 = arith.constant 0 : i32
    %c0_i32_0 = arith.constant 0 : i32
    %c0_i32_1 = arith.constant 0 : i32
    return %c0_i32, %c0_i32_0 : i32, i32
  }
  func.func @transform_2(%arg0: i32) -> (i32, i32) {
    %c0_i32 = arith.constant 0 : i32
    %c0_i32_0 = arith.constant 0 : i32
    %c0_i32_1 = arith.constant 0 : i32
    return %c0_i32, %c0_i32_0 : i32, i32
  }
  func.func @transform_3(%arg0: i32) -> (i32, i32) {
    %c0_i32 = arith.constant 0 : i32
    %c0_i32_0 = arith.constant 0 : i32
    %c0_i32_1 = arith.constant 0 : i32
    return %c0_i32, %c0_i32_0 : i32, i32
  }
  func.func @transform_4(%arg0: i32) -> (i32, i32) {
    %c0_i32 = arith.constant 0 : i32
    %c0_i32_0 = arith.constant 0 : i32
    %c0_i32_1 = arith.constant 0 : i32
    return %c0_i32, %c0_i32_0 : i32, i32
  }
  func.func @transform_5(%arg0: i32) -> (i32, i32) {
    %c0_i32 = arith.constant 0 : i32
    %c0_i32_0 = arith.constant 0 : i32
    return %arg0, %c0_i32 : i32, i32
  }
}

</mosaic_0001>

<bundles_post_ra>
// kernel: net_forward.3
= control target key start
LH: loop header
LB: loop body
LE: loop exit
PB: predicated region body
PF: predicated region fallthrough
CT: control target
= control target key end

     0   :  { %s4367_s15 = smov 0   ;;  %s5687_s0 = inlined_call_operand.vmem [shape: bf16[2,896,128], index: 0, kind: input, shape index: {}]   ;;  %s5688_s1 = inlined_call_operand.vmem [shape: bf16[128,32], index: 1, kind: input, shape index: {}]   ;;  %s5689_s2 = inlined_call_operand.vmem [shape: f32[1,32], index: 2, kind: input, shape index: {}]   ;;  %s5690_s3 = inlined_call_operand.vmem [shape: bf16[224,896], index: 3, kind: input, shape index: {}]   ;;  %s5691_s4 = inlined_call_operand.vmem [shape: bf16[2,272,32], index: 4, kind: output, shape index: {}]  }
   0x1 LB: > { %s3343_s16 = sadd.s32 4294967295, %s4338_s15   ;;  %p3347_p0 = scmp.ge.s32.totalorder %s4338_s15, 1  ;;  %s4338_s15 = sphi %s4367_s15, %s14_s15  }
   0x2   : > { %p162_p1 = scmp.lt.s32.totalorder %s4338_s15, 3 }
   0x4   : > { %p163_p2 = pnand %p3347_p0, %p162_p1 }
   0x5   : > { %v4141_v0 = vld [vmem:[%s5688_s1] sm:$0xff] (!%p163_p2)   ;;  %p188_p3 = scmp.lt.s32.totalorder (!%p163_p2), %s3343_s16, 1  ;;  %v4142_v1 = vld [vmem:[%s5688_s1 + $0x8] sm:$0xff] (!%p163_p2)   ;;  %v4143_v2 = vld [vmem:[%s5688_s1 + $0x10] sm:$0xff] (!%p163_p2)   ;;  %vm199_vm0 = vcmask (!%p163_p2), 261120   ;;  %vm3141_vm1 = vcmask (!%p163_p2), 257024  }
   0x6   : > { %166 = sbr.rel (%p163_p2) target bundleno = 838 (0x346), region = 36  ;;  %3957 = vmatprep.subr.bf16.mxu0 (!%p163_p2), %v4141_v0  ;;  %v4144_v3 = vld [vmem:[%s5688_s1 + $0x18] sm:$0xff] (!%p163_p2)   ;;  %v4145_v5 = vld [vmem:[%s5688_s1 + $0x20] sm:$0xff] (!%p163_p2)   ;;  %v4146_v6 = vld [vmem:[%s5688_s1 + $0x28] sm:$0xff] (!%p163_p2)  }
   0x7   : > { %3958 = vmatpush3.bf16.msra.mxu0 (!%p163_p2), %v4141_v0  ;;  %v4147_v7 = vld [vmem:[%s5688_s1 + $0x30] sm:$0xff] (!%p163_p2)   ;;  %v4148_v8 = vld [vmem:[%s5688_s1 + $0x38] sm:$0xff] (!%p163_p2)   ;;  %v4207_v55 = vld [vmem:[%s5690_s3 + $0x4] ss:$28 sps:$4 sm:$0xff] (!%p163_p2)  }
   0x8   : > { %3959 = vmatprep.subr.bf16.mxu0 (!%p163_p2), %v4142_v1  ;;  %2593 = vmatprep.mubr.bf16.mxu1 (!%p163_p2), %v4207_v55  ;;  %v4468_v0 = vld [vmem:[%s5689_s2] ss:$0 sm:$0xff] (!%p163_p2) }
   0xb   : > { %3960 = vmatpush3.bf16.msra.mxu0 (!%p163_p2), %v4142_v1 }
   0xc   : > { %3961 = vmatprep.subr.bf16.mxu0 (!%p163_p2), %v4143_v2 }
   0xd   : > { %s5693_s16 = smov (!%p188_p3, %s3343_s16), 1 }
   0xe   : > { %s4129_s23 = smul.u32 448, %s5693_s16 }
   0xf   : > { %3962 = vmatpush3.bf16.msra.mxu0 %v4143_v2  ;;  %s4130_s29 = smul.u32 136, %s5693_s16 }
  0x10   : > { %s4390_s26 = scalar_lea.vmem %s5687_s0, %s4129_s23  ;;  %3963 = vmatprep.subr.bf16.mxu0 %v4144_v3 }
  0x11   : > { %v4149_v4 = vld [vmem:[%s4390_s26] sm:$0xff]   ;;  %v4150_v9 = vld [vmem:[%s4390_s26 + $0x8] sm:$0xff]   ;;  %v4151_v10 = vld [vmem:[%s4390_s26 + $0x10] sm:$0xff]   ;;  %s5494_s6 = scalar_lea.vmem %s5691_s4, %s4130_s29 }
  0x12   : > { %3973 = vmatprep.mubr.bf16.mxu0 %v4149_v4  ;;  %v4152_v11 = vld [vmem:[%s4390_s26 + $0x18] sm:$0xff]   ;;  %v4153_v12 = vld [vmem:[%s4390_s26 + $0x20] sm:$0xff]   ;;  %v4154_v13 = vld [vmem:[%s4390_s26 + $0x28] sm:$0xff]  }
  0x13   : > { %3964 = vmatpush3.bf16.msra.mxu0 %v4144_v3  ;;  %v4155_v14 = vld [vmem:[%s4390_s26 + $0x30] sm:$0xff]   ;;  %v4156_v15 = vld [vmem:[%s4390_s26 + $0x38] sm:$0xff]   ;;  %v4157_v16 = vld [vmem:[%s4390_s26 + $0x40] sm:$0xff]  }
  0x14   : > { %3965 = vmatprep.subr.bf16.mxu0 %v4145_v5  ;;  %v4158_v17 = vld [vmem:[%s4390_s26 + $0x48] sm:$0xff]   ;;  %v4159_v18 = vld [vmem:[%s4390_s26 + $0x50] sm:$0xff]   ;;  %v4160_v19 = vld [vmem:[%s4390_s26 + $0x58] sm:$0xff]  }
  0x15   : > { %v4161_v20 = vld [vmem:[%s4390_s26 + $0x60] sm:$0xff]   ;;  %v4162_v21 = vld [vmem:[%s4390_s26 + $0x68] sm:$0xff]   ;;  %v4163_v22 = vld [vmem:[%s4390_s26 + $0x70] sm:$0xff]  }
  0x16   : > { %v4164_v23 = vld [vmem:[%s4390_s26 + $0x78] sm:$0xff]   ;;  %v4165_v24 = vld [vmem:[%s4390_s26 + $0x80] sm:$0xff]   ;;  %v4166_v25 = vld [vmem:[%s4390_s26 + $0x88] sm:$0xff]  }
  0x17   : > { %3966 = vmatpush3.bf16.msra.mxu0 %v4145_v5  ;;  %v4167_v26 = vld [vmem:[%s4390_s26 + $0x90] sm:$0xff]   ;;  %v4168_v27 = vld [vmem:[%s4390_s26 + $0x98] sm:$0xff]   ;;  %v4169_v28 = vld [vmem:[%s4390_s26 + $0xa0] sm:$0xff]  }
  0x18   : > { %3967 = vmatprep.subr.bf16.mxu0 %v4146_v6  ;;  %v4170_v29 = vld [vmem:[%s4390_s26 + $0xa8] sm:$0xff]   ;;  %v4171_v30 = vld [vmem:[%s4390_s26 + $0xb0] sm:$0xff]   ;;  %v4172_v31 = vld [vmem:[%s4390_s26 + $0xb8] sm:$0xff]  }
  0x19   : > { %v4173_v32 = vld [vmem:[%s4390_s26 + $0xc0] sm:$0xff]   ;;  %v4174_v33 = vld [vmem:[%s4390_s26 + $0xc8] sm:$0xff]   ;;  %v4175_v34 = vld [vmem:[%s4390_s26 + $0xd0] sm:$0xff]  }
  0x1a   : > { %v4176_v35 = vld [vmem:[%s4390_s26 + $0xd8] sm:$0xff]   ;;  %v4177_v36 = vld [vmem:[%s4390_s26 + $0xe0] sm:$0xff]   ;;  %v4178_v37 = vld [vmem:[%s4390_s26 + $0xe8] sm:$0xff]  }
  0x1b   : > { %3968 = vmatpush3.bf16.msra.mxu0 %v4146_v6  ;;  %v4179_v38 = vld [vmem:[%s4390_s26 + $0xf0] sm:$0xff]   ;;  %v4180_v39 = vld [vmem:[%s4390_s26 + $0xf8] sm:$0xff]   ;;  %v4181_v40 = vld [vmem:[%s4390_s26 + $0x100] sm:$0xff]  }
  0x1c   : > { %3969 = vmatprep.subr.bf16.mxu0 %v4147_v7  ;;  %v4182_v41 = vld [vmem:[%s4390_s26 + $0x108] sm:$0xff]   ;;  %v4183_v42 = vld [vmem:[%s4390_s26 + $0x110] sm:$0xff]   ;;  %v4184_v43 = vld [vmem:[%s4390_s26 + $0x118] sm:$0xff]  }
  0x1d   : > { %v4185_v44 = vld [vmem:[%s4390_s26 + $0x120] sm:$0xff]   ;;  %v4186_v45 = vld [vmem:[%s4390_s26 + $0x128] sm:$0xff]   ;;  %v4187_v46 = vld [vmem:[%s4390_s26 + $0x130] sm:$0xff]  }
  0x1e   : > { %v4188_v47 = vld [vmem:[%s4390_s26 + $0x138] sm:$0xff]   ;;  %v4189_v48 = vld [vmem:[%s4390_s26 + $0x140] sm:$0xff]   ;;  %v4190_v49 = vld [vmem:[%s4390_s26 + $0x148] sm:$0xff]  }
  0x1f   : > { %3970 = vmatpush3.bf16.msra.mxu0 %v4147_v7  ;;  %v4191_v50 = vld [vmem:[%s4390_s26 + $0x150] sm:$0xff]   ;;  %v4192_v51 = vld [vmem:[%s4390_s26 + $0x158] sm:$0xff]   ;;  %v4193_v52 = vld [vmem:[%s4390_s26 + $0x160] sm:$0xff]  }
  0x20   : > { %3971 = vmatprep.subr.bf16.mxu0 %v4148_v8  ;;  %v4194_v53 = vld [vmem:[%s4390_s26 + $0x168] sm:$0xff]   ;;  %v4195_v54 = vld [vmem:[%s4390_s26 + $0x170] sm:$0xff]   ;;  %v4196_v56 = vld [vmem:[%s4390_s26 + $0x178] sm:$0xff]  }
  0x21   : > { %v4197_v57 = vld [vmem:[%s4390_s26 + $0x180] sm:$0xff]   ;;  %v4198_v58 = vld [vmem:[%s4390_s26 + $0x188] sm:$0xff]   ;;  %v4199_v59 = vld [vmem:[%s4390_s26 + $0x190] sm:$0xff]  }
  0x22   : > { %v4200_v60 = vld [vmem:[%s4390_s26 + $0x198] sm:$0xff]   ;;  %v4201_v61 = vld [vmem:[%s4390_s26 + $0x1a0] sm:$0xff]   ;;  %v4202_v62 = vld [vmem:[%s4390_s26 + $0x1a8] sm:$0xff]  }
  0x23   : > { %3972 = vmatpush3.bf16.msra.mxu0 %v4148_v8  ;;  %v4203_v63 = vld [vmem:[%s4390_s26 + $0x1b0] sm:$0xff]   ;;  %v4204_v4 = vld [vmem:[%s4390_s26 + $0x1b8] sm:$0xff]  }
  0x26   : > { %3974 = vmatmul.mubr.bf16.vlgmr.msra.gmra.mrb[0].mxu0 %v4150_v9 }
  0x27   : > { %3977 = vmatprep.mubr.bf16.mxu0 %v4151_v10 }
  0x2e   : > { %3978 = vmatmul.mubr.bf16.gmra.mrb[4].mxu0 %v4152_v11 }
  0x2f   : > { %3981 = vmatprep.mubr.bf16.mxu0 %v4153_v12 }
  0x36   : > { %3982 = vmatmul.mubr.bf16.gmra.mrb[8].mxu0 %v4154_v13 }
  0x37   : > { %3985 = vmatprep.mubr.bf16.mxu0 %v4155_v14 }
  0x3e   : > { %3986 = vmatmul.mubr.bf16.gmra.mrb[12].mxu0 %v4156_v15 }
  0x3f   : > { %3989 = vmatprep.mubr.bf16.mxu0 %v4157_v16 }
  0x46   : > { %3990 = vmatmul.mubr.bf16.gmra.mrb[16].mxu0 %v4158_v17 }
  0x47   : > { %3993 = vmatprep.mubr.bf16.mxu0 %v4159_v18 }
  0x4e   : > { %3994 = vmatmul.mubr.bf16.gmra.mrb[20].mxu0 %v4160_v19 }
  0x4f   : > { %3997 = vmatprep.mubr.bf16.mxu0 %v4161_v20 }
  0x56   : > { %3998 = vmatmul.mubr.bf16.gmra.mrb[24].mxu0 %v4162_v21 }
  0x57   : > { %4001 = vmatprep.mubr.bf16.mxu0 %v4163_v22 }
  0x5e   : > { %4002 = vmatmul.mubr.bf16.gmra.mrb[28].mxu0 %v4164_v23 }
  0x5f   : > { %4005 = vmatprep.mubr.bf16.mxu0 %v4165_v24 }
  0x66   : > { %4006 = vmatmul.mubr.bf16.gmra.mrb[32].mxu0 %v4166_v25 }
  0x67   : > { %4009 = vmatprep.mubr.bf16.mxu0 %v4167_v26 }
  0x6e   : > { %4010 = vmatmul.mubr.bf16.gmra.mrb[36].mxu0 %v4168_v27 }
  0x6f   : > { %4013 = vmatprep.mubr.bf16.mxu0 %v4169_v28 }
  0x76   : > { %4014 = vmatmul.mubr.bf16.gmra.mrb[40].mxu0 %v4170_v29 }
  0x77   : > { %4017 = vmatprep.mubr.bf16.mxu0 %v4171_v30 }
  0x7e   : > { %4018 = vmatmul.mubr.bf16.gmra.mrb[44].mxu0 %v4172_v31 }
  0x7f   : > { %4021 = vmatprep.mubr.bf16.mxu0 %v4173_v32 }
  0x86   : > { %4022 = vmatmul.mubr.bf16.gmra.mrb[48].mxu0 %v4174_v33 }
  0x87   : > { %4025 = vmatprep.mubr.bf16.mxu0 %v4175_v34 }
  0x8e   : > { %4026 = vmatmul.mubr.bf16.gmra.mrb[52].mxu0 %v4176_v35 }
  0x8f   : > { %4029 = vmatprep.mubr.bf16.mxu0 %v4177_v36 }
  0x96   : > { %4030 = vmatmul.mubr.bf16.gmra.mrb[56].mxu0 %v4178_v37 }
  0x97   : > { %4033 = vmatprep.mubr.bf16.mxu0 %v4179_v38 }
  0x9e   : > { %4034 = vmatmul.mubr.bf16.gmra.mrb[60].mxu0 %v4180_v39 }
  0x9f   : > { %4037 = vmatprep.mubr.bf16.mxu0 %v4181_v40 }
  0xa6   : > { %4038 = vmatmul.mubr.bf16.gmra.mrb[64].mxu0 %v4182_v41 }
  0xa7   : > { %4041 = vmatprep.mubr.bf16.mxu0 %v4183_v42 }
  0xae   : > { %4042 = vmatmul.mubr.bf16.gmra.mrb[68].mxu0 %v4184_v43 }
  0xaf   : > { %4045 = vmatprep.mubr.bf16.mxu0 %v4185_v44 }
  0xb6   : > { %4046 = vmatmul.mubr.bf16.gmra.mrb[72].mxu0 %v4186_v45 }
  0xb7   : > { %4049 = vmatprep.mubr.bf16.mxu0 %v4187_v46 }
  0xbe   : > { %4050 = vmatmul.mubr.bf16.gmra.mrb[76].mxu0 %v4188_v47 }
  0xbf   : > { %4053 = vmatprep.mubr.bf16.mxu0 %v4189_v48 }
  0xc6   : > { %4054 = vmatmul.mubr.bf16.gmra.mrb[80].mxu0 %v4190_v49 }
  0xc7   : > { %4057 = vmatprep.mubr.bf16.mxu0 %v4191_v50 }
  0xce   : > { %4058 = vmatmul.mubr.bf16.gmra.mrb[84].mxu0 %v4192_v51 }
  0xcf   : > { %4061 = vmatprep.mubr.bf16.mxu0 %v4193_v52 }
  0xd6   : > { %4062 = vmatmul.mubr.bf16.gmra.mrb[88].mxu0 %v4194_v53 }
  0xd7   : > { %4065 = vmatprep.mubr.bf16.mxu0 %v4195_v54 }
  0xde   : > { %4066 = vmatmul.mubr.bf16.gmra.mrb[92].mxu0 %v4196_v56 }
  0xdf   : > { %4069 = vmatprep.mubr.bf16.mxu0 %v4197_v57 }
  0xe6   : > { %4070 = vmatmul.mubr.bf16.gmra.mrb[96].mxu0 %v4198_v58 }
  0xe7   : > { %4073 = vmatprep.mubr.bf16.mxu0 %v4199_v59 }
  0xee   : > { %4074 = vmatmul.mubr.bf16.gmra.mrb[100].mxu0 %v4200_v60 }
  0xef   : > { %4077 = vmatprep.mubr.bf16.mxu0 %v4201_v61 }
  0xf6   : > { %4078 = vmatmul.mubr.bf16.gmra.mrb[104].mxu0 %v4202_v62 }
  0xf7   : > { %4081 = vmatprep.mubr.bf16.mxu0 %v4203_v63 }
  0xf9   : > { %v3975_v1 = vpop.f32.mrb[0].mxu0 }
  0xfa   : > { %v767_v2 = vadd.f32 %v3975_v1, %v4468_v0  ;;  %v758_v3 = vpop.f32.mrb[1].mxu0 }
  0xfb   : > { %v759_v5 = vadd.f32 %v4468_v0, %v758_v3  ;;  %v3976_v6 = vpop.f32.mrb[2].mxu0 }
  0xfc   : > { %v1207_v7 = vmax.f32 %v767_v2, 0.0  ;;  %v770_v8 = vadd.f32 %v3976_v6, %v4468_v0  ;;  %v761_v9 = vpop.f32.mrb[3].mxu0 }
  0xfd   : > { %v1205_v10 = vmax.f32 %v759_v5, 0.0  ;;  %v762_v11 = vadd.f32 %v4468_v0, %v761_v9 }
  0xfe   : > { %1319 = vst.msk [vmem:[#allocation2 + $0x10] sm:$0xff] %vm199_vm0, %v1207_v7  ;;  %v1208_v12 = vmax.f32 %v770_v8, 0.0  ;;  %4082 = vmatmul.mubr.bf16.gmra.mrb[108].mxu0 %v4204_v4 }
  0xff   : > { %1317 = vst.msk [vmem:[#allocation2] sm:$0xff] %vm199_vm0, %v1205_v10  ;;  %v1206_v13 = vmax.f32 %v762_v11, 0.0 }
 0x100   : > { %1320 = vst.msk [vmem:[#allocation2 + $0x18] sm:$0xff] %vm199_vm0, %v1208_v12 }
 0x101   : > { %1318 = vst.msk [vmem:[#allocation2 + $0x8] sm:$0xff] %vm199_vm0, %v1206_v13  ;;  %v3979_v14 = vpop.f32.mrb[4].mxu0 }
 0x102   : > { %v783_v15 = vadd.f32 %v3979_v14, %v4468_v0  ;;  %v774_v16 = vpop.f32.mrb[5].mxu0 }
 0x103   : > { %v775_v17 = vadd.f32 %v4468_v0, %v774_v16  ;;  %v3980_v18 = vpop.f32.mrb[6].mxu0 }
 0x104   : > { %v1211_v19 = vmax.f32 %v783_v15, 0.0  ;;  %v786_v20 = vadd.f32 %v3980_v18, %v4468_v0  ;;  %v777_v21 = vpop.f32.mrb[7].mxu0 }
 0x105   : > { %v1209_v22 = vmax.f32 %v775_v17, 0.0  ;;  %v778_v23 = vadd.f32 %v4468_v0, %v777_v21 }
 0x106   : > { %1323 = vst.msk [vmem:[#allocation2 + $0x30] sm:$0xff] %vm199_vm0, %v1211_v19  ;;  %v1212_v24 = vmax.f32 %v786_v20, 0.0 }
 0x107   : > { %1321 = vst.msk [vmem:[#allocation2 + $0x20] sm:$0xff] %vm199_vm0, %v1209_v22  ;;  %v1210_v25 = vmax.f32 %v778_v23, 0.0 }
 0x108   : > { %1324 = vst.msk [vmem:[#allocation2 + $0x38] sm:$0xff] %vm199_vm0, %v1212_v24  ;;  %v1430_v22 = vld [vmem:[#allocation2 + $0x8] sm:$0xff] }
 0x109   : > { %1322 = vst.msk [vmem:[#allocation2 + $0x28] sm:$0xff] %vm199_vm0, %v1210_v25  ;;  %v3983_v26 = vpop.f32.mrb[8].mxu0  ;;  %v1429_v25 = vld [vmem:[#allocation2] sm:$0xff] }
 0x10a   : > { %v799_v27 = vadd.f32 %v3983_v26, %v4468_v0  ;;  %v790_v28 = vpop.f32.mrb[9].mxu0 }
 0x10b   : > { %v791_v29 = vadd.f32 %v4468_v0, %v790_v28  ;;  %v3984_v30 = vpop.f32.mrb[10].mxu0  ;;  %v1542_v28 = vld [vmem:[#allocation2 + $0x9] sm:$0xff] }
 0x10c   : > { %v1215_v31 = vmax.f32 %v799_v27, 0.0  ;;  %v802_v32 = vadd.f32 %v3984_v30, %v4468_v0  ;;  %v793_v33 = vpop.f32.mrb[11].mxu0  ;;  %v1541_v27 = vld [vmem:[#allocation2 + $0x1] sm:$0xff] }
 0x10d   : > { %v1213_v34 = vmax.f32 %v791_v29, 0.0  ;;  %v794_v35 = vadd.f32 %v4468_v0, %v793_v33 }
 0x10e   : > { %1327 = vst.msk [vmem:[#allocation2 + $0x50] sm:$0xff] %vm199_vm0, %v1215_v31  ;;  %v1216_v36 = vmax.f32 %v802_v32, 0.0  ;;  %v1433_v26 = vld [vmem:[#allocation2 + $0x20] sm:$0xff] }
 0x10f   : > { %1325 = vst.msk [vmem:[#allocation2 + $0x40] sm:$0xff] %vm199_vm0, %v1213_v34  ;;  %v1214_v37 = vmax.f32 %v794_v35, 0.0 }
 0x110   : > { %1328 = vst.msk [vmem:[#allocation2 + $0x58] sm:$0xff] %vm199_vm0, %v1216_v36  ;;  %v1434_v16 = vld [vmem:[#allocation2 + $0x28] sm:$0xff] }
 0x111   : > { %1326 = vst.msk [vmem:[#allocation2 + $0x48] sm:$0xff] %vm199_vm0, %v1214_v37  ;;  %v3987_v38 = vpop.f32.mrb[12].mxu0  ;;  %v1545_v17 = vld [vmem:[#allocation2 + $0x21] sm:$0xff]  ;;  %v1546_v18 = vld [vmem:[#allocation2 + $0x29] sm:$0xff] }
 0x112   : > { %v815_v39 = vadd.f32 %v3987_v38, %v4468_v0  ;;  %v806_v40 = vpop.f32.mrb[13].mxu0  ;;  %v4524_v33 = vmax.f32 %v1433_v26, %v1545_v17  ;;  %v4526_v34 = vmax.f32 %v1434_v16, %v1546_v18 }
 0x113   : > { %v807_v41 = vadd.f32 %v4468_v0, %v806_v40  ;;  %v3988_v42 = vpop.f32.mrb[14].mxu0 }
 0x114   : > { %v1219_v43 = vmax.f32 %v815_v39, 0.0  ;;  %v818_v44 = vadd.f32 %v3988_v42, %v4468_v0  ;;  %v809_v45 = vpop.f32.mrb[15].mxu0  ;;  %v1653_v42 = vmax.f32 %v1429_v25, %v1541_v27 }
 0x115   : > { %v1217_v46 = vmax.f32 %v807_v41, 0.0  ;;  %v810_v47 = vadd.f32 %v4468_v0, %v809_v45 }
 0x116   : > { %1331 = vst.msk [vmem:[#allocation2 + $0x70] sm:$0xff] %vm199_vm0, %v1219_v43  ;;  %v1220_v48 = vmax.f32 %v818_v44, 0.0  ;;  %v1548_v38 = vld [vmem:[#allocation2 + $0x39] sm:$0xff]  ;;  %v1654_v43 = vmax.f32 %v1430_v22, %v1542_v28 }
 0x117   : > { %1329 = vst.msk [vmem:[#allocation2 + $0x60] sm:$0xff] %vm199_vm0, %v1217_v46  ;;  %v1218_v49 = vmax.f32 %v810_v47, 0.0  ;;  %v1437_v17 = vld [vmem:[#allocation2 + $0x40] sm:$0xff] }
 0x118   : > { %1332 = vst.msk [vmem:[#allocation2 + $0x78] sm:$0xff] %vm199_vm0, %v1220_v48  ;;  %v1549_v18 = vld [vmem:[#allocation2 + $0x41] sm:$0xff] }
 0x119   : > { %1330 = vst.msk [vmem:[#allocation2 + $0x68] sm:$0xff] %vm199_vm0, %v1218_v49  ;;  %v3991_v50 = vpop.f32.mrb[16].mxu0  ;;  %v1436_v49 = vld [vmem:[#allocation2 + $0x38] sm:$0xff] }
 0x11a   : > { %v831_v51 = vadd.f32 %v3991_v50, %v4468_v0  ;;  %v822_v52 = vpop.f32.mrb[17].mxu0  ;;  %v1544_v50 = vld [vmem:[#allocation2 + $0x19] sm:$0xff] }
 0x11b   : > { %v823_v53 = vadd.f32 %v4468_v0, %v822_v52  ;;  %v3992_v54 = vpop.f32.mrb[18].mxu0 }
 0x11c   : > { %v1223_v55 = vmax.f32 %v831_v51, 0.0  ;;  %v834_v56 = vadd.f32 %v3992_v54, %v4468_v0  ;;  %v825_v57 = vpop.f32.mrb[19].mxu0  ;;  %v1547_v51 = vld [vmem:[#allocation2 + $0x31] sm:$0xff]  ;;  %v1777_v54 = vmax.f32 %v1653_v42, %v4524_v33 }
 0x11d   : > { %v1221_v58 = vmax.f32 %v823_v53, 0.0  ;;  %v826_v59 = vadd.f32 %v4468_v0, %v825_v57  ;;  %v1432_v57 = vld [vmem:[#allocation2 + $0x18] sm:$0xff] }
 0x11e   : > { %1335 = vst.msk [vmem:[#allocation2 + $0x90] sm:$0xff] %vm199_vm0, %v1223_v55  ;;  %v1224_v60 = vmax.f32 %v834_v56, 0.0  ;;  %v1778_v55 = vmax.f32 %v1654_v43, %v4526_v34 }
 0x11f   : > { %1333 = vst.msk [vmem:[#allocation2 + $0x80] sm:$0xff] %vm199_vm0, %v1221_v58  ;;  %v1222_v61 = vmax.f32 %v826_v59, 0.0  ;;  %v4542_v58 = vmax.f32 %v1436_v49, %v1548_v38 }
 0x120   : > { %1336 = vst.msk [vmem:[#allocation2 + $0x98] sm:$0xff] %vm199_vm0, %v1224_v60 }
 0x121   : > { %1334 = vst.msk [vmem:[#allocation2 + $0x88] sm:$0xff] %vm199_vm0, %v1222_v61  ;;  %v3995_v62 = vpop.f32.mrb[20].mxu0 }
 0x122   : > { %v847_v63 = vadd.f32 %v3995_v62, %v4468_v0  ;;  %v838_v1 = vpop.f32.mrb[21].mxu0 }
 0x123   : > { %v839_v2 = vadd.f32 %v4468_v0, %v838_v1  ;;  %v3996_v3 = vpop.f32.mrb[22].mxu0  ;;  %v1435_v1 = vld [vmem:[#allocation2 + $0x30] sm:$0xff] }
 0x124   : > { %v1227_v4 = vmax.f32 %v847_v63, 0.0  ;;  %v850_v5 = vadd.f32 %v3996_v3, %v4468_v0  ;;  %v841_v6 = vpop.f32.mrb[23].mxu0  ;;  %v1431_v63 = vld [vmem:[#allocation2 + $0x10] sm:$0xff]  ;;  %v1438_v3 = vld [vmem:[#allocation2 + $0x48] sm:$0xff] }
 0x125   : > { %v1225_v7 = vmax.f32 %v839_v2, 0.0  ;;  %v842_v8 = vadd.f32 %v4468_v0, %v841_v6  ;;  %v1543_v2 = vld [vmem:[#allocation2 + $0x11] sm:$0xff] }
 0x126   : > { %1339 = vst.msk [vmem:[#allocation2 + $0xb0] sm:$0xff] %vm199_vm0, %v1227_v4  ;;  %v1228_v9 = vmax.f32 %v850_v5, 0.0  ;;  %v1445_v36 = vld [vmem:[#allocation2 + $0x80] sm:$0xff]  ;;  %v1655_v25 = vmax.f32 %v1431_v63, %v1543_v2 }
 0x127   : > { %1337 = vst.msk [vmem:[#allocation2 + $0xa0] sm:$0xff] %vm199_vm0, %v1225_v7  ;;  %v1226_v10 = vmax.f32 %v842_v8, 0.0  ;;  %v1559_v8 = vld [vmem:[#allocation2 + $0x91] sm:$0xff] }
 0x128   : > { %1340 = vst.msk [vmem:[#allocation2 + $0xb8] sm:$0xff] %vm199_vm0, %v1228_v9  ;;  %v1446_v30 = vld [vmem:[#allocation2 + $0x88] sm:$0xff]  ;;  %v1448_v22 = vld [vmem:[#allocation2 + $0x98] sm:$0xff] }
 0x129   : > { %1338 = vst.msk [vmem:[#allocation2 + $0xa8] sm:$0xff] %vm199_vm0, %v1226_v10  ;;  %v3999_v11 = vpop.f32.mrb[24].mxu0  ;;  %v1557_v31 = vld [vmem:[#allocation2 + $0x81] sm:$0xff]  ;;  %v1558_v32 = vld [vmem:[#allocation2 + $0x89] sm:$0xff]  ;;  %v1656_v10 = vmax.f32 %v1432_v57, %v1544_v50 }
 0x12a   : > { %v863_v12 = vadd.f32 %v3999_v11, %v4468_v0  ;;  %v854_v13 = vpop.f32.mrb[25].mxu0  ;;  %v4531_v45 = vmax.f32 %v1445_v36, %v1557_v31  ;;  %v4533_v46 = vmax.f32 %v1446_v30, %v1558_v32  ;;  %v4550_v11 = vmax.f32 %v1435_v1, %v1547_v51  ;;  %v1551_v32 = vld [vmem:[#allocation2 + $0x51] sm:$0xff] }
 0x12b   : > { %v855_v14 = vadd.f32 %v4468_v0, %v854_v13  ;;  %v4000_v15 = vpop.f32.mrb[26].mxu0  ;;  %v1780_v26 = vmax.f32 %v1656_v10, %v4542_v58  ;;  %v1439_v51 = vld [vmem:[#allocation2 + $0x50] sm:$0xff] }
 0x12c   : > { %v1231_v19 = vmax.f32 %v863_v12, 0.0  ;;  %v866_v20 = vadd.f32 %v4000_v15, %v4468_v0  ;;  %v857_v21 = vpop.f32.mrb[27].mxu0  ;;  %v1447_v15 = vld [vmem:[#allocation2 + $0x90] sm:$0xff]  ;;  %v1779_v36 = vmax.f32 %v1655_v25, %v4550_v11  ;;  %v4580_v57 = vmax.f32 %v1439_v51, %v1551_v32 }
 0x12d   : > { %v1229_v23 = vmax.f32 %v855_v14, 0.0  ;;  %v858_v24 = vadd.f32 %v4468_v0, %v857_v21  ;;  %v1451_v7 = vld [vmem:[#allocation2 + $0xb0] sm:$0xff]  ;;  %v1889_v21 = vpack.c.bf16 %v1778_v55, %v1777_v54  ;;  %v4558_v28 = vmax.f32 %v1447_v15, %v1559_v8 }
 0x12e   : > { %1343 = vst.msk [vmem:[#allocation2 + $0xd0] sm:$0xff] %vm199_vm0, %v1231_v19  ;;  %v1232_v29 = vmax.f32 %v866_v20, 0.0  ;;  %v1449_v37 = vld [vmem:[#allocation2 + $0xa0] sm:$0xff]  ;;  %v1550_v19 = vld [vmem:[#allocation2 + $0x49] sm:$0xff]  ;;  %v1890_v55 = vpack.c.bf16 %v1780_v26, %v1779_v36 }
 0x12f   : > { %1341 = vst.msk [vmem:[#allocation2 + $0xc0] sm:$0xff] %vm199_vm0, %v1229_v23  ;;  %v1230_v35 = vmax.f32 %v858_v24, 0.0  ;;  %v1563_v56 = vld [vmem:[#allocation2 + $0xb1] sm:$0xff]  ;;  %v1560_v9 = vld [vmem:[#allocation2 + $0x99] sm:$0xff] }
 0x130   : > { %1344 = vst.msk [vmem:[#allocation2 + $0xd8] sm:$0xff] %vm199_vm0, %v1232_v29  ;;  %v1450_v39 = vld [vmem:[#allocation2 + $0xa8] sm:$0xff]  ;;  %v4553_v16 = vmax.f32 %v1451_v7, %v1563_v56  ;;  %v1452_v23 = vld [vmem:[#allocation2 + $0xb8] sm:$0xff]  ;;  %v4560_v29 = vmax.f32 %v1448_v22, %v1560_v9 }
 0x131   : > { %v1561_v40 = vld [vmem:[#allocation2 + $0xa1] sm:$0xff]  ;;  %v1562_v41 = vld [vmem:[#allocation2 + $0xa9] sm:$0xff]  ;;  %1342 = vst.msk [vmem:[#allocation2 + $0xc8] sm:$0xff] %vm199_vm0, %v1230_v35  ;;  %v4003_v44 = vpop.f32.mrb[28].mxu0  ;;  %v1552_v35 = vld [vmem:[#allocation2 + $0x59] sm:$0xff] }
 0x132   : > { %v4535_v47 = vmax.f32 %v1449_v37, %v1561_v40  ;;  %v4537_v48 = vmax.f32 %v1450_v39, %v1562_v41  ;;  %v879_v52 = vadd.f32 %v4003_v44, %v4468_v0  ;;  %v870_v53 = vpop.f32.mrb[29].mxu0  ;;  %v4566_v40 = vmax.f32 %v1437_v17, %v1549_v18  ;;  %v1441_v17 = vld [vmem:[#allocation2 + $0x60] sm:$0xff] }
 0x133   : > { %v871_v59 = vadd.f32 %v4468_v0, %v870_v53  ;;  %v4004_v60 = vpop.f32.mrb[30].mxu0  ;;  %v4568_v41 = vmax.f32 %v1438_v3, %v1550_v19  ;;  %v1795_v43 = vmax.f32 %v4558_v28, %v4553_v16  ;;  %v1556_v22 = vld [vmem:[#allocation2 + $0x79] sm:$0xff] }
 0x134   : > { %v1793_v61 = vmax.f32 %v4531_v45, %v4535_v47  ;;  %v1794_v62 = vmax.f32 %v4533_v46, %v4537_v48  ;;  %v1235_v4 = vmax.f32 %v879_v52, 0.0  ;;  %v882_v5 = vadd.f32 %v4004_v60, %v4468_v0  ;;  %v873_v6 = vpop.f32.mrb[31].mxu0  ;;  %v1440_v52 = vld [vmem:[#allocation2 + $0x58] sm:$0xff] }
 0x135   : > { %v1233_v12 = vmax.f32 %v871_v59, 0.0  ;;  %v874_v13 = vadd.f32 %v4468_v0, %v873_v6  ;;  %v4582_v59 = vmax.f32 %v1440_v52, %v1552_v35  ;;  %v1782_v6 = vmax.f32 %v4526_v34, %v4568_v41  ;;  %v1455_v7 = vld [vmem:[#allocation2 + $0xd0] sm:$0xff] }
 0x136   : > { %v1897_v14 = vpack.c.bf16 %v1794_v62, %v1793_v61  ;;  %1347 = vst.msk [vmem:[#allocation2 + $0xf0] sm:$0xff] %vm199_vm0, %v1235_v4  ;;  %v1236_v20 = vmax.f32 %v882_v5, 0.0  ;;  %v1564_v24 = vld [vmem:[#allocation2 + $0xb9] sm:$0xff]  ;;  %v1781_v5 = vmax.f32 %v4524_v33, %v4566_v40 }
 0x137   : > { %1345 = vst.msk [vmem:[#allocation2 + $0xe0] sm:$0xff] %vm199_vm0, %v1233_v12  ;;  %v1234_v27 = vmax.f32 %v874_v13, 0.0  ;;  %v4562_v30 = vmax.f32 %v1452_v23, %v1564_v24  ;;  %v1453_v31 = vld [vmem:[#allocation2 + $0xc0] sm:$0xff]  ;;  %v1567_v56 = vld [vmem:[#allocation2 + $0xd1] sm:$0xff]  ;;  %v1442_v12 = vld [vmem:[#allocation2 + $0x68] sm:$0xff]  ;;  %v1784_v34 = vmax.f32 %v4542_v58, %v4582_v59  ;;  %v1783_v24 = vmax.f32 %v4550_v11, %v4580_v57 }
 0x138   : > { %3635 = vmatprep.subr.bf16.mxu1 %v1897_v14  ;;  %1348 = vst.msk [vmem:[#allocation2 + $0xf8] sm:$0xff] %vm199_vm0, %v1236_v20  ;;  %v1454_v37 = vld [vmem:[#allocation2 + $0xc8] sm:$0xff]  ;;  %v1456_v15 = vld [vmem:[#allocation2 + $0xd8] sm:$0xff]  ;;  %v1891_v23 = vpack.c.bf16 %v1782_v6, %v1781_v5  ;;  %v1443_v11 = vld [vmem:[#allocation2 + $0x70] sm:$0xff] }
 0x139   : > { %3636 = vmatpush3.bf16.msra.mxu1 %v1889_v21  ;;  %v1565_v38 = vld [vmem:[#allocation2 + $0xc1] sm:$0xff]  ;;  %v1566_v39 = vld [vmem:[#allocation2 + $0xc9] sm:$0xff]  ;;  %1346 = vst.msk [vmem:[#allocation2 + $0xe8] sm:$0xff] %vm199_vm0, %v1234_v27  ;;  %v4007_v42 = vpop.f32.mrb[32].mxu0  ;;  %v1796_v44 = vmax.f32 %v4560_v29, %v4562_v30  ;;  %v1555_v21 = vld [vmem:[#allocation2 + $0x71] sm:$0xff] }
 0x13a   : > { %v4575_v49 = vmax.f32 %v1453_v31, %v1565_v38  ;;  %v4577_v50 = vmax.f32 %v1454_v37, %v1566_v39  ;;  %v895_v53 = vadd.f32 %v4007_v42, %v4468_v0  ;;  %v886_v54 = vpop.f32.mrb[33].mxu0  ;;  %v1554_v13 = vld [vmem:[#allocation2 + $0x69] sm:$0xff]  ;;  %v1444_v39 = vld [vmem:[#allocation2 + $0x78] sm:$0xff]  ;;  %v4620_v52 = vmax.f32 %v1443_v11, %v1555_v21 }
 0x13b   : > { %v887_v60 = vadd.f32 %v4468_v0, %v886_v54  ;;  %v4008_v61 = vpop.f32.mrb[34].mxu0  ;;  %v1898_v62 = vpack.c.bf16 %v1796_v44, %v1795_v43  ;;  %v4608_v31 = vmax.f32 %v1442_v12, %v1554_v13  ;;  %v1892_v44 = vpack.c.bf16 %v1784_v34, %v1783_v24 }
 0x13c   : > { %v1797_v63 = vmax.f32 %v4535_v47, %v4575_v49  ;;  %v1798_v1 = vmax.f32 %v4537_v48, %v4577_v50  ;;  %v1239_v2 = vmax.f32 %v895_v53, 0.0  ;;  %v898_v3 = vadd.f32 %v4008_v61, %v4468_v0  ;;  %v889_v4 = vpop.f32.mrb[35].mxu0  ;;  %v1553_v48 = vld [vmem:[#allocation2 + $0x61] sm:$0xff] }
 0x13d   : > { %v1237_v8 = vmax.f32 %v887_v60, 0.0  ;;  %v890_v9 = vadd.f32 %v4468_v0, %v889_v4  ;;  %3637 = vmatprep.subr.bf16.mxu1 %v1898_v62  ;;  %v4595_v47 = vmax.f32 %v1455_v7, %v1567_v56  ;;  %v4606_v58 = vmax.f32 %v1441_v17, %v1553_v48 }
 0x13e   : > { %v1899_v10 = vpack.c.bf16 %v1798_v1, %v1797_v63  ;;  %1351 = vst.msk [vmem:[#allocation2 + $0x110] sm:$0xff] %vm199_vm0, %v1239_v2  ;;  %v1240_v14 = vmax.f32 %v898_v3, 0.0  ;;  %3638 = vmatpush3.bf16.msra.mxu1 %v1890_v55  ;;  %v1568_v33 = vld [vmem:[#allocation2 + $0xd9] sm:$0xff]  ;;  %v4622_v53 = vmax.f32 %v1444_v39, %v1556_v22  ;;  %v1786_v1 = vmax.f32 %v4568_v41, %v4608_v31  ;;  %v1459_v2 = vld [vmem:[#allocation2 + $0xf0] sm:$0xff] }
 0x13f   : > { %1349 = vst.msk [vmem:[#allocation2 + $0x100] sm:$0xff] %vm199_vm0, %v1237_v8  ;;  %v1238_v18 = vmax.f32 %v890_v9, 0.0  ;;  %v4601_v19 = vmax.f32 %v1456_v15, %v1568_v33  ;;  %v1457_v20 = vld [vmem:[#allocation2 + $0xe0] sm:$0xff]  ;;  %v1799_v35 = vmax.f32 %v4553_v16, %v4595_v47  ;;  %v1571_v51 = vld [vmem:[#allocation2 + $0xf1] sm:$0xff]  ;;  %v1785_v63 = vmax.f32 %v4566_v40, %v4606_v58 }
 0x140   : > { %3639 = vmatprep.subr.bf16.mxu1 %v1899_v10  ;;  %1352 = vst.msk [vmem:[#allocation2 + $0x118] sm:$0xff] %vm199_vm0, %v1240_v14  ;;  %v1458_v25 = vld [vmem:[#allocation2 + $0xe8] sm:$0xff]  ;;  %v1460_v6 = vld [vmem:[#allocation2 + $0xf8] sm:$0xff]  ;;  %v1788_v40 = vmax.f32 %v4582_v59, %v4622_v53  ;;  %v1787_v12 = vmax.f32 %v4580_v57, %v4620_v52 }
 0x141   : > { %v1569_v26 = vld [vmem:[#allocation2 + $0xe1] sm:$0xff]  ;;  %v1570_v27 = vld [vmem:[#allocation2 + $0xe9] sm:$0xff]  ;;  %1350 = vst.msk [vmem:[#allocation2 + $0x108] sm:$0xff] %vm199_vm0, %v1238_v18  ;;  %v4011_v32 = vpop.f32.mrb[36].mxu0  ;;  %v1800_v36 = vmax.f32 %v4562_v30, %v4601_v19  ;;  %v1893_v10 = vpack.c.bf16 %v1786_v1, %v1785_v63 }
 0x142   : > { %v4615_v37 = vmax.f32 %v1457_v20, %v1569_v26  ;;  %v4617_v38 = vmax.f32 %v1458_v25, %v1570_v27  ;;  %v911_v42 = vadd.f32 %v4011_v32, %v4468_v0  ;;  %v902_v43 = vpop.f32.mrb[37].mxu0  ;;  %3640 = vmatpush3.bf16.msra.mxu1 %v1891_v23  ;;  %v1894_v57 = vpack.c.bf16 %v1788_v40, %v1787_v12  ;;  %v1957_v40 = vld [vmem:[%s5690_s3 + $0x54] sm:$0xff] }
 0x143   : > { %v903_v16 = vadd.f32 %v4468_v0, %v902_v43  ;;  %v4012_v54 = vpop.f32.mrb[38].mxu0  ;;  %v1900_v30 = vpack.c.bf16 %v1800_v36, %v1799_v35  ;;  %v1789_v32 = vmax.f32 %v4606_v58, %v4531_v45  ;;  %v1790_v35 = vmax.f32 %v4608_v31, %v4533_v46 }
 0x144   : > { %v1801_v55 = vmax.f32 %v4575_v49, %v4615_v37  ;;  %v1802_v56 = vmax.f32 %v4577_v50, %v4617_v38  ;;  %v1243_v60 = vmax.f32 %v911_v42, 0.0  ;;  %v914_v61 = vadd.f32 %v4012_v54, %v4468_v0  ;;  %v905_v62 = vpop.f32.mrb[39].mxu0 }
 0x145   : > { %v1241_v3 = vmax.f32 %v903_v16, 0.0  ;;  %v906_v4 = vadd.f32 %v4468_v0, %v905_v62  ;;  %3641 = vmatprep.subr.bf16.mxu1 %v1900_v30  ;;  %v4635_v49 = vmax.f32 %v1459_v2, %v1571_v51  ;;  %v1463_v36 = vld [vmem:[#allocation2 + $0x110] sm:$0xff]  ;;  %v1895_v46 = vpack.c.bf16 %v1790_v35, %v1789_v32 }
 0x146   : > { %v1901_v5 = vpack.c.bf16 %v1802_v56, %v1801_v55  ;;  %1355 = vst.msk [vmem:[#allocation2 + $0x130] sm:$0xff] %vm199_vm0, %v1243_v60  ;;  %v1244_v50 = vmax.f32 %v914_v61, 0.0  ;;  %3642 = vmatpush3.bf16.msra.mxu1 %v1892_v44  ;;  %v1572_v7 = vld [vmem:[#allocation2 + $0xf9] sm:$0xff]  ;;  %v1792_v31 = vmax.f32 %v4622_v53, %v4560_v29  ;;  %v1791_v56 = vmax.f32 %v4620_v52, %v4558_v28 }
 0x147   : > { %1353 = vst.msk [vmem:[#allocation2 + $0x120] sm:$0xff] %vm199_vm0, %v1241_v3  ;;  %v1242_v41 = vmax.f32 %v906_v4, 0.0  ;;  %v1684_v8 = vmax.f32 %v1460_v6, %v1572_v7  ;;  %v1461_v9 = vld [vmem:[#allocation2 + $0x100] sm:$0xff]  ;;  %v1803_v59 = vmax.f32 %v4595_v47, %v4635_v49  ;;  %v1575_v21 = vld [vmem:[#allocation2 + $0x111] sm:$0xff] }
 0x148   : > { %3643 = vmatprep.subr.bf16.mxu1 %v1901_v5  ;;  %1356 = vst.msk [vmem:[#allocation2 + $0x138] sm:$0xff] %vm199_vm0, %v1244_v50  ;;  %v1462_v48 = vld [vmem:[#allocation2 + $0x108] sm:$0xff]  ;;  %v1464_v43 = vld [vmem:[#allocation2 + $0x118] sm:$0xff]  ;;  %v1896_v1 = vpack.c.bf16 %v1792_v31, %v1791_v56 }
 0x149   : > { %v1573_v13 = vld [vmem:[#allocation2 + $0x101] sm:$0xff]  ;;  %v1574_v14 = vld [vmem:[#allocation2 + $0x109] sm:$0xff]  ;;  %1354 = vst.msk [vmem:[#allocation2 + $0x128] sm:$0xff] %vm199_vm0, %v1242_v41  ;;  %v4015_v15 = vpop.f32.mrb[40].mxu0  ;;  %v1804_v33 = vmax.f32 %v4601_v19, %v1684_v8  ;;  %v4208_v52 = vld [vmem:[%s5690_s3 + $0x3c] ss:$28 sps:$4 sm:$0xff]  }
 0x14a   : > { %v4648_v34 = vmax.f32 %v1461_v9, %v1573_v13  ;;  %v4650_v17 = vmax.f32 %v1462_v48, %v1574_v14  ;;  %v927_v18 = vadd.f32 %v4015_v15, %v4468_v0  ;;  %v918_v20 = vpop.f32.mrb[41].mxu0  ;;  %3644 = vmatpush3.bf16.msra.mxu1 %v1893_v10  ;;  %v4205_v4 = vld [vmem:[%s5690_s3] ss:$28 sps:$4 sm:$0xff]   ;;  %v4254_v41 = vld [vmem:[%s5690_s3 + $0x14] ss:$28 sps:$4 sm:$0xff]  }
 0x14b   : > { %v919_v22 = vadd.f32 %v4468_v0, %v918_v20  ;;  %v4016_v23 = vpop.f32.mrb[42].mxu0  ;;  %v1902_v24 = vpack.c.bf16 %v1804_v33, %v1803_v59  ;;  %v1953_v7 = vld [vmem:[%s5690_s3 + $0x38] sm:$0xff]  ;;  %2883 = vmatprep.mubr.bf16.mxu0 %v4254_v41  ;;  %v4210_v33 = vld [vmem:[%s5690_s3 + $0x74] ss:$28 sps:$4 sm:$0xff]  }
 0x14c   : > { %v1805_v25 = vmax.f32 %v4615_v37, %v4648_v34  ;;  %v1806_v47 = vmax.f32 %v4617_v38, %v4650_v17  ;;  %v1247_v19 = vmax.f32 %v927_v18, 0.0  ;;  %v930_v26 = vadd.f32 %v4016_v23, %v4468_v0  ;;  %v921_v27 = vpop.f32.mrb[43].mxu0  ;;  %v1965_v23 = vld [vmem:[%s5690_s3 + $0x8c] sm:$0xff] }
 0x14d   : > { %v1245_v11 = vmax.f32 %v919_v22, 0.0  ;;  %v922_v39 = vadd.f32 %v4468_v0, %v921_v27  ;;  %3645 = vmatprep.subr.bf16.mxu1 %v1902_v24  ;;  %v4664_v37 = vmax.f32 %v1463_v36, %v1575_v21  ;;  %v3422_v15 = vcombine.low %v1953_v7, %v1957_v40  ;;  %v1961_v22 = vld [vmem:[%s5690_s3 + $0x70] sm:$0xff] }
 0x14e   : > { %v1903_v42 = vpack.c.bf16 %v1806_v47, %v1805_v25  ;;  %1359 = vst.msk [vmem:[#allocation2 + $0x150] sm:$0xff] %vm199_vm0, %v1247_v19  ;;  %v1248_v38 = vmax.f32 %v930_v26, 0.0  ;;  %3646 = vmatpush3.bf16.msra.mxu1 %v1894_v57  ;;  %v1576_v44 = vld [vmem:[#allocation2 + $0x119] sm:$0xff]  ;;  %v3429_v35 = vcombine.low %v1961_v22, %v1965_v23  ;;  %v1467_v7 = vld [vmem:[#allocation2 + $0x130] sm:$0xff] }
 0x14f   : > { %1357 = vst.msk [vmem:[#allocation2 + $0x140] sm:$0xff] %vm199_vm0, %v1245_v11  ;;  %v1246_v45 = vmax.f32 %v922_v39, 0.0  ;;  %v4668_v58 = vmax.f32 %v1464_v43, %v1576_v44  ;;  %v1807_v16 = vmax.f32 %v4635_v49, %v4664_v37  ;;  %v4212_v11 = vld [vmem:[%s5690_s3 + $0xac] ss:$28 sps:$4 sm:$0xff]   ;;  %v1579_v40 = vld [vmem:[#allocation2 + $0x131] sm:$0xff] }
 0x150   : > { %3647 = vmatprep.subr.bf16.mxu1 %v1903_v42  ;;  %1360 = vst.msk [vmem:[#allocation2 + $0x158] sm:$0xff] %vm199_vm0, %v1248_v38  ;;  %v1969_v44 = vld [vmem:[%s5690_s3 + $0xa8] sm:$0xff]  ;;  %v4767_v22 = vmax.f32 %v1467_v7, %v1579_v40 }
 0x151   : > { %1358 = vst.msk [vmem:[#allocation2 + $0x148] sm:$0xff] %vm199_vm0, %v1246_v45  ;;  %v4019_v51 = vpop.f32.mrb[44].mxu0  ;;  %v1808_v54 = vmax.f32 %v1684_v8, %v4668_v58  ;;  %v1973_v45 = vld [vmem:[%s5690_s3 + $0xc4] sm:$0xff] }
 0x152   : > { %v943_v30 = vadd.f32 %v4019_v51, %v4468_v0  ;;  %v934_v55 = vpop.f32.mrb[45].mxu0  ;;  %3648 = vmatpush3.bf16.msra.mxu1 %v1895_v46  ;;  %v1466_v46 = vld [vmem:[#allocation2 + $0x128] sm:$0xff] }
 0x153   : > { %v935_v60 = vadd.f32 %v4468_v0, %v934_v55  ;;  %v4020_v61 = vpop.f32.mrb[46].mxu0  ;;  %v1904_v62 = vpack.c.bf16 %v1808_v54, %v1807_v16  ;;  %v1577_v54 = vld [vmem:[#allocation2 + $0x121] sm:$0xff] }
 0x154   : > { %v1251_v29 = vmax.f32 %v943_v30, 0.0  ;;  %v946_v53 = vadd.f32 %v4020_v61, %v4468_v0  ;;  %v937_v63 = vpop.f32.mrb[47].mxu0  ;;  %v1578_v30 = vld [vmem:[#allocation2 + $0x129] sm:$0xff] }
 0x155   : > { %v1249_v2 = vmax.f32 %v935_v60, 0.0  ;;  %v938_v3 = vadd.f32 %v4468_v0, %v937_v63  ;;  %3649 = vmatprep.subr.bf16.mxu1 %v1904_v62 }
 0x156   : > { %1363 = vst.msk [vmem:[#allocation2 + $0x170] sm:$0xff] %vm199_vm0, %v1251_v29  ;;  %v1252_v28 = vmax.f32 %v946_v53, 0.0  ;;  %3650 = vmatpush3.bf16.msra.mxu1 %v1896_v1  ;;  %v4214_v53 = vld [vmem:[%s5690_s3 + $0xe4] ss:$28 sps:$4 sm:$0xff]  }
 0x157   : > { %1361 = vst.msk [vmem:[#allocation2 + $0x160] sm:$0xff] %vm199_vm0, %v1249_v2  ;;  %v1250_v5 = vmax.f32 %v938_v3, 0.0  ;;  %v3436_v2 = vcombine.low %v1969_v44, %v1973_v45  ;;  %v1465_v3 = vld [vmem:[#allocation2 + $0x120] sm:$0xff] }
 0x158   : > { %1364 = vst.msk [vmem:[#allocation2 + $0x178] sm:$0xff] %vm199_vm0, %v1252_v28  ;;  %v1580_v28 = vld [vmem:[#allocation2 + $0x139] sm:$0xff] }
 0x159   : > { %1362 = vst.msk [vmem:[#allocation2 + $0x168] sm:$0xff] %vm199_vm0, %v1250_v5  ;;  %v4023_v49 = vpop.f32.mrb[48].mxu0  ;;  %2594 = vmatmul.mubr.bf16.vlgmr.msra.gmra.mrb[0].mxu1 %v4205_v4  ;;  %v1468_v4 = vld [vmem:[#allocation2 + $0x138] sm:$0xff] }
 0x15a   : > { %v959_v50 = vadd.f32 %v4023_v49, %v4468_v0  ;;  %v950_v6 = vpop.f32.mrb[49].mxu0  ;;  %2601 = vmatprep.mubr.bf16.mxu1 %v4208_v52  ;;  %v4744_v49 = vmax.f32 %v1465_v3, %v1577_v54 }
 0x15b   : > { %v951_v8 = vadd.f32 %v4468_v0, %v950_v6  ;;  %v4024_v9 = vpop.f32.mrb[50].mxu0 }
 0x15c   : > { %v1255_v10 = vmax.f32 %v959_v50, 0.0  ;;  %v962_v12 = vadd.f32 %v4024_v9, %v4468_v0  ;;  %v953_v48 = vpop.f32.mrb[51].mxu0  ;;  %v4746_v50 = vmax.f32 %v1466_v46, %v1578_v30 }
 0x15d   : > { %v1253_v13 = vmax.f32 %v951_v8, 0.0  ;;  %v954_v14 = vadd.f32 %v4468_v0, %v953_v48 }
 0x15e   : > { %1367 = vst.msk [vmem:[#allocation2 + $0x190] sm:$0xff] %vm199_vm0, %v1255_v10  ;;  %v1256_v59 = vmax.f32 %v962_v12, 0.0 }
 0x15f   : > { %1365 = vst.msk [vmem:[#allocation2 + $0x180] sm:$0xff] %vm199_vm0, %v1253_v13  ;;  %v1254_v18 = vmax.f32 %v954_v14, 0.0 }
 0x160   : > { %1368 = vst.msk [vmem:[#allocation2 + $0x198] sm:$0xff] %vm199_vm0, %v1256_v59  ;;  %v4754_v59 = vmax.f32 %v1468_v4, %v1580_v28  ;;  %v1811_v4 = vmax.f32 %v4664_v37, %v4767_v22 }
 0x161   : > { %1366 = vst.msk [vmem:[#allocation2 + $0x188] sm:$0xff] %vm199_vm0, %v1254_v18  ;;  %v4027_v20 = vpop.f32.mrb[52].mxu0  ;;  %2602 = vmatmul.mubr.bf16.gmra.mrb[4].mxu1 %v3422_v15 }
 0x162   : > { %v975_v57 = vadd.f32 %v4027_v20, %v4468_v0  ;;  %v966_v21 = vpop.f32.mrb[53].mxu0  ;;  %2609 = vmatprep.mubr.bf16.mxu1 %v4210_v33  ;;  %v1812_v46 = vmax.f32 %v4668_v58, %v4754_v59 }
 0x163   : > { %v967_v24 = vadd.f32 %v4468_v0, %v966_v21  ;;  %v4028_v25 = vpop.f32.mrb[54].mxu0  ;;  %v1981_v21 = vld [vmem:[%s5690_s3 + $0xfc] sm:$0xff] }
 0x164   : > { %v1259_v47 = vmax.f32 %v975_v57, 0.0  ;;  %v978_v19 = vadd.f32 %v4028_v25, %v4468_v0  ;;  %v969_v26 = vpop.f32.mrb[55].mxu0  ;;  %v1977_v57 = vld [vmem:[%s5690_s3 + $0xe0] sm:$0xff]  ;;  %v1809_v25 = vmax.f32 %v4648_v34, %v4744_v49 }
 0x165   : > { %v1257_v27 = vmax.f32 %v967_v24, 0.0  ;;  %v970_v32 = vadd.f32 %v4468_v0, %v969_v26  ;;  %v1479_v6 = vld [vmem:[#allocation2 + $0x190] sm:$0xff]  ;;  %v1581_v34 = vld [vmem:[#allocation2 + $0x141] sm:$0xff]  ;;  %v3443_v44 = vcombine.low %v1977_v57, %v1981_v21  ;;  %v4817_v57 = vld [vmem:[%s5689_s2] ss:$0 sm:$0xff] }
 0x166   : > { %1371 = vst.msk [vmem:[#allocation2 + $0x1b0] sm:$0xff] %vm199_vm0, %v1259_v47  ;;  %v1260_v36 = vmax.f32 %v978_v19, 0.0  ;;  %v1477_v16 = vld [vmem:[#allocation2 + $0x180] sm:$0xff]  ;;  %v1810_v47 = vmax.f32 %v4650_v17, %v4746_v50 }
 0x167   : > { %1369 = vst.msk [vmem:[#allocation2 + $0x1a0] sm:$0xff] %vm199_vm0, %v1257_v27  ;;  %v1258_v39 = vmax.f32 %v970_v32, 0.0  ;;  %v1591_v12 = vld [vmem:[#allocation2 + $0x191] sm:$0xff] }
 0x168   : > { %1372 = vst.msk [vmem:[#allocation2 + $0x1b8] sm:$0xff] %vm199_vm0, %v1260_v36  ;;  %v1478_v61 = vld [vmem:[#allocation2 + $0x188] sm:$0xff]  ;;  %v1480_v19 = vld [vmem:[#allocation2 + $0x198] sm:$0xff]  ;;  %v4774_v27 = vmax.f32 %v1479_v6, %v1591_v12 }
 0x169   : > { %1370 = vst.msk [vmem:[#allocation2 + $0x1a8] sm:$0xff] %vm199_vm0, %v1258_v39  ;;  %v4031_v42 = vpop.f32.mrb[56].mxu0  ;;  %2610 = vmatmul.mubr.bf16.gmra.mrb[8].mxu1 %v3429_v35  ;;  %v1589_v62 = vld [vmem:[#allocation2 + $0x181] sm:$0xff]  ;;  %v1590_v29 = vld [vmem:[#allocation2 + $0x189] sm:$0xff] }
 0x16a   : > { %v991_v38 = vadd.f32 %v4031_v42, %v4468_v0  ;;  %v982_v43 = vpop.f32.mrb[57].mxu0  ;;  %2617 = vmatprep.mubr.bf16.mxu1 %v4212_v11  ;;  %v4749_v8 = vmax.f32 %v1477_v16, %v1589_v62  ;;  %v4751_v9 = vmax.f32 %v1478_v61, %v1590_v29  ;;  %v1469_v42 = vld [vmem:[#allocation2 + $0x140] sm:$0xff]  ;;  %v1583_v61 = vld [vmem:[#allocation2 + $0x151] sm:$0xff]  ;;  %v1905_v29 = vpack.c.bf16 %v1810_v47, %v1809_v25 }
 0x16b   : > { %v983_v31 = vadd.f32 %v4468_v0, %v982_v43  ;;  %v4032_v51 = vpop.f32.mrb[58].mxu0  ;;  %v1989_v25 = vld [vmem:[%s5690_s3 + $0x134] sm:$0xff] }
 0x16c   : > { %v1263_v55 = vmax.f32 %v991_v38, 0.0  ;;  %v994_v56 = vadd.f32 %v4032_v51, %v4468_v0  ;;  %v985_v60 = vpop.f32.mrb[59].mxu0  ;;  %v1471_v51 = vld [vmem:[#allocation2 + $0x150] sm:$0xff] }
 0x16d   : > { %v1261_v63 = vmax.f32 %v983_v31, 0.0  ;;  %v986_v1 = vadd.f32 %v4468_v0, %v985_v60  ;;  %v1483_v10 = vld [vmem:[#allocation2 + $0x1b0] sm:$0xff]  ;;  %v4216_v31 = vld [vmem:[%s5690_s3 + $0x11c] ss:$28 sps:$4 sm:$0xff]  }
 0x16e   : > { %1375 = vst.msk [vmem:[#allocation2 + $0x1d0] sm:$0xff] %vm199_vm0, %v1263_v55  ;;  %v1264_v52 = vmax.f32 %v994_v56, 0.0  ;;  %v1481_v5 = vld [vmem:[#allocation2 + $0x1a0] sm:$0xff]  ;;  %v1470_v56 = vld [vmem:[#allocation2 + $0x148] sm:$0xff] }
 0x16f   : > { %1373 = vst.msk [vmem:[#allocation2 + $0x1c0] sm:$0xff] %vm199_vm0, %v1261_v63  ;;  %v1262_v41 = vmax.f32 %v986_v1, 0.0  ;;  %v1595_v48 = vld [vmem:[#allocation2 + $0x1b1] sm:$0xff]  ;;  %v1592_v26 = vld [vmem:[#allocation2 + $0x199] sm:$0xff]  ;;  %v1582_v60 = vld [vmem:[#allocation2 + $0x149] sm:$0xff]  ;;  %v4793_v63 = vmax.f32 %v1469_v42, %v1581_v34 }
 0x170   : > { %1376 = vst.msk [vmem:[#allocation2 + $0x1d8] sm:$0xff] %vm199_vm0, %v1264_v52  ;;  %v1482_v13 = vld [vmem:[#allocation2 + $0x1a8] sm:$0xff]  ;;  %v4781_v39 = vmax.f32 %v1483_v10, %v1595_v48  ;;  %v1484_v45 = vld [vmem:[#allocation2 + $0x1b8] sm:$0xff]  ;;  %v4790_v55 = vmax.f32 %v1480_v19, %v1592_v26  ;;  %v4805_v10 = vmax.f32 %v1471_v51, %v1583_v61  ;;  %v1906_v48 = vpack.c.bf16 %v1812_v46, %v1811_v4  ;;  %v4840_v34 = vld [vmem:[%s5690_s3 + $0x150] sm:$0xff] }
 0x171   : > { %v1593_v14 = vld [vmem:[#allocation2 + $0x1a1] sm:$0xff]  ;;  %v1594_v15 = vld [vmem:[#allocation2 + $0x1a9] sm:$0xff]  ;;  %1374 = vst.msk [vmem:[#allocation2 + $0x1c8] sm:$0xff] %vm199_vm0, %v1262_v41  ;;  %v4035_v33 = vpop.f32.mrb[60].mxu0  ;;  %2618 = vmatmul.mubr.bf16.gmra.mrb[12].mxu1 %v3436_v2  ;;  %v1472_v1 = vld [vmem:[#allocation2 + $0x158] sm:$0xff]  ;;  %v4803_v41 = vmax.f32 %v1470_v56, %v1582_v60  ;;  %v1813_v47 = vmax.f32 %v4744_v49, %v4793_v63 }
 0x172   : > { %v4757_v18 = vmax.f32 %v1481_v5, %v1593_v14  ;;  %v4759_v20 = vmax.f32 %v1482_v13, %v1594_v15  ;;  %v1007_v23 = vadd.f32 %v4035_v33, %v4468_v0  ;;  %v998_v24 = vpop.f32.mrb[61].mxu0  ;;  %2625 = vmatprep.mubr.bf16.mxu1 %v4214_v53  ;;  %v1827_v3 = vmax.f32 %v4774_v27, %v4781_v39  ;;  %v1584_v5 = vld [vmem:[#allocation2 + $0x159] sm:$0xff]  ;;  %v1475_v15 = vld [vmem:[#allocation2 + $0x170] sm:$0xff]  ;;  %v1474_v56 = vld [vmem:[#allocation2 + $0x168] sm:$0xff] }
 0x173   : > { %v999_v32 = vadd.f32 %v4468_v0, %v998_v24  ;;  %v4036_v35 = vpop.f32.mrb[62].mxu0  ;;  %v1587_v33 = vld [vmem:[#allocation2 + $0x171] sm:$0xff]  ;;  %v4830_v26 = vmax.f32 %v1472_v1, %v1584_v5  ;;  %v1585_v60 = vld [vmem:[#allocation2 + $0x161] sm:$0xff]  ;;  %v1586_v61 = vld [vmem:[#allocation2 + $0x169] sm:$0xff] }
 0x174   : > { %v1825_v36 = vmax.f32 %v4749_v8, %v4757_v18  ;;  %v1826_v11 = vmax.f32 %v4751_v9, %v4759_v20  ;;  %v1267_v38 = vmax.f32 %v1007_v23, 0.0  ;;  %v1010_v17 = vadd.f32 %v4036_v35, %v4468_v0  ;;  %v1001_v43 = vpop.f32.mrb[63].mxu0  ;;  %v1985_v24 = vld [vmem:[%s5690_s3 + $0x118] sm:$0xff]  ;;  %v4845_v49 = vld [vmem:[%s5690_s3 + $0x16c] sm:$0xff] }
 0x175   : > { %v1265_v16 = vmax.f32 %v999_v32, 0.0  ;;  %v1002_v54 = vadd.f32 %v4468_v0, %v1001_v43  ;;  %v1487_v28 = vld [vmem:[#allocation2 + $0x1d0] sm:$0xff]  ;;  %v1476_v46 = vld [vmem:[#allocation2 + $0x178] sm:$0xff] }
 0x176   : > { %v1913_v30 = vpack.c.bf16 %v1826_v11, %v1825_v36  ;;  %1379 = vst.msk [vmem:[#allocation2 + $0x1f0] sm:$0xff] %vm199_vm0, %v1267_v38  ;;  %v1268_v62 = vmax.f32 %v1010_v17, 0.0  ;;  %v1596_v53 = vld [vmem:[#allocation2 + $0x1b9] sm:$0xff] }
 0x177   : > { %v1485_v58 = vld [vmem:[#allocation2 + $0x1c0] sm:$0xff]  ;;  %1377 = vst.msk [vmem:[#allocation2 + $0x1e0] sm:$0xff] %vm199_vm0, %v1265_v16  ;;  %v1266_v2 = vmax.f32 %v1002_v54, 0.0  ;;  %v4796_v0 = vmax.f32 %v1484_v45, %v1596_v53  ;;  %v1599_v52 = vld [vmem:[#allocation2 + $0x1d1] sm:$0xff] }
 0x178   : > { %3735 = vmatprep.subr.bf16.mxu1 %v1913_v30  ;;  %1380 = vst.msk [vmem:[#allocation2 + $0x1f8] sm:$0xff] %vm199_vm0, %v1268_v62  ;;  %v1486_v6 = vld [vmem:[#allocation2 + $0x1c8] sm:$0xff]  ;;  %v4828_v19 = vmax.f32 %v1487_v28, %v1599_v52  ;;  %v1473_v45 = vld [vmem:[#allocation2 + $0x160] sm:$0xff]  ;;  %v3450_v30 = vcombine.low %v1985_v24, %v1989_v25  ;;  %v1815_v28 = vmax.f32 %v4767_v22, %v4805_v10 }
 0x179   : > { %3736 = vmatpush3.bf16.msra.mxu1 %v1905_v29  ;;  %v1597_v7 = vld [vmem:[#allocation2 + $0x1c1] sm:$0xff]  ;;  %v1598_v40 = vld [vmem:[#allocation2 + $0x1c9] sm:$0xff]  ;;  %1378 = vst.msk [vmem:[#allocation2 + $0x1e8] sm:$0xff] %vm199_vm0, %v1266_v2  ;;  %v4039_v12 = vpop.f32.mrb[64].mxu0  ;;  %v1828_v37 = vmax.f32 %v4790_v55, %v4796_v0  ;;  %v1816_v29 = vmax.f32 %v4754_v59, %v4830_v26  ;;  %v1588_v1 = vld [vmem:[#allocation2 + $0x179] sm:$0xff] }
 0x17a   : > { %2626 = vmatmul.mubr.bf16.gmra.mrb[16].mxu1 %v3443_v44  ;;  %v4810_v13 = vmax.f32 %v1485_v58, %v1597_v7  ;;  %v4812_v14 = vmax.f32 %v1486_v6, %v1598_v40  ;;  %v1023_v21 = vadd.f32 %v4817_v57, %v4039_v12  ;;  %v1014_v23 = vpop.f32.mrb[65].mxu0  ;;  %v1488_v44 = vld [vmem:[#allocation2 + $0x1d8] sm:$0xff]  ;;  %v3457_v58 = vcombine.low %v4840_v34, %v4845_v49  ;;  %v2005_v34 = vld [vmem:[%s5690_s3 + $0x1a4] sm:$0xff] }
 0x17b   : > { %2633 = vmatprep.mubr.bf16.mxu1 %v4216_v31  ;;  %v1015_v32 = vadd.f32 %v4817_v57, %v1014_v23  ;;  %v4040_v35 = vpop.f32.mrb[66].mxu0  ;;  %v1914_v36 = vpack.c.bf16 %v1828_v37, %v1827_v3  ;;  %v4853_v31 = vmax.f32 %v1475_v15, %v1587_v33  ;;  %v1831_v4 = vmax.f32 %v4781_v39, %v4828_v19 }
 0x17c   : > { %v1829_v11 = vmax.f32 %v4757_v18, %v4810_v13  ;;  %v1830_v42 = vmax.f32 %v4759_v20, %v4812_v14  ;;  %v1271_v38 = vmax.f32 %v1023_v21, 0.0  ;;  %v1026_v17 = vadd.f32 %v4817_v57, %v4040_v35  ;;  %v1017_v43 = vpop.f32.mrb[67].mxu0  ;;  %v4218_v20 = vld [vmem:[%s5690_s3 + $0x154] ss:$28 sps:$4 sm:$0xff]  }
 0x17d   : > { %v1814_v18 = vmax.f32 %v4746_v50, %v4803_v41  ;;  %v1269_v51 = vmax.f32 %v1015_v32, 0.0  ;;  %v1018_v16 = vadd.f32 %v4817_v57, %v1017_v43  ;;  %3737 = vmatprep.subr.bf16.mxu1 %v1914_v36  ;;  %v1491_v52 = vld [vmem:[#allocation2 + $0x1f0] sm:$0xff]  ;;  %v4869_v12 = vmax.f32 %v1473_v45, %v1585_v60 }
 0x17e   : > { %v1915_v54 = vpack.c.bf16 %v1830_v42, %v1829_v11  ;;  %1383 = vst.msk [vmem:[#allocation2 + $0x210] sm:$0xff] %vm199_vm0, %v1271_v38  ;;  %v1272_v50 = vmax.f32 %v1026_v17, 0.0  ;;  %3738 = vmatpush3.bf16.msra.mxu1 %v1906_v48  ;;  %v1600_v62 = vld [vmem:[#allocation2 + $0x1d9] sm:$0xff]  ;;  %v4871_v37 = vmax.f32 %v1474_v56, %v1586_v61  ;;  %v1819_v48 = vmax.f32 %v4805_v10, %v4853_v31 }
 0x17f   : > { %v1489_v53 = vld [vmem:[#allocation2 + $0x1e0] sm:$0xff]  ;;  %1381 = vst.msk [vmem:[#allocation2 + $0x200] sm:$0xff] %vm199_vm0, %v1269_v51  ;;  %v1270_v2 = vmax.f32 %v1018_v16, 0.0  ;;  %v4862_v3 = vmax.f32 %v1488_v44, %v1600_v62  ;;  %v1603_v5 = vld [vmem:[#allocation2 + $0x1f1] sm:$0xff]  ;;  %v1907_v59 = vpack.c.bf16 %v1814_v18, %v1813_v47  ;;  %v4882_v21 = vmax.f32 %v1476_v46, %v1588_v1 }
 0x180   : > { %3739 = vmatprep.subr.bf16.mxu1 %v1915_v54  ;;  %1384 = vst.msk [vmem:[#allocation2 + $0x218] sm:$0xff] %vm199_vm0, %v1272_v50  ;;  %v1490_v6 = vld [vmem:[#allocation2 + $0x1e8] sm:$0xff]  ;;  %v1908_v25 = vpack.c.bf16 %v1816_v29, %v1815_v28  ;;  %v4885_v10 = vmax.f32 %v1491_v52, %v1603_v5  ;;  %v1817_v17 = vmax.f32 %v4793_v63, %v4869_v12  ;;  %v1492_v18 = vld [vmem:[#allocation2 + $0x1f8] sm:$0xff] }
 0x181   : > { %v1601_v7 = vld [vmem:[#allocation2 + $0x1e1] sm:$0xff]  ;;  %v1602_v40 = vld [vmem:[#allocation2 + $0x1e9] sm:$0xff]  ;;  %1382 = vst.msk [vmem:[#allocation2 + $0x208] sm:$0xff] %vm199_vm0, %v1270_v2  ;;  %v4043_v39 = vpop.f32.mrb[68].mxu0  ;;  %v1832_v22 = vmax.f32 %v4796_v0, %v4862_v3  ;;  %v1818_v43 = vmax.f32 %v4803_v41, %v4871_v37  ;;  %v1821_v49 = vmax.f32 %v4869_v12, %v4749_v8 }
 0x182   : > { %2634 = vmatmul.mubr.bf16.gmra.mrb[20].mxu1 %v3450_v30  ;;  %v4878_v15 = vmax.f32 %v1489_v53, %v1601_v7  ;;  %v4880_v33 = vmax.f32 %v1490_v6, %v1602_v40  ;;  %v1039_v23 = vadd.f32 %v4817_v57, %v4043_v39  ;;  %v1030_v24 = vpop.f32.mrb[69].mxu0  ;;  %v4220_v63 = vld [vmem:[%s5690_s3 + $0x18c] ss:$28 sps:$4 sm:$0xff]   ;;  %v1835_v54 = vmax.f32 %v4828_v19, %v4885_v10 }
 0x183   : > { %3740 = vmatpush3.bf16.msra.mxu1 %v1907_v59  ;;  %2641 = vmatprep.mubr.bf16.mxu1 %v4218_v20  ;;  %v1031_v47 = vadd.f32 %v4817_v57, %v1030_v24  ;;  %v4044_v32 = vpop.f32.mrb[70].mxu0  ;;  %v1916_v35 = vpack.c.bf16 %v1832_v22, %v1831_v4  ;;  %v1909_v56 = vpack.c.bf16 %v1818_v43, %v1817_v17  ;;  %v2001_v28 = vld [vmem:[%s5690_s3 + $0x188] sm:$0xff] }
 0x184   : > { %v1833_v0 = vmax.f32 %v4810_v13, %v4878_v15  ;;  %v1834_v36 = vmax.f32 %v4812_v14, %v4880_v33  ;;  %v1275_v11 = vmax.f32 %v1039_v23, 0.0  ;;  %v1042_v42 = vadd.f32 %v4817_v57, %v4044_v32  ;;  %v1033_v38 = vpop.f32.mrb[71].mxu0 }
 0x185   : > { %v1273_v44 = vmax.f32 %v1031_v47, 0.0  ;;  %v1034_v20 = vadd.f32 %v4817_v57, %v1033_v38  ;;  %3741 = vmatprep.subr.bf16.mxu1 %v1916_v35  ;;  %v1820_v13 = vmax.f32 %v4830_v26, %v4882_v21  ;;  %v1495_v26 = vld [vmem:[#allocation2 + $0x210] sm:$0xff]  ;;  %v1822_v39 = vmax.f32 %v4871_v37, %v4751_v9 }
 0x186   : > { %v1917_v45 = vpack.c.bf16 %v1834_v36, %v1833_v0  ;;  %1387 = vst.msk [vmem:[#allocation2 + $0x230] sm:$0xff] %vm199_vm0, %v1275_v11  ;;  %v1276_v14 = vmax.f32 %v1042_v42, 0.0  ;;  %v1604_v46 = vld [vmem:[#allocation2 + $0x1f9] sm:$0xff]  ;;  %v3464_v24 = vcombine.low %v2001_v28, %v2005_v34  ;;  %v1823_v0 = vmax.f32 %v4853_v31, %v4774_v27  ;;  %v4226_v28 = vld [vmem:[%s5690_s3 + $0x234] ss:$28 sps:$4 sm:$0xff]  }
 0x187   : > { %3742 = vmatpush3.bf16.msra.mxu1 %v1908_v25  ;;  %v1493_v51 = vld [vmem:[#allocation2 + $0x200] sm:$0xff]  ;;  %1385 = vst.msk [vmem:[#allocation2 + $0x220] sm:$0xff] %vm199_vm0, %v1273_v44  ;;  %v1274_v41 = vmax.f32 %v1034_v20, 0.0  ;;  %v4905_v16 = vmax.f32 %v1492_v18, %v1604_v46  ;;  %v1607_v30 = vld [vmem:[#allocation2 + $0x211] sm:$0xff]  ;;  %v1910_v53 = vpack.c.bf16 %v1820_v13, %v1819_v48  ;;  %v4340_v25 = vmov 0.0  }
 0x188   : > { %3743 = vmatprep.subr.bf16.mxu1 %v1917_v45  ;;  %1388 = vst.msk [vmem:[#allocation2 + $0x238] sm:$0xff] %vm199_vm0, %v1276_v14  ;;  %v1494_v60 = vld [vmem:[#allocation2 + $0x208] sm:$0xff]  ;;  %v1496_v8 = vld [vmem:[#allocation2 + $0x218] sm:$0xff]  ;;  %200 = vst.msk [vmem:[#allocation2 + $0x380] sm:$0xff] %vm199_vm0, %v4340_v25  ;;  %v1911_v35 = vpack.c.bf16 %v1822_v39, %v1821_v49  ;;  %v1824_v36 = vmax.f32 %v4882_v21, %v4790_v55 }
 0x189   : > { %v1605_v61 = vld [vmem:[#allocation2 + $0x201] sm:$0xff]  ;;  %v1606_v50 = vld [vmem:[#allocation2 + $0x209] sm:$0xff]  ;;  %1386 = vst.msk [vmem:[#allocation2 + $0x228] sm:$0xff] %vm199_vm0, %v1274_v41  ;;  %v4047_v62 = vpop.f32.mrb[72].mxu0  ;;  %v1836_v29 = vmax.f32 %v4862_v3, %v4905_v16  ;;  %201 = vst.msk [vmem:[#allocation2 + $0x388] sm:$0xff] %vm199_vm0, %v4340_v25 }
 0x18a   : > { %2642 = vmatmul.mubr.bf16.gmra.mrb[24].mxu1 %v3457_v58  ;;  %v4916_v19 = vmax.f32 %v1493_v51, %v1605_v61  ;;  %v4918_v1 = vmax.f32 %v1494_v60, %v1606_v50  ;;  %v1055_v2 = vadd.f32 %v4817_v57, %v4047_v62  ;;  %v1046_v4 = vpop.f32.mrb[73].mxu0  ;;  %v4929_v58 = vmax.f32 %v1495_v26, %v1607_v30  ;;  %v2013_v27 = vld [vmem:[%s5690_s3 + $0x1dc] sm:$0xff]  ;;  %v2021_v30 = vld [vmem:[%s5690_s3 + $0x214] sm:$0xff] }
 0x18b   : > { %3744 = vmatpush3.bf16.msra.mxu1 %v1909_v56  ;;  %2649 = vmatprep.mubr.bf16.mxu1 %v4220_v63  ;;  %v1047_v3 = vadd.f32 %v4817_v57, %v1046_v4  ;;  %v4048_v52 = vpop.f32.mrb[74].mxu0  ;;  %v1918_v5 = vpack.c.bf16 %v1836_v29, %v1835_v54  ;;  %202 = vst.msk [vmem:[#allocation2 + $0x390] sm:$0xff] %vm199_vm0, %v4340_v25  ;;  %203 = vst.msk [vmem:[#allocation2 + $0x398] sm:$0xff] %vm199_vm0, %v4340_v25  ;;  %v4224_v51 = vld [vmem:[%s5690_s3 + $0x1fc] ss:$28 sps:$4 sm:$0xff]  }
 0x18c   : > { %v1837_v59 = vmax.f32 %v4878_v15, %v4916_v19  ;;  %v1838_v6 = vmax.f32 %v4880_v33, %v4918_v1  ;;  %v1279_v7 = vmax.f32 %v1055_v2, 0.0  ;;  %v1058_v40 = vadd.f32 %v4817_v57, %v4048_v52  ;;  %v1049_v48 = vpop.f32.mrb[75].mxu0  ;;  %204 = vst.msk [vmem:[#allocation2 + $0x3a0] sm:$0xff] %vm199_vm0, %v4340_v25  ;;  %v4222_v15 = vld [vmem:[%s5690_s3 + $0x1c4] ss:$28 sps:$4 sm:$0xff]   ;;  %v2017_v26 = vld [vmem:[%s5690_s3 + $0x1f8] sm:$0xff] }
 0x18d   : > { %v1277_v12 = vmax.f32 %v1047_v3, 0.0  ;;  %v1050_v22 = vadd.f32 %v4817_v57, %v1049_v48  ;;  %3745 = vmatprep.subr.bf16.mxu1 %v1918_v5  ;;  %v1839_v32 = vmax.f32 %v4885_v10, %v4929_v58  ;;  %v2009_v10 = vld [vmem:[%s5690_s3 + $0x1c0] sm:$0xff]  ;;  %v1912_v20 = vpack.c.bf16 %v1824_v36, %v1823_v0  ;;  %v2025_v5 = vld [vmem:[%s5690_s3 + $0x230] sm:$0xff] }
 0x18e   : > { %v1919_v23 = vpack.c.bf16 %v1838_v6, %v1837_v59  ;;  %1391 = vst.msk [vmem:[#allocation2 + $0x250] sm:$0xff] %vm199_vm0, %v1279_v7  ;;  %v1280_v9 = vmax.f32 %v1058_v40, 0.0  ;;  %v1608_v37 = vld [vmem:[#allocation2 + $0x219] sm:$0xff]  ;;  %v3471_v14 = vcombine.low %v2009_v10, %v2013_v27  ;;  %v3478_v2 = vcombine.low %v2017_v26, %v2021_v30  ;;  %v2029_v59 = vld [vmem:[%s5690_s3 + $0x24c] sm:$0xff] }
 0x18f   : > { %3746 = vmatpush3.bf16.msra.mxu1 %v1910_v53  ;;  %1389 = vst.msk [vmem:[#allocation2 + $0x240] sm:$0xff] %vm199_vm0, %v1277_v12  ;;  %v1278_v33 = vmax.f32 %v1050_v22, 0.0  ;;  %v4950_v47 = vmax.f32 %v1496_v8, %v1608_v37  ;;  %v3485_v22 = vcombine.low %v2025_v5, %v2029_v59  ;;  %v2033_v37 = vld [vmem:[%s5690_s3 + $0x268] sm:$0xff] }
 0x190   : > { %3747 = vmatprep.subr.bf16.mxu1 %v1919_v23  ;;  %1392 = vst.msk [vmem:[#allocation2 + $0x258] sm:$0xff] %vm199_vm0, %v1280_v9  ;;  %v1609_v0 = vld [vmem:[#allocation2 + $0x221] sm:$0xff] }
 0x191   : > { %1390 = vst.msk [vmem:[#allocation2 + $0x248] sm:$0xff] %vm199_vm0, %v1278_v33  ;;  %v4051_v11 = vpop.f32.mrb[76].mxu0  ;;  %v1840_v42 = vmax.f32 %v4905_v16, %v4950_v47 }
 0x192   : > { %2650 = vmatmul.mubr.bf16.gmra.mrb[28].mxu1 %v3464_v24  ;;  %v1071_v38 = vadd.f32 %v4817_v57, %v4051_v11  ;;  %v1062_v17 = vpop.f32.mrb[77].mxu0  ;;  %v4228_v24 = vld [vmem:[%s5690_s3 + $0x26c] ss:$28 sps:$4 sm:$0xff]  }
 0x193   : > { %3748 = vmatpush3.bf16.msra.mxu1 %v1911_v35  ;;  %2657 = vmatprep.mubr.bf16.mxu1 %v4222_v15  ;;  %v1063_v55 = vadd.f32 %v4817_v57, %v1062_v17  ;;  %v4052_v31 = vpop.f32.mrb[78].mxu0  ;;  %v1920_v21 = vpack.c.bf16 %v1840_v42, %v1839_v32  ;;  %v2037_v32 = vld [vmem:[%s5690_s3 + $0x284] sm:$0xff] }
 0x194   : > { %v1283_v43 = vmax.f32 %v1071_v38, 0.0  ;;  %v1074_v18 = vadd.f32 %v4817_v57, %v4052_v31  ;;  %v1065_v44 = vpop.f32.mrb[79].mxu0  ;;  %v1497_v35 = vld [vmem:[#allocation2 + $0x220] sm:$0xff]  ;;  %v1498_v38 = vld [vmem:[#allocation2 + $0x228] sm:$0xff] }
 0x195   : > { %v1281_v45 = vmax.f32 %v1063_v55, 0.0  ;;  %v1066_v13 = vadd.f32 %v4817_v57, %v1065_v44  ;;  %3749 = vmatprep.subr.bf16.mxu1 %v1920_v21  ;;  %v1610_v17 = vld [vmem:[#allocation2 + $0x229] sm:$0xff] }
 0x196   : > { %1395 = vst.msk [vmem:[#allocation2 + $0x270] sm:$0xff] %vm199_vm0, %v1283_v43  ;;  %v1284_v46 = vmax.f32 %v1074_v18, 0.0  ;;  %v4230_v18 = vld [vmem:[%s5690_s3 + $0x2a4] ss:$28 sps:$4 sm:$0xff]  }
 0x197   : > { %3750 = vmatpush3.bf16.msra.mxu1 %v1912_v20  ;;  %1393 = vst.msk [vmem:[#allocation2 + $0x260] sm:$0xff] %vm199_vm0, %v1281_v45  ;;  %v1282_v63 = vmax.f32 %v1066_v13, 0.0  ;;  %v3492_v45 = vcombine.low %v2033_v37, %v2037_v32  ;;  %v5026_v13 = vmax.f32 %v1497_v35, %v1609_v0  ;;  %v1612_v26 = vld [vmem:[#allocation2 + $0x239] sm:$0xff]  ;;  %v1615_v37 = vld [vmem:[#allocation2 + $0x251] sm:$0xff] }
 0x198   : > { %1396 = vst.msk [vmem:[#allocation2 + $0x278] sm:$0xff] %vm199_vm0, %v1284_v46  ;;  %v1500_v46 = vld [vmem:[#allocation2 + $0x238] sm:$0xff] }
 0x199   : > { %1394 = vst.msk [vmem:[#allocation2 + $0x268] sm:$0xff] %vm199_vm0, %v1282_v63  ;;  %v4055_v41 = vpop.f32.mrb[80].mxu0  ;;  %v1841_v5 = vmax.f32 %v4916_v19, %v5026_v13 }
 0x19a   : > { %2658 = vmatmul.mubr.bf16.gmra.mrb[32].mxu1 %v3471_v14  ;;  %v1087_v16 = vadd.f32 %v4817_v57, %v4055_v41  ;;  %v1078_v54 = vpop.f32.mrb[81].mxu0  ;;  %v1499_v14 = vld [vmem:[#allocation2 + $0x230] sm:$0xff] }
 0x19b   : > { %2665 = vmatprep.mubr.bf16.mxu1 %v4224_v51  ;;  %v1079_v56 = vadd.f32 %v4817_v57, %v1078_v54  ;;  %v4056_v60 = vpop.f32.mrb[82].mxu0  ;;  %v1611_v51 = vld [vmem:[#allocation2 + $0x231] sm:$0xff] }
 0x19c   : > { %v1287_v61 = vmax.f32 %v1087_v16, 0.0  ;;  %v1090_v50 = vadd.f32 %v4817_v57, %v4056_v60  ;;  %v1081_v62 = vpop.f32.mrb[83].mxu0  ;;  %v5029_v16 = vmax.f32 %v1498_v38, %v1610_v17  ;;  %v1504_v38 = vld [vmem:[#allocation2 + $0x258] sm:$0xff] }
 0x19d   : > { %v1285_v29 = vmax.f32 %v1079_v56, 0.0  ;;  %v1082_v53 = vadd.f32 %v4817_v57, %v1081_v62 }
 0x19e   : > { %1399 = vst.msk [vmem:[#allocation2 + $0x290] sm:$0xff] %vm199_vm0, %v1287_v61  ;;  %v1288_v4 = vmax.f32 %v1090_v50, 0.0 }
 0x19f   : > { %1397 = vst.msk [vmem:[#allocation2 + $0x280] sm:$0xff] %vm199_vm0, %v1285_v29  ;;  %v1286_v34 = vmax.f32 %v1082_v53, 0.0 }
 0x1a0   : > { %1400 = vst.msk [vmem:[#allocation2 + $0x298] sm:$0xff] %vm199_vm0, %v1288_v4  ;;  %v5037_v4 = vmax.f32 %v1499_v14, %v1611_v51  ;;  %v1616_v14 = vld [vmem:[#allocation2 + $0x259] sm:$0xff] }
 0x1a1   : > { %1398 = vst.msk [vmem:[#allocation2 + $0x288] sm:$0xff] %vm199_vm0, %v1286_v34  ;;  %v4059_v49 = vpop.f32.mrb[84].mxu0 }
 0x1a2   : > { %2666 = vmatmul.mubr.bf16.gmra.mrb[36].mxu1 %v3478_v2  ;;  %v1103_v3 = vadd.f32 %v4817_v57, %v4059_v49  ;;  %v1094_v52 = vpop.f32.mrb[85].mxu0 }
 0x1a3   : > { %2673 = vmatprep.mubr.bf16.mxu1 %v4226_v28  ;;  %v1095_v6 = vadd.f32 %v4817_v57, %v1094_v52  ;;  %v4060_v7 = vpop.f32.mrb[86].mxu0  ;;  %v2045_v52 = vld [vmem:[%s5690_s3 + $0x2bc] sm:$0xff] }
 0x1a4   : > { %v1291_v40 = vmax.f32 %v1103_v3, 0.0  ;;  %v1106_v48 = vadd.f32 %v4817_v57, %v4060_v7  ;;  %v1097_v39 = vpop.f32.mrb[87].mxu0  ;;  %v2041_v3 = vld [vmem:[%s5690_s3 + $0x2a0] sm:$0xff]  ;;  %v1842_v7 = vmax.f32 %v4918_v1, %v5029_v16  ;;  %v5069_v1 = vld [vmem:[%s5690_s3 + $0x2d8] sm:$0xff] }
 0x1a5   : > { %v1289_v8 = vmax.f32 %v1095_v6, 0.0  ;;  %v1098_v12 = vadd.f32 %v4817_v57, %v1097_v39  ;;  %v1511_v54 = vld [vmem:[#allocation2 + $0x290] sm:$0xff]  ;;  %v3499_v35 = vcombine.low %v2041_v3, %v2045_v52  ;;  %v5109_v52 = vmax.f32 %v1504_v38, %v1616_v14 }
 0x1a6   : > { %1403 = vst.msk [vmem:[#allocation2 + $0x2b0] sm:$0xff] %vm199_vm0, %v1291_v40  ;;  %v1292_v23 = vmax.f32 %v1106_v48, 0.0  ;;  %v1509_v42 = vld [vmem:[#allocation2 + $0x280] sm:$0xff]  ;;  %v1618_v38 = vld [vmem:[#allocation2 + $0x269] sm:$0xff] }
 0x1a7   : > { %1401 = vst.msk [vmem:[#allocation2 + $0x2a0] sm:$0xff] %vm199_vm0, %v1289_v8  ;;  %v1290_v25 = vmax.f32 %v1098_v12, 0.0  ;;  %v1623_v50 = vld [vmem:[#allocation2 + $0x291] sm:$0xff]  ;;  %v5057_v8 = vmax.f32 %v1500_v46, %v1612_v26 }
 0x1a8   : > { %1404 = vst.msk [vmem:[#allocation2 + $0x2b8] sm:$0xff] %vm199_vm0, %v1292_v23  ;;  %v1510_v31 = vld [vmem:[#allocation2 + $0x288] sm:$0xff]  ;;  %v1512_v40 = vld [vmem:[#allocation2 + $0x298] sm:$0xff]  ;;  %v5055_v39 = vmax.f32 %v1511_v54, %v1623_v50 }
 0x1a9   : > { %1402 = vst.msk [vmem:[#allocation2 + $0x2a8] sm:$0xff] %vm199_vm0, %v1290_v25  ;;  %v4063_v9 = vpop.f32.mrb[88].mxu0  ;;  %v1621_v21 = vld [vmem:[#allocation2 + $0x281] sm:$0xff]  ;;  %v1622_v43 = vld [vmem:[#allocation2 + $0x289] sm:$0xff]  ;;  %v5074_v25 = vld [vmem:[%s5690_s3 + $0x2f4] sm:$0xff] }
 0x1aa   : > { %2674 = vmatmul.mubr.bf16.gmra.mrb[40].mxu1 %v3485_v22  ;;  %v1119_v15 = vadd.f32 %v4817_v57, %v4063_v9  ;;  %v1110_v33 = vpop.f32.mrb[89].mxu0  ;;  %v5032_v56 = vmax.f32 %v1509_v42, %v1621_v21  ;;  %v5034_v60 = vmax.f32 %v1510_v31, %v1622_v43  ;;  %v1503_v9 = vld [vmem:[#allocation2 + $0x250] sm:$0xff]  ;;  %v1501_v42 = vld [vmem:[#allocation2 + $0x240] sm:$0xff]  ;;  %v1502_v31 = vld [vmem:[#allocation2 + $0x248] sm:$0xff]  ;;  %v3506_v50 = vcombine.low %v5069_v1, %v5074_v25 }
 0x1ab   : > { %2681 = vmatprep.mubr.bf16.mxu1 %v4228_v24  ;;  %v1111_v36 = vadd.f32 %v4817_v57, %v1110_v33  ;;  %v4064_v11 = vpop.f32.mrb[90].mxu0  ;;  %v1613_v21 = vld [vmem:[#allocation2 + $0x241] sm:$0xff]  ;;  %v1614_v43 = vld [vmem:[#allocation2 + $0x249] sm:$0xff]  ;;  %v5088_v46 = vmax.f32 %v1503_v9, %v1615_v37 }
 0x1ac   : > { %v1295_v10 = vmax.f32 %v1119_v15, 0.0  ;;  %v1122_v27 = vadd.f32 %v4817_v57, %v4064_v11  ;;  %v1113_v55 = vpop.f32.mrb[91].mxu0  ;;  %v4232_v11 = vld [vmem:[%s5690_s3 + $0x2dc] ss:$28 sps:$4 sm:$0xff]   ;;  %v1507_v1 = vld [vmem:[#allocation2 + $0x270] sm:$0xff] }
 0x1ad   : > { %v1293_v44 = vmax.f32 %v1111_v36, 0.0  ;;  %v1114_v20 = vadd.f32 %v4817_v57, %v1113_v55  ;;  %v1515_v61 = vld [vmem:[#allocation2 + $0x2b0] sm:$0xff]  ;;  %v1843_v36 = vmax.f32 %v4929_v58, %v5037_v4 }
 0x1ae   : > { %1407 = vst.msk [vmem:[#allocation2 + $0x2d0] sm:$0xff] %vm199_vm0, %v1295_v10  ;;  %v1296_v63 = vmax.f32 %v1122_v27, 0.0  ;;  %v1513_v41 = vld [vmem:[#allocation2 + $0x2a0] sm:$0xff] }
 0x1af   : > { %1405 = vst.msk [vmem:[#allocation2 + $0x2c0] sm:$0xff] %vm199_vm0, %v1293_v44  ;;  %v1294_v30 = vmax.f32 %v1114_v20, 0.0  ;;  %v1627_v62 = vld [vmem:[#allocation2 + $0x2b1] sm:$0xff]  ;;  %v1624_v48 = vld [vmem:[#allocation2 + $0x299] sm:$0xff]  ;;  %v1921_v44 = vpack.c.bf16 %v1842_v7, %v1841_v5  ;;  %v1844_v20 = vmax.f32 %v4950_v47, %v5057_v8 }
 0x1b0   : > { %1408 = vst.msk [vmem:[#allocation2 + $0x2d8] sm:$0xff] %vm199_vm0, %v1296_v63  ;;  %v1514_v29 = vld [vmem:[#allocation2 + $0x2a8] sm:$0xff]  ;;  %v5064_v24 = vmax.f32 %v1515_v61, %v1627_v62  ;;  %v1516_v0 = vld [vmem:[#allocation2 + $0x2b8] sm:$0xff]  ;;  %v5083_v55 = vmax.f32 %v1512_v40, %v1624_v48  ;;  %v5098_v62 = vmax.f32 %v1501_v42, %v1613_v21  ;;  %v1847_v40 = vmax.f32 %v5037_v4, %v5088_v46 }
 0x1b1   : > { %v1625_v53 = vld [vmem:[#allocation2 + $0x2a1] sm:$0xff]  ;;  %v1626_v2 = vld [vmem:[#allocation2 + $0x2a9] sm:$0xff]  ;;  %1406 = vst.msk [vmem:[#allocation2 + $0x2c8] sm:$0xff] %vm199_vm0, %v1294_v30  ;;  %v4067_v28 = vpop.f32.mrb[92].mxu0 }
 0x1b2   : > { %2682 = vmatmul.mubr.bf16.gmra.mrb[44].mxu1 %v3492_v45  ;;  %v5040_v34 = vmax.f32 %v1513_v41, %v1625_v53  ;;  %v5042_v49 = vmax.f32 %v1514_v29, %v1626_v2  ;;  %v1135_v59 = vadd.f32 %v4817_v57, %v4067_v28  ;;  %v1126_v6 = vpop.f32.mrb[93].mxu0  ;;  %v1859_v41 = vmax.f32 %v5055_v39, %v5064_v24  ;;  %v1506_v42 = vld [vmem:[#allocation2 + $0x268] sm:$0xff] }
 0x1b3   : > { %2689 = vmatprep.mubr.bf16.mxu1 %v4230_v18  ;;  %v1127_v12 = vadd.f32 %v4817_v57, %v1126_v6  ;;  %v4068_v22 = vpop.f32.mrb[94].mxu0  ;;  %v5100_v29 = vmax.f32 %v1502_v31, %v1614_v43  ;;  %v1922_v6 = vpack.c.bf16 %v1844_v20, %v1843_v36 }
 0x1b4   : > { %v1857_v23 = vmax.f32 %v5032_v56, %v5040_v34  ;;  %v1858_v19 = vmax.f32 %v5034_v60, %v5042_v49  ;;  %v1299_v15 = vmax.f32 %v1135_v59, 0.0  ;;  %v1138_v33 = vadd.f32 %v4817_v57, %v4068_v22  ;;  %v1129_v32 = vpop.f32.mrb[95].mxu0 }
 0x1b5   : > { %v1297_v17 = vmax.f32 %v1127_v12, 0.0  ;;  %v1130_v10 = vadd.f32 %v4817_v57, %v1129_v32  ;;  %v1519_v54 = vld [vmem:[#allocation2 + $0x2d0] sm:$0xff]  ;;  %v1846_v4 = vmax.f32 %v5029_v16, %v5100_v29  ;;  %v4236_v32 = vld [vmem:[%s5690_s3 + $0xc] ss:$28 sps:$4 sm:$0xff]  }
 0x1b6   : > { %v1929_v27 = vpack.c.bf16 %v1858_v19, %v1857_v23  ;;  %1411 = vst.msk [vmem:[#allocation2 + $0x2f0] sm:$0xff] %vm199_vm0, %v1299_v15  ;;  %v1300_v18 = vmax.f32 %v1138_v33, 0.0  ;;  %v1628_v58 = vld [vmem:[#allocation2 + $0x2b9] sm:$0xff]  ;;  %v1845_v15 = vmax.f32 %v5026_v13, %v5098_v62  ;;  %v1617_v13 = vld [vmem:[#allocation2 + $0x261] sm:$0xff] }
 0x1b7   : > { %v1517_v45 = vld [vmem:[#allocation2 + $0x2c0] sm:$0xff]  ;;  %1409 = vst.msk [vmem:[#allocation2 + $0x2e0] sm:$0xff] %vm199_vm0, %v1297_v17  ;;  %v1298_v51 = vmax.f32 %v1130_v10, 0.0  ;;  %v5091_v63 = vmax.f32 %v1516_v0, %v1628_v58  ;;  %v1631_v26 = vld [vmem:[#allocation2 + $0x2d1] sm:$0xff] }
 0x1b8   : > { %3835 = vmatprep.subr.bf16.mxu0 %v1929_v27  ;;  %1412 = vst.msk [vmem:[#allocation2 + $0x2f8] sm:$0xff] %vm199_vm0, %v1300_v18  ;;  %v1518_v30 = vld [vmem:[#allocation2 + $0x2c8] sm:$0xff]  ;;  %v5112_v7 = vmax.f32 %v1519_v54, %v1631_v26  ;;  %v1520_v33 = vld [vmem:[#allocation2 + $0x2d8] sm:$0xff]  ;;  %v1923_v58 = vpack.c.bf16 %v1846_v4, %v1845_v15  ;;  %v4237_v4 = vld [vmem:[%s5690_s3 + $0x44] ss:$28 sps:$4 sm:$0xff]  }
 0x1b9   : > { %3836 = vmatpush3.bf16.msra.mxu0 %v1921_v44  ;;  %v1629_v47 = vld [vmem:[#allocation2 + $0x2c1] sm:$0xff]  ;;  %v1630_v61 = vld [vmem:[#allocation2 + $0x2c9] sm:$0xff]  ;;  %1410 = vst.msk [vmem:[#allocation2 + $0x2e8] sm:$0xff] %vm199_vm0, %v1298_v51  ;;  %v4071_v53 = vpop.f32.mrb[96].mxu0  ;;  %v1860_v2 = vmax.f32 %v5083_v55, %v5091_v63  ;;  %v1508_v27 = vld [vmem:[#allocation2 + $0x278] sm:$0xff] }
 0x1ba   : > { %2690 = vmatmul.mubr.bf16.gmra.mrb[48].mxu1 %v3499_v35  ;;  %v5105_v28 = vmax.f32 %v1517_v45, %v1629_v47  ;;  %v5107_v3 = vmax.f32 %v1518_v30, %v1630_v61  ;;  %v1151_v5 = vadd.f32 %v4817_v57, %v4071_v53  ;;  %v1142_v59 = vpop.f32.mrb[97].mxu0  ;;  %v1619_v35 = vld [vmem:[#allocation2 + $0x271] sm:$0xff]  ;;  %v1863_v43 = vmax.f32 %v5064_v24, %v5112_v7  ;;  %v1620_v44 = vld [vmem:[#allocation2 + $0x279] sm:$0xff] }
 0x1bb   : > { %2697 = vmatprep.mubr.bf16.mxu1 %v4232_v11  ;;  %v1143_v48 = vadd.f32 %v4817_v57, %v1142_v59  ;;  %v4072_v12 = vpop.f32.mrb[98].mxu0  ;;  %v1930_v22 = vpack.c.bf16 %v1860_v2, %v1859_v41  ;;  %v1848_v11 = vmax.f32 %v5057_v8, %v5109_v52  ;;  %v5141_v41 = vmax.f32 %v1506_v42, %v1618_v38 }
 0x1bc   : > { %v1861_v23 = vmax.f32 %v5040_v34, %v5105_v28  ;;  %v1862_v19 = vmax.f32 %v5042_v49, %v5107_v3  ;;  %v1303_v25 = vmax.f32 %v1151_v5, 0.0  ;;  %v1154_v9 = vadd.f32 %v4817_v57, %v4072_v12  ;;  %v1145_v37 = vpop.f32.mrb[99].mxu0  ;;  %v1505_v34 = vld [vmem:[#allocation2 + $0x260] sm:$0xff] }
 0x1bd   : > { %v1301_v0 = vmax.f32 %v1143_v48, 0.0  ;;  %3837 = vmatprep.subr.bf16.mxu0 %v1930_v22  ;;  %v1146_v49 = vadd.f32 %v4817_v57, %v1145_v37  ;;  %v1523_v8 = vld [vmem:[#allocation2 + $0x2f0] sm:$0xff]  ;;  %v5139_v51 = vmax.f32 %v1505_v34, %v1617_v13  ;;  %v5143_v54 = vmax.f32 %v1507_v1, %v1619_v35 }
 0x1be   : > { %v1931_v36 = vpack.c.bf16 %v1862_v19, %v1861_v23  ;;  %1415 = vst.msk [vmem:[#allocation2 + $0x310] sm:$0xff] %vm199_vm0, %v1303_v25  ;;  %v1304_v16 = vmax.f32 %v1154_v9, 0.0  ;;  %3838 = vmatpush3.bf16.msra.mxu0 %v1922_v6  ;;  %v1632_v17 = vld [vmem:[#allocation2 + $0x2d9] sm:$0xff]  ;;  %v1924_v30 = vpack.c.bf16 %v1848_v11, %v1847_v40  ;;  %v5155_v59 = vmax.f32 %v1508_v27, %v1620_v44 }
 0x1bf   : > { %v1521_v10 = vld [vmem:[#allocation2 + $0x2e0] sm:$0xff]  ;;  %1413 = vst.msk [vmem:[#allocation2 + $0x300] sm:$0xff] %vm199_vm0, %v1301_v0  ;;  %v1302_v31 = vmax.f32 %v1146_v49, 0.0  ;;  %v5134_v21 = vmax.f32 %v1520_v33, %v1632_v17  ;;  %v1635_v18 = vld [vmem:[#allocation2 + $0x2f1] sm:$0xff]  ;;  %v1849_v22 = vmax.f32 %v5098_v62, %v5139_v51  ;;  %v1850_v23 = vmax.f32 %v5100_v29, %v5141_v41 }
 0x1c0   : > { %3839 = vmatprep.subr.bf16.mxu0 %v1931_v36  ;;  %1416 = vst.msk [vmem:[#allocation2 + $0x318] sm:$0xff] %vm199_vm0, %v1304_v16  ;;  %v1522_v20 = vld [vmem:[#allocation2 + $0x2e8] sm:$0xff]  ;;  %v5153_v5 = vmax.f32 %v1523_v8, %v1635_v18  ;;  %v1524_v19 = vld [vmem:[#allocation2 + $0x2f8] sm:$0xff]  ;;  %v1851_v29 = vmax.f32 %v5088_v46, %v5143_v54  ;;  %v1852_v15 = vmax.f32 %v5109_v52, %v5155_v59 }
 0x1c1   : > { %v1633_v45 = vld [vmem:[#allocation2 + $0x2e1] sm:$0xff]  ;;  %v1634_v14 = vld [vmem:[#allocation2 + $0x2e9] sm:$0xff]  ;;  %1414 = vst.msk [vmem:[#allocation2 + $0x308] sm:$0xff] %vm199_vm0, %v1302_v31  ;;  %v4075_v26 = vpop.f32.mrb[100].mxu0  ;;  %v1864_v24 = vmax.f32 %v5091_v63, %v5134_v21  ;;  %v1925_v36 = vpack.c.bf16 %v1850_v23, %v1849_v22  ;;  %v1856_v22 = vmax.f32 %v5155_v59, %v5083_v55 }
 0x1c2   : > { %2698 = vmatmul.mubr.bf16.gmra.mrb[52].mxu1 %v3506_v50  ;;  %v5148_v47 = vmax.f32 %v1521_v10, %v1633_v45  ;;  %v5150_v61 = vmax.f32 %v1522_v20, %v1634_v14  ;;  %v1167_v53 = vadd.f32 %v4817_v57, %v4075_v26  ;;  %v1158_v2 = vpop.f32.mrb[101].mxu0  ;;  %3840 = vmatpush3.bf16.msra.mxu0 %v1923_v58 }
 0x1c3   : > { %2738 = vmatprep.mubr.bf16.mxu1 %v4236_v32  ;;  %v1159_v6 = vadd.f32 %v4817_v57, %v1158_v2  ;;  %v1932_v50 = vpack.c.bf16 %v1864_v24, %v1863_v43  ;;  %v4076_v48 = vpop.f32.mrb[102].mxu0  ;;  %v1867_v35 = vmax.f32 %v5112_v7, %v5153_v5  ;;  %v1926_v17 = vpack.c.bf16 %v1852_v15, %v1851_v29 }
 0x1c4   : > { %v1865_v63 = vmax.f32 %v5105_v28, %v5148_v47  ;;  %v1866_v40 = vmax.f32 %v5107_v3, %v5150_v61  ;;  %v1307_v12 = vmax.f32 %v1167_v53, 0.0  ;;  %v1170_v1 = vadd.f32 %v4817_v57, %v4076_v48  ;;  %v1161_v25 = vpop.f32.mrb[103].mxu0  ;;  %v4234_v28 = vld [vmem:[%s5690_s3 + $0x8] ss:$28 sps:$4 sm:$0xff]  }
 0x1c5   : > { %v1305_v9 = vmax.f32 %v1159_v6, 0.0  ;;  %3841 = vmatprep.subr.bf16.mxu0 %v1932_v50  ;;  %v1162_v3 = vadd.f32 %v4817_v57, %v1161_v25  ;;  %v1527_v0 = vld [vmem:[#allocation2 + $0x310] sm:$0xff]  ;;  %v1853_v58 = vmax.f32 %v5139_v51, %v5032_v56  ;;  %v1854_v20 = vmax.f32 %v5141_v41, %v5034_v60  ;;  %v4240_v56 = vld [vmem:[%s5690_s3 + $0x7c] ss:$28 sps:$4 sm:$0xff]  }
 0x1c6   : > { %v1933_v37 = vpack.c.bf16 %v1866_v40, %v1865_v63  ;;  %1419 = vst.msk [vmem:[#allocation2 + $0x330] sm:$0xff] %vm199_vm0, %v1307_v12  ;;  %3842 = vmatpush3.bf16.msra.mxu0 %v1924_v30  ;;  %v1636_v62 = vld [vmem:[#allocation2 + $0x2f9] sm:$0xff]  ;;  %v1308_v32 = vmax.f32 %v1170_v1, 0.0  ;;  %v1855_v12 = vmax.f32 %v5143_v54, %v5055_v39 }
 0x1c7   : > { %v1525_v33 = vld [vmem:[#allocation2 + $0x300] sm:$0xff]  ;;  %1417 = vst.msk [vmem:[#allocation2 + $0x320] sm:$0xff] %vm199_vm0, %v1305_v9  ;;  %v5180_v34 = vmax.f32 %v1524_v19, %v1636_v62  ;;  %v1639_v49 = vld [vmem:[#allocation2 + $0x311] sm:$0xff]  ;;  %v1306_v46 = vmax.f32 %v1162_v3, 0.0  ;;  %v1927_v48 = vpack.c.bf16 %v1854_v20, %v1853_v58 }
 0x1c8   : > { %3843 = vmatprep.subr.bf16.mxu0 %v1933_v37  ;;  %v1526_v11 = vld [vmem:[#allocation2 + $0x308] sm:$0xff]  ;;  %1420 = vst.msk [vmem:[#allocation2 + $0x338] sm:$0xff] %vm199_vm0, %v1308_v32  ;;  %v5192_v10 = vmax.f32 %v1527_v0, %v1639_v49  ;;  %v1528_v45 = vld [vmem:[#allocation2 + $0x318] sm:$0xff]  ;;  %v1928_v15 = vpack.c.bf16 %v1856_v22, %v1855_v12  ;;  %v4243_v0 = vld [vmem:[%s5690_s3 + $0xb4] ss:$28 sps:$4 sm:$0xff]  }
 0x1c9   : > { %v1637_v52 = vld [vmem:[#allocation2 + $0x301] sm:$0xff]  ;;  %v1638_v42 = vld [vmem:[#allocation2 + $0x309] sm:$0xff]  ;;  %v1868_v13 = vmax.f32 %v5134_v21, %v5180_v34  ;;  %1418 = vst.msk [vmem:[#allocation2 + $0x328] sm:$0xff] %vm199_vm0, %v1306_v46  ;;  %v4079_v7 = vpop.f32.mrb[104].mxu0 }
 0x1ca   : > { %2739 = vmatmul.mubr.bf16.vlgmr.msra.gmra.mrb[56].mxu1 %v4234_v28  ;;  %v5187_v38 = vmax.f32 %v1525_v33, %v1637_v52  ;;  %v5189_v16 = vmax.f32 %v1526_v11, %v1638_v42  ;;  %3844 = vmatpush3.bf16.msra.mxu0 %v1925_v36  ;;  %v1183_v27 = vadd.f32 %v4817_v57, %v4079_v7  ;;  %v1174_v31 = vpop.f32.mrb[105].mxu0  ;;  %v4239_v30 = vld [vmem:[%s5690_s3 + $0x40] ss:$28 sps:$4 sm:$0xff]   ;;  %v4252_v49 = vld [vmem:[%s5690_s3 + $0x10] ss:$28 sps:$4 sm:$0xff]  }
 0x1cb   : > { %2746 = vmatprep.mubr.bf16.mxu1 %v4237_v4  ;;  %v1934_v43 = vpack.c.bf16 %v1868_v13, %v1867_v35  ;;  %v1175_v18 = vadd.f32 %v4817_v57, %v1174_v31  ;;  %v4080_v44 = vpop.f32.mrb[106].mxu0  ;;  %v1871_v6 = vmax.f32 %v5153_v5, %v5192_v10  ;;  %v4242_v4 = vld [vmem:[%s5690_s3 + $0x78] ss:$28 sps:$4 sm:$0xff]   ;;  %v4331_v36 = vld [vmem:[%s5689_s2] ss:$0 sm:$0xff] }
 0x1cc   : > { %v1869_v8 = vmax.f32 %v5148_v47, %v5187_v38  ;;  %v1870_v21 = vmax.f32 %v5150_v61, %v5189_v16  ;;  %v1311_v14 = vmax.f32 %v1183_v27, 0.0  ;;  %v1186_v26 = vadd.f32 %v4817_v57, %v4080_v44  ;;  %v1177_v24 = vpop.f32.mrb[107].mxu0 }
 0x1cd   : > { %3845 = vmatprep.subr.bf16.mxu0 %v1934_v43  ;;  %v1309_v61 = vmax.f32 %v1175_v18, 0.0  ;;  %v1178_v53 = vadd.f32 %v4817_v57, %v1177_v24  ;;  %v1531_v63 = vld [vmem:[#allocation2 + $0x330] sm:$0xff] }
 0x1ce   : > { %v1935_v47 = vpack.c.bf16 %v1870_v21, %v1869_v8  ;;  %3846 = vmatpush3.bf16.msra.mxu0 %v1926_v17  ;;  %v1640_v2 = vld [vmem:[#allocation2 + $0x319] sm:$0xff]  ;;  %1423 = vst.msk [vmem:[#allocation2 + $0x350] sm:$0xff] %vm199_vm0, %v1311_v14  ;;  %v1312_v60 = vmax.f32 %v1186_v26, 0.0  ;;  %v4245_v26 = vld [vmem:[%s5690_s3 + $0xb0] ss:$28 sps:$4 sm:$0xff]  }
 0x1cf   : > { %v1529_v51 = vld [vmem:[#allocation2 + $0x320] sm:$0xff]  ;;  %v5213_v41 = vmax.f32 %v1528_v45, %v1640_v2  ;;  %1421 = vst.msk [vmem:[#allocation2 + $0x340] sm:$0xff] %vm199_vm0, %v1309_v61  ;;  %v1310_v50 = vmax.f32 %v1178_v53, 0.0  ;;  %v1643_v40 = vld [vmem:[#allocation2 + $0x331] sm:$0xff] }
 0x1d0   : > { %3847 = vmatprep.subr.bf16.mxu0 %v1935_v47  ;;  %1424 = vst.msk [vmem:[#allocation2 + $0x358] sm:$0xff] %vm199_vm0, %v1312_v60  ;;  %v1530_v23 = vld [vmem:[#allocation2 + $0x328] sm:$0xff]  ;;  %v5227_v55 = vmax.f32 %v1531_v63, %v1643_v40  ;;  %v1532_v35 = vld [vmem:[#allocation2 + $0x338] sm:$0xff]  ;;  %v4264_v2 = vld [vmem:[%s5690_s3 + $0x84] ss:$28 sps:$4 sm:$0xff]  }
 0x1d1   : > { %v1641_v19 = vld [vmem:[#allocation2 + $0x321] sm:$0xff]  ;;  %v1642_v1 = vld [vmem:[#allocation2 + $0x329] sm:$0xff]  ;;  %v1872_v5 = vmax.f32 %v5180_v34, %v5213_v41  ;;  %1422 = vst.msk [vmem:[#allocation2 + $0x348] sm:$0xff] %vm199_vm0, %v1310_v50  ;;  %v4083_v25 = vpop.f32.mrb[108].mxu0 }
 0x1d2   : > { %2747 = vmatmul.mubr.bf16.gmra.mrb[60].mxu1 %v4239_v30  ;;  %v1753_v9 = vmax.f32 %v1529_v51, %v1641_v19  ;;  %v1754_v28 = vmax.f32 %v1530_v23, %v1642_v1  ;;  %3848 = vmatpush3.bf16.msra.mxu0 %v1927_v48  ;;  %v1199_v39 = vadd.f32 %v4817_v57, %v4083_v25  ;;  %v1190_v54 = vpop.f32.mrb[109].mxu0  ;;  %v4246_v30 = vld [vmem:[%s5690_s3 + $0xec] ss:$28 sps:$4 sm:$0xff]   ;;  %v1765_v40 = vld [vmem:[#allocation2 + $0x380] sm:$0xff] }
 0x1d3   : > { %2754 = vmatprep.mubr.bf16.mxu1 %v4240_v56  ;;  %v1936_v59 = vpack.c.bf16 %v1872_v5, %v1871_v6  ;;  %v1191_v37 = vadd.f32 %v4817_v57, %v1190_v54  ;;  %v4084_v3 = vpop.f32.mrb[110].mxu0  ;;  %v1875_v17 = vmax.f32 %v5192_v10, %v5227_v55  ;;  %v4260_v47 = vld [vmem:[%s5690_s3 + $0x48] ss:$28 sps:$4 sm:$0xff]  }
 0x1d4   : > { %v1873_v62 = vmax.f32 %v5187_v38, %v1753_v9  ;;  %v1874_v29 = vmax.f32 %v5189_v16, %v1754_v28  ;;  %v1315_v33 = vmax.f32 %v1199_v39, 0.0  ;;  %v1202_v32 = vadd.f32 %v4817_v57, %v4084_v3  ;;  %v1193_v34 = vpop.f32.mrb[111].mxu0  ;;  %v4258_v57 = vld [vmem:[%s5690_s3 + $0x4c] ss:$28 sps:$4 sm:$0xff]  }
 0x1d5   : > { %3849 = vmatprep.subr.bf16.mxu0 %v1936_v59  ;;  %v1313_v46 = vmax.f32 %v1191_v37, 0.0  ;;  %v1194_v11 = vadd.f32 %v4331_v36, %v1193_v34  ;;  %v1535_v27 = vld [vmem:[#allocation2 + $0x350] sm:$0xff]  ;;  %v4248_v37 = vld [vmem:[%s5690_s3 + $0xe8] ss:$28 sps:$4 sm:$0xff]  }
 0x1d6   : > { %v1937_v52 = vpack.c.bf16 %v1874_v29, %v1873_v62  ;;  %3850 = vmatpush3.bf16.msra.mxu0 %v1928_v15  ;;  %1427 = vst.msk [vmem:[#allocation2 + $0x370] sm:$0xff] %vm199_vm0, %v1315_v33  ;;  %v1316_v42 = vmax.f32 %v1202_v32, 0.0  ;;  %v1644_v13 = vld [vmem:[#allocation2 + $0x339] sm:$0xff]  ;;  %v1770_v39 = vld [vmem:[#allocation2 + $0x389] sm:$0xff]  ;;  %v1771_v33 = vld [vmem:[#allocation2 + $0x391] sm:$0xff] }
 0x1d7   : > { %v1533_v38 = vld [vmem:[#allocation2 + $0x340] sm:$0xff]  ;;  %1425 = vst.msk [vmem:[#allocation2 + $0x360] sm:$0xff] %vm199_vm0, %v1313_v46  ;;  %v1314_v16 = vmax.f32 %v1194_v11, 0.0  ;;  %v1756_v7 = vmax.f32 %v1532_v35, %v1644_v13  ;;  %v1647_v31 = vld [vmem:[#allocation2 + $0x351] sm:$0xff] }
 0x1d8   : > { %4085 = vmatprep.subr.bf16.mxu1 %v1937_v52  ;;  %1428 = vst.msk [vmem:[#allocation2 + $0x378] sm:$0xff] %vm199_vm0, %v1316_v42  ;;  %v1534_v43 = vld [vmem:[#allocation2 + $0x348] sm:$0xff]  ;;  %v1759_v14 = vmax.f32 %v1535_v27, %v1647_v31  ;;  %v1536_v24 = vld [vmem:[#allocation2 + $0x358] sm:$0xff]  ;;  %v4274_v31 = vld [vmem:[%s5690_s3 + $0xf4] ss:$28 sps:$4 sm:$0xff]  }
 0x1d9   : > { %4086 = vmatpush3.bf16.msra.mxu1 %v1937_v52  ;;  %v1645_v8 = vld [vmem:[#allocation2 + $0x341] sm:$0xff]  ;;  %v1646_v21 = vld [vmem:[#allocation2 + $0x349] sm:$0xff]  ;;  %2884 = vmatmul.mubr.bf16.vlgmr.msra.gmra.mrb[112].mxu0 %v4252_v49  ;;  %1426 = vst.msk [vmem:[#allocation2 + $0x368] sm:$0xff] %vm199_vm0, %v1314_v16  ;;  %v1876_v18 = vmax.f32 %v5213_v41, %v1756_v7  ;;  %v1768_v35 = vld [vmem:[#allocation2 + $0x398] sm:$0xff] }
 0x1da   : > { %2755 = vmatmul.mubr.bf16.gmra.mrb[64].mxu1 %v4242_v4  ;;  %v1757_v44 = vmax.f32 %v1533_v38, %v1645_v8  ;;  %v1758_v58 = vmax.f32 %v1534_v43, %v1646_v21  ;;  %2891 = vmatprep.mubr.bf16.mxu0 %v4258_v57  ;;  %v1879_v41 = vmax.f32 %v5227_v55, %v1759_v14  ;;  %v1767_v4 = vld [vmem:[#allocation2 + $0x390] sm:$0xff]  ;;  %v4266_v32 = vld [vmem:[%s5690_s3 + $0x80] ss:$28 sps:$4 sm:$0xff]  }
 0x1db   : > { %2762 = vmatprep.mubr.bf16.mxu1 %v4243_v0  ;;  %v1938_v20 = vpack.c.bf16 %v1876_v18, %v1875_v17  ;;  %v1772_v0 = vld [vmem:[#allocation2 + $0x399] sm:$0xff]  ;;  %v1775_v36 = vmax.f32 %v1767_v4, %v1771_v33  ;;  %v4276_v21 = vld [vmem:[%s5690_s3 + $0xf0] ss:$28 sps:$4 sm:$0xff]  }
 0x1dc   : > { %v1877_v10 = vmax.f32 %v1753_v9, %v1757_v44  ;;  %v1878_v45 = vmax.f32 %v1754_v28, %v1758_v58  ;;  %v1766_v9 = vld [vmem:[#allocation2 + $0x388] sm:$0xff]  ;;  %v4249_v49 = vld [vmem:[%s5690_s3 + $0x124] ss:$28 sps:$4 sm:$0xff]   ;;  %v4269_v46 = vld [vmem:[%s5690_s3 + $0xbc] ss:$28 sps:$4 sm:$0xff]   ;;  %v1776_v42 = vmax.f32 %v1768_v35, %v1772_v0 }
 0x1dd   : > { %4087 = vmatprep.subr.bf16.mxu1 %v1938_v20  ;;  %v1539_v53 = vld [vmem:[#allocation2 + $0x370] sm:$0xff]  ;;  %v1769_v28 = vld [vmem:[#allocation2 + $0x381] sm:$0xff]  ;;  %v1774_v15 = vmax.f32 %v1766_v9, %v1770_v39  ;;  %v4255_v27 = vld [vmem:[%s5690_s3 + $0x15c] ss:$28 sps:$4 sm:$0xff]  }
 0x1de   : > { %v1939_v61 = vpack.c.bf16 %v1878_v45, %v1877_v10  ;;  %4088 = vmatpush3.bf16.msra.mxu1 %v1938_v20  ;;  %v1648_v56 = vld [vmem:[#allocation2 + $0x359] sm:$0xff]  ;;  %v1773_v29 = vmax.f32 %v1765_v40, %v1769_v28  ;;  %v4261_v18 = vld [vmem:[%s5690_s3 + $0x194] ss:$28 sps:$4 sm:$0xff]   ;;  %v4282_v20 = vld [vmem:[%s5690_s3 + $0x128] ss:$28 sps:$4 sm:$0xff]  }
 0x1df   : > { %v1537_v60 = vld [vmem:[#allocation2 + $0x360] sm:$0xff]  ;;  %v1760_v51 = vmax.f32 %v1536_v24, %v1648_v56  ;;  %v1540_v6 = vld [vmem:[#allocation2 + $0x378] sm:$0xff]  ;;  %v4267_v10 = vld [vmem:[%s5690_s3 + $0x1cc] ss:$28 sps:$4 sm:$0xff]  }
 0x1e0   : > { %4089 = vmatprep.subr.bf16.mxu1 %v1939_v61  ;;  %v1651_v50 = vld [vmem:[#allocation2 + $0x371] sm:$0xff]  ;;  %v1652_v63 = vld [vmem:[#allocation2 + $0x379] sm:$0xff]  ;;  %v1538_v48 = vld [vmem:[#allocation2 + $0x368] sm:$0xff] }
 0x1e1   : > { %v1649_v12 = vld [vmem:[#allocation2 + $0x361] sm:$0xff]  ;;  %v1650_v22 = vld [vmem:[#allocation2 + $0x369] sm:$0xff]  ;;  %v1763_v23 = vmax.f32 %v1539_v53, %v1651_v50  ;;  %v1764_v19 = vmax.f32 %v1540_v6, %v1652_v63  ;;  %2892 = vmatmul.mubr.bf16.gmra.mrb[116].mxu0 %v4260_v47  ;;  %v1880_v1 = vmax.f32 %v1756_v7, %v1760_v51  ;;  %v4271_v17 = vld [vmem:[%s5690_s3 + $0xb8] ss:$28 sps:$4 sm:$0xff]  }
 0x1e2   : > { %2763 = vmatmul.mubr.bf16.gmra.mrb[68].mxu1 %v4245_v26  ;;  %v1761_v5 = vmax.f32 %v1537_v60, %v1649_v12  ;;  %v1762_v25 = vmax.f32 %v1538_v48, %v1650_v22  ;;  %2899 = vmatprep.mubr.bf16.mxu0 %v4264_v2  ;;  %v4251_v7 = vld [vmem:[%s5690_s3 + $0x120] ss:$28 sps:$4 sm:$0xff]   ;;  %v4257_v8 = vld [vmem:[%s5690_s3 + $0x158] ss:$28 sps:$4 sm:$0xff]   ;;  %v2014_v26 = vld [vmem:[%s5690_s3 + $0x1e4] sm:$0xff] }
 0x1e3   : > { %2770 = vmatprep.mubr.bf16.mxu1 %v4246_v30  ;;  %4090 = vmatpush3.bf16.msra.mxu1 %v1939_v61  ;;  %v1940_v54 = vpack.c.bf16 %v1880_v1, %v1879_v41  ;;  %v1883_v3 = vmax.f32 %v1759_v14, %v1763_v23  ;;  %v1884_v62 = vmax.f32 %v1760_v51, %v1764_v19  ;;  %v4286_v45 = vld [vmem:[%s5690_s3 + $0x164] ss:$28 sps:$4 sm:$0xff]   ;;  %v2010_v14 = vld [vmem:[%s5690_s3 + $0x1c8] sm:$0xff]  ;;  %v4292_v61 = vld [vmem:[%s5690_s3 + $0x19c] ss:$28 sps:$4 sm:$0xff]  }
 0x1e4   : > { %v1881_v55 = vmax.f32 %v1757_v44, %v1761_v5  ;;  %v1882_v59 = vmax.f32 %v1758_v58, %v1762_v25  ;;  %v1885_v52 = vmax.f32 %v1761_v5, %v1773_v29  ;;  %v1886_v57 = vmax.f32 %v1762_v25, %v1774_v15  ;;  %v4280_v44 = vld [vmem:[%s5690_s3 + $0x12c] ss:$28 sps:$4 sm:$0xff]   ;;  %v4288_v30 = vld [vmem:[%s5690_s3 + $0x160] ss:$28 sps:$4 sm:$0xff]   ;;  %v4294_v60 = vld [vmem:[%s5690_s3 + $0x198] ss:$28 sps:$4 sm:$0xff]  }
 0x1e5   : > { %4091 = vmatprep.subr.bf16.mxu1 %v1940_v54  ;;  %v1942_v11 = vpack.c.bf16 %v1884_v62, %v1883_v3  ;;  %v1887_v38 = vmax.f32 %v1763_v23, %v1775_v36  ;;  %v1888_v16 = vmax.f32 %v1764_v19, %v1776_v42  ;;  %v4263_v58 = vld [vmem:[%s5690_s3 + $0x190] ss:$28 sps:$4 sm:$0xff]   ;;  %v3473_v24 = vcombine.low %v2010_v14, %v2014_v26  ;;  %v4272_v47 = vld [vmem:[%s5690_s3 + $0x204] ss:$28 sps:$4 sm:$0xff]   ;;  %v4277_v51 = vld [vmem:[%s5690_s3 + $0x23c] ss:$28 sps:$4 sm:$0xff]  }
 0x1e6   : > { %v1941_v34 = vpack.c.bf16 %v1882_v59, %v1881_v55  ;;  %v1943_v13 = vpack.c.bf16 %v1886_v57, %v1885_v52  ;;  %v2018_v53 = vld [vmem:[%s5690_s3 + $0x200] sm:$0xff]  ;;  %v4298_v41 = vld [vmem:[%s5690_s3 + $0x1d4] ss:$28 sps:$4 sm:$0xff]   ;;  %v4303_v40 = vld [vmem:[%s5690_s3 + $0x20c] ss:$28 sps:$4 sm:$0xff]  }
 0x1e7   : > { %4092 = vmatpush3.bf16.msra.mxu1 %v1940_v54  ;;  %v1944_v43 = vpack.c.bf16 %v1888_v16, %v1887_v38  ;;  %v2022_v2 = vld [vmem:[%s5690_s3 + $0x21c] sm:$0xff]  ;;  %v4279_v6 = vld [vmem:[%s5690_s3 + $0x238] ss:$28 sps:$4 sm:$0xff]   ;;  %v4300_v50 = vld [vmem:[%s5690_s3 + $0x1d0] ss:$28 sps:$4 sm:$0xff]  }
 0x1e8   : > { %4093 = vmatprep.subr.bf16.mxu1 %v1941_v34  ;;  %v3480_v56 = vcombine.low %v2018_v53, %v2022_v2  ;;  %v4283_v63 = vld [vmem:[%s5690_s3 + $0x274] ss:$28 sps:$4 sm:$0xff]   ;;  %v4305_v12 = vld [vmem:[%s5690_s3 + $0x208] ss:$28 sps:$4 sm:$0xff]   ;;  %v4310_v1 = vld [vmem:[%s5690_s3 + $0x240] ss:$28 sps:$4 sm:$0xff]  }
 0x1e9   : > { %2900 = vmatmul.mubr.bf16.gmra.mrb[120].mxu0 %v4266_v32  ;;  %v4285_v48 = vld [vmem:[%s5690_s3 + $0x270] ss:$28 sps:$4 sm:$0xff]   ;;  %v4308_v23 = vld [vmem:[%s5690_s3 + $0x244] ss:$28 sps:$4 sm:$0xff]   ;;  %v4313_v25 = vld [vmem:[%s5690_s3 + $0x27c] ss:$28 sps:$4 sm:$0xff]  }
 0x1ea   : > { %2771 = vmatmul.mubr.bf16.gmra.mrb[72].mxu1 %v4248_v37  ;;  %2907 = vmatprep.mubr.bf16.mxu0 %v4269_v46  ;;  %v4289_v22 = vld [vmem:[%s5690_s3 + $0x2ac] ss:$28 sps:$4 sm:$0xff]   ;;  %v4295_v5 = vld [vmem:[%s5690_s3 + $0x2e4] ss:$28 sps:$4 sm:$0xff]   ;;  %v4315_v39 = vld [vmem:[%s5690_s3 + $0x278] ss:$28 sps:$4 sm:$0xff]  }
 0x1eb   : > { %2778 = vmatprep.mubr.bf16.mxu1 %v4249_v49  ;;  %4094 = vmatpush3.bf16.msra.mxu1 %v1941_v34  ;;  %v4291_v19 = vld [vmem:[%s5690_s3 + $0x2a8] ss:$28 sps:$4 sm:$0xff]   ;;  %v4297_v28 = vld [vmem:[%s5690_s3 + $0x2e0] ss:$28 sps:$4 sm:$0xff]   ;;  %v4301_v55 = vld [vmem:[%s5690_s3 + $0x18] ss:$28 sps:$4 sm:$0xff]  }
 0x1ec   : > { %4095 = vmatprep.subr.bf16.mxu1 %v1942_v11  ;;  %v4318_v59 = vld [vmem:[%s5690_s3 + $0x2b4] ss:$28 sps:$4 sm:$0xff]   ;;  %v4306_v34 = vld [vmem:[%s5690_s3 + $0x88] ss:$28 sps:$4 sm:$0xff]   ;;  %v4307_v52 = vld [vmem:[%s5690_s3 + $0xc0] ss:$28 sps:$4 sm:$0xff]  }
 0x1ed   : > { %v4302_v4 = vld [vmem:[%s5690_s3 + $0x50] ss:$28 sps:$4 sm:$0xff]   ;;  %v4325_v57 = vld [vmem:[%s5690_s3 + $0x2e8] ss:$28 sps:$4 sm:$0xff]   ;;  %v4321_v14 = vld [vmem:[%s5690_s3 + $0x1d8] ss:$28 sps:$4 sm:$0xff]  }
 0x1ee   : > { %v4320_v33 = vld [vmem:[%s5690_s3 + $0x2b0] ss:$28 sps:$4 sm:$0xff]  }
 0x1ef   : > { %4096 = vmatpush3.bf16.msra.mxu1 %v1942_v11  ;;  %v4323_v35 = vld [vmem:[%s5690_s3 + $0x2ec] ss:$28 sps:$4 sm:$0xff]  }
 0x1f0   : > { %4097 = vmatprep.subr.bf16.mxu1 %v1943_v13  ;;  %v4322_v53 = vld [vmem:[%s5690_s3 + $0x210] ss:$28 sps:$4 sm:$0xff]  }
 0x1f1   : > { %2908 = vmatmul.mubr.bf16.gmra.mrb[124].mxu0 %v4271_v17 }
 0x1f2   : > { %2779 = vmatmul.mubr.bf16.gmra.mrb[76].mxu1 %v4251_v7  ;;  %2915 = vmatprep.mubr.bf16.mxu0 %v4274_v31  ;;  %v4312_v31 = vld [vmem:[%s5690_s3 + $0x130] ss:$28 sps:$4 sm:$0xff]  }
 0x1f3   : > { %2786 = vmatprep.mubr.bf16.mxu1 %v4255_v27  ;;  %4098 = vmatpush3.bf16.msra.mxu1 %v1943_v13  ;;  %v4311_v13 = vld [vmem:[%s5690_s3 + $0xf8] ss:$28 sps:$4 sm:$0xff]  }
 0x1f4   : > { %4099 = vmatprep.subr.bf16.mxu1 %v1944_v43 }
 0x1f7   : > { %4100 = vmatpush3.bf16.msra.mxu1 %v1944_v43 }
 0x1f9   : > { %2916 = vmatmul.mubr.bf16.gmra.mrb[128].mxu0 %v4276_v21 }
 0x1fa   : > { %2787 = vmatmul.mubr.bf16.gmra.mrb[80].mxu1 %v4257_v8  ;;  %2923 = vmatprep.mubr.bf16.mxu0 %v4280_v44  ;;  %v4316_v8 = vld [vmem:[%s5690_s3 + $0x168] ss:$28 sps:$4 sm:$0xff]  }
 0x1fb   : > { %2794 = vmatprep.mubr.bf16.mxu1 %v4261_v18 }
 0x201   : > { %2924 = vmatmul.mubr.bf16.gmra.mrb[132].mxu0 %v4282_v20 }
 0x202   : > { %2795 = vmatmul.mubr.bf16.gmra.mrb[84].mxu1 %v4263_v58  ;;  %2931 = vmatprep.mubr.bf16.mxu0 %v4286_v45 }
 0x203   : > { %2802 = vmatprep.mubr.bf16.mxu1 %v4267_v10  ;;  %v4317_v10 = vld [vmem:[%s5690_s3 + $0x1a0] ss:$28 sps:$4 sm:$0xff]  }
 0x209   : > { %2932 = vmatmul.mubr.bf16.gmra.mrb[136].mxu0 %v4288_v30 }
 0x20a   : > { %2803 = vmatmul.mubr.bf16.gmra.mrb[88].mxu1 %v3473_v24  ;;  %2939 = vmatprep.mubr.bf16.mxu0 %v4292_v61 }
 0x20b   : > { %2810 = vmatprep.mubr.bf16.mxu1 %v4272_v47 }
 0x211   : > { %2940 = vmatmul.mubr.bf16.gmra.mrb[140].mxu0 %v4294_v60 }
 0x212   : > { %2811 = vmatmul.mubr.bf16.gmra.mrb[92].mxu1 %v3480_v56  ;;  %2947 = vmatprep.mubr.bf16.mxu0 %v4298_v41  ;;  %v4326_v56 = vld [vmem:[%s5690_s3 + $0x248] ss:$28 sps:$4 sm:$0xff]  }
 0x213   : > { %2818 = vmatprep.mubr.bf16.mxu1 %v4277_v51 }
 0x219   : > { %2948 = vmatmul.mubr.bf16.gmra.mrb[144].mxu0 %v4300_v50 }
 0x21a   : > { %2819 = vmatmul.mubr.bf16.gmra.mrb[96].mxu1 %v4279_v6  ;;  %2955 = vmatprep.mubr.bf16.mxu0 %v4303_v40 }
 0x21b   : > { %2826 = vmatprep.mubr.bf16.mxu1 %v4283_v63  ;;  %v4327_v63 = vld [vmem:[%s5690_s3 + $0x280] ss:$28 sps:$4 sm:$0xff]  }
 0x221   : > { %2956 = vmatmul.mubr.bf16.gmra.mrb[148].mxu0 %v4305_v12 }
 0x222   : > { %2827 = vmatmul.mubr.bf16.gmra.mrb[100].mxu1 %v4285_v48  ;;  %2963 = vmatprep.mubr.bf16.mxu0 %v4308_v23  ;;  %v4328_v48 = vld [vmem:[%s5690_s3 + $0x2b8] ss:$28 sps:$4 sm:$0xff]  }
 0x223   : > { %2834 = vmatprep.mubr.bf16.mxu1 %v4289_v22 }
 0x229   : > { %2964 = vmatmul.mubr.bf16.gmra.mrb[152].mxu0 %v4310_v1 }
 0x22a   : > { %2835 = vmatmul.mubr.bf16.gmra.mrb[104].mxu1 %v4291_v19  ;;  %2971 = vmatprep.mubr.bf16.mxu0 %v4313_v25 }
 0x22b   : > { %2842 = vmatprep.mubr.bf16.mxu1 %v4295_v5  ;;  %v4329_v5 = vld [vmem:[%s5690_s3 + $0x2f0] ss:$28 sps:$4 sm:$0xff]  }
 0x22c   : > { %v3651_v9 = vpop.f32.mrb[0].mxu1 }
 0x22d   : > { %v3652_v54 = vpop.f32.mrb[1].mxu1 }
 0x22e   : > { %v5394_v37 = vadd.f32 %v3652_v54, %v3651_v9  ;;  %v3654_v3 = vpop.f32.mrb[2].mxu1 }
 0x22f   : > { %v3655_v62 = vpop.f32.mrb[3].mxu1 }
 0x230   : > { %v5396_v29 = vadd.f32 %v3655_v62, %v3654_v3 }
 0x231   : > { %2972 = vmatmul.mubr.bf16.gmra.mrb[156].mxu0 %v4315_v39 }
 0x232   : > { %2843 = vmatmul.mubr.bf16.gmra.mrb[108].mxu1 %v4297_v28  ;;  %2979 = vmatprep.mubr.bf16.mxu0 %v4318_v59 }
 0x233   : > { %4101 = vmatprep.mubr.bf16.mxu1 %v4301_v55 }
 0x234   : > { %v3657_v15 = vpop.f32.mrb[4].mxu1 }
 0x235   : > { %v3658_v32 = vpop.f32.mrb[5].mxu1 }
 0x236   : > { %v5410_v0 = vadd.f32 %v3658_v32, %v3657_v15  ;;  %v3660_v49 = vpop.f32.mrb[6].mxu1 }
 0x237   : > { %v3661_v46 = vpop.f32.mrb[7].mxu1 }
 0x238   : > { %v5412_v36 = vadd.f32 %v3661_v46, %v3660_v49 }
 0x239   : > { %2980 = vmatmul.mubr.bf16.gmra.mrb[160].mxu0 %v4320_v33 }
 0x23a   : > { %4102 = vmatmul.mubr.bf16.vlgmr.msra.gmra.mrb[112].mxu1 %v4302_v4  ;;  %2987 = vmatprep.mubr.bf16.mxu0 %v4323_v35 }
 0x23b   : > { %4105 = vmatprep.mubr.bf16.mxu1 %v4306_v34 }
 0x23c   : > { %v3663_v11 = vpop.f32.mrb[8].mxu1 }
 0x23d   : > { %v3664_v42 = vpop.f32.mrb[9].mxu1 }
 0x23e   : > { %v5423_v38 = vadd.f32 %v3664_v42, %v3663_v11  ;;  %v3666_v16 = vpop.f32.mrb[10].mxu1 }
 0x23f   : > { %v3667_v7 = vpop.f32.mrb[11].mxu1 }
 0x240   : > { %v5425_v17 = vadd.f32 %v3667_v7, %v3666_v16 }
 0x241   : > { %2988 = vmatmul.mubr.bf16.gmra.mrb[164].mxu0 %v4325_v57 }
 0x242   : > { %4106 = vmatmul.mubr.bf16.gmra.mrb[116].mxu1 %v4307_v52 }
 0x243   : > { %4109 = vmatprep.mubr.bf16.mxu1 %v4311_v13 }
 0x244   : > { %v3669_v27 = vpop.f32.mrb[12].mxu1 }
 0x245   : > { %v3670_v43 = vpop.f32.mrb[13].mxu1 }
 0x246   : > { %v5433_v21 = vadd.f32 %v3670_v43, %v3669_v27  ;;  %v3672_v18 = vpop.f32.mrb[14].mxu1 }
 0x247   : > { %v3673_v44 = vpop.f32.mrb[15].mxu1 }
 0x248   : > { %v5435_v58 = vadd.f32 %v3673_v44, %v3672_v18 }
 0x24a   : > { %4110 = vmatmul.mubr.bf16.gmra.mrb[120].mxu1 %v4312_v31 }
 0x24b   : > { %4113 = vmatprep.mubr.bf16.mxu1 %v4316_v8 }
 0x24d   : > { %v3675_v20 = vpop.f32.mrb[16].mxu1 }
 0x24e   : > { %v3676_v45 = vpop.f32.mrb[17].mxu1 }
 0x24f   : > { %v5443_v26 = vadd.f32 %v3676_v45, %v3675_v20  ;;  %v3678_v24 = vpop.f32.mrb[18].mxu1 }
 0x250   : > { %v3679_v30 = vpop.f32.mrb[19].mxu1 }
 0x251   : > { %v5445_v47 = vadd.f32 %v3679_v30, %v3678_v24 }
 0x252   : > { %4114 = vmatmul.mubr.bf16.gmra.mrb[124].mxu1 %v4317_v10 }
 0x253   : > { %4117 = vmatprep.mubr.bf16.mxu1 %v4321_v14  ;;  %v4341_v14 = vmov 0  }
 0x254   : > { %3142 = vst.msk [vmem:[%s5494_s6] sm:$0xf] %vm3141_vm1, %v4341_v14  ;;  %3143 = vst.msk [vmem:[%s5494_s6 + $0x4] sm:$0xf] %vm3141_vm1, %v4341_v14 }
 0x255   : > { %v3681_v61 = vpop.f32.mrb[20].mxu1  ;;  %3284 = vst.msk [vmem:[%s5494_s6 + $0x78] sm:$0xf] %vm3141_vm1, %v4341_v14  ;;  %3285 = vst.msk [vmem:[%s5494_s6 + $0x7c] sm:$0xf] %vm3141_vm1, %v4341_v14 }
 0x256   : > { %v3682_v2 = vpop.f32.mrb[21].mxu1  ;;  %3286 = vst.msk [vmem:[%s5494_s6 + $0x80] sm:$0xf] %vm3141_vm1, %v4341_v14  ;;  %3287 = vst.msk [vmem:[%s5494_s6 + $0x84] sm:$0xf] %vm3141_vm1, %v4341_v14 }
 0x257   : > { %v5453_v60 = vadd.f32 %v3682_v2, %v3681_v61  ;;  %v3684_v51 = vpop.f32.mrb[22].mxu1 }
 0x258   : > { %v3685_v41 = vpop.f32.mrb[23].mxu1 }
 0x259   : > { %v5455_v6 = vadd.f32 %v3685_v41, %v3684_v51 }
 0x25a   : > { %4118 = vmatmul.mubr.bf16.gmra.mrb[128].mxu1 %v4322_v53 }
 0x25b   : > { %4121 = vmatprep.mubr.bf16.mxu1 %v4326_v56 }
 0x25d   : > { %v3687_v50 = vpop.f32.mrb[24].mxu1 }
 0x25e   : > { %v3688_v40 = vpop.f32.mrb[25].mxu1 }
 0x25f   : > { %v5463_v12 = vadd.f32 %v3688_v40, %v3687_v50  ;;  %v3690_v22 = vpop.f32.mrb[26].mxu1 }
 0x260   : > { %v3691_v23 = vpop.f32.mrb[27].mxu1 }
 0x261   : > { %v5465_v19 = vadd.f32 %v3691_v23, %v3690_v22 }
 0x262   : > { %4122 = vmatmul.mubr.bf16.gmra.mrb[132].mxu1 %v4327_v63 }
 0x263   : > { %4125 = vmatprep.mubr.bf16.mxu1 %v4328_v48 }
 0x265   : > { %v3693_v1 = vpop.f32.mrb[28].mxu1 }
 0x266   : > { %v3694_v25 = vpop.f32.mrb[29].mxu1 }
 0x267   : > { %v5470_v9 = vadd.f32 %v3694_v25, %v3693_v1  ;;  %v3696_v28 = vpop.f32.mrb[30].mxu1 }
 0x268   : > { %v3697_v39 = vpop.f32.mrb[31].mxu1 }
 0x269   : > { %v5472_v54 = vadd.f32 %v3697_v39, %v3696_v28 }
 0x26a   : > { %4126 = vmatmul.mubr.bf16.gmra.mrb[136].mxu1 %v4329_v5 }
 0x26d   : > { %v3699_v55 = vpop.f32.mrb[32].mxu1 }
 0x26e   : > { %v3700_v59 = vpop.f32.mrb[33].mxu1 }
 0x26f   : > { %v5474_v3 = vadd.f32 %v3700_v59, %v3699_v55  ;;  %v3702_v62 = vpop.f32.mrb[34].mxu1 }
 0x270   : > { %v3703_v15 = vpop.f32.mrb[35].mxu1 }
 0x271   : > { %v5476_v4 = vadd.f32 %v3703_v15, %v3702_v62 }
 0x275   : > { %v3705_v33 = vpop.f32.mrb[36].mxu1 }
 0x276   : > { %v3706_v32 = vpop.f32.mrb[37].mxu1 }
 0x277   : > { %v5478_v34 = vadd.f32 %v3706_v32, %v3705_v33  ;;  %v3708_v35 = vpop.f32.mrb[38].mxu1 }
 0x278   : > { %v3709_v49 = vpop.f32.mrb[39].mxu1 }
 0x279   : > { %v5480_v46 = vadd.f32 %v3709_v49, %v3708_v35 }
 0x27d   : > { %v3711_v11 = vpop.f32.mrb[40].mxu1 }
 0x27e   : > { %v3712_v52 = vpop.f32.mrb[41].mxu1 }
 0x27f   : > { %v5482_v57 = vadd.f32 %v3712_v52, %v3711_v11  ;;  %v3714_v42 = vpop.f32.mrb[42].mxu1 }
 0x280   : > { %v3715_v13 = vpop.f32.mrb[43].mxu1 }
 0x281   : > { %v5484_v16 = vadd.f32 %v3715_v13, %v3714_v42 }
 0x285   : > { %v3717_v7 = vpop.f32.mrb[44].mxu1 }
 0x286   : > { %v3718_v27 = vpop.f32.mrb[45].mxu1 }
 0x287   : > { %v5486_v31 = vadd.f32 %v3718_v27, %v3717_v7  ;;  %v3720_v43 = vpop.f32.mrb[46].mxu1 }
 0x288   : > { %v3721_v8 = vpop.f32.mrb[47].mxu1 }
 0x289   : > { %v5488_v18 = vadd.f32 %v3721_v8, %v3720_v43 }
 0x28d   : > { %v3723_v44 = vpop.f32.mrb[48].mxu1 }
 0x28e   : > { %v3724_v20 = vpop.f32.mrb[49].mxu1 }
 0x28f   : > { %v5496_v10 = vadd.f32 %v3724_v20, %v3723_v44  ;;  %v3726_v45 = vpop.f32.mrb[50].mxu1 }
 0x290   : > { %v3727_v24 = vpop.f32.mrb[51].mxu1 }
 0x291   : > { %v5510_v30 = vadd.f32 %v3727_v24, %v3726_v45 }
 0x295   : > { %v3729_v61 = vpop.f32.mrb[52].mxu1 }
 0x296   : > { %v3730_v53 = vpop.f32.mrb[53].mxu1 }
 0x297   : > { %v5512_v2 = vadd.f32 %v3730_v53, %v3729_v61  ;;  %v3732_v56 = vpop.f32.mrb[54].mxu1 }
 0x298   : > { %v3733_v51 = vpop.f32.mrb[55].mxu1 }
 0x299   : > { %v5514_v41 = vadd.f32 %v3733_v51, %v3732_v56 }
 0x29d   : > { %v3751_v50 = vpop.f32.mrb[56].mxu1 }
 0x29e   : > { %v3752_v63 = vpop.f32.mrb[57].mxu1 }
 0x29f   : > { %v3753_v40 = vadd.f32 %v3752_v63, %v3751_v50  ;;  %v3754_v48 = vpop.f32.mrb[58].mxu1 }
 0x2a0   : > { %v3755_v22 = vpop.f32.mrb[59].mxu1 }
 0x2a1   : > { %v2741_v23 = vadd.f32 %v3753_v40, %v5394_v37  ;;  %v3756_v1 = vadd.f32 %v3755_v22, %v3754_v48 }
 0x2a3   : > { %v2744_v5 = vadd.f32 %v3756_v1, %v5396_v29 }
 0x2a5   : > { %v3757_v25 = vpop.f32.mrb[60].mxu1 }
 0x2a6   : > { %v3758_v28 = vpop.f32.mrb[61].mxu1 }
 0x2a7   : > { %v3759_v39 = vadd.f32 %v3758_v28, %v3757_v25  ;;  %v3760_v55 = vpop.f32.mrb[62].mxu1 }
 0x2a8   : > { %v3761_v59 = vpop.f32.mrb[63].mxu1 }
 0x2a9   : > { %v2749_v62 = vadd.f32 %v3759_v39, %v5410_v0  ;;  %v3762_v15 = vadd.f32 %v3761_v59, %v3760_v55 }
 0x2ab   : > { %v2752_v33 = vadd.f32 %v3762_v15, %v5412_v36 }
 0x2ac   : > { %v3851_v32 = vpop.f32.mrb[112].mxu0 }
 0x2ad   : > { %v3763_v35 = vpop.f32.mrb[64].mxu1  ;;  %v3852_v49 = vpop.f32.mrb[113].mxu0 }
 0x2ae   : > { %v3764_v11 = vpop.f32.mrb[65].mxu1  ;;  %v3853_v52 = vadd.f32 %v3852_v49, %v3851_v32  ;;  %v3854_v42 = vpop.f32.mrb[114].mxu0 }
 0x2af   : > { %v3765_v37 = vadd.f32 %v3764_v11, %v3763_v35  ;;  %v3766_v13 = vpop.f32.mrb[66].mxu1  ;;  %v3855_v7 = vpop.f32.mrb[115].mxu0 }
 0x2b0   : > { %v3767_v29 = vpop.f32.mrb[67].mxu1  ;;  %v3856_v27 = vadd.f32 %v3855_v7, %v3854_v42  ;;  %v5521_v44 = vadd.f32 %v3853_v52, %v2741_v23 }
 0x2b1   : > { %v2757_v43 = vadd.f32 %v3765_v37, %v5423_v38  ;;  %v3768_v8 = vadd.f32 %v3767_v29, %v3766_v13 }
 0x2b2   : > { %v5524_v20 = vadd.f32 %v3856_v27, %v2744_v5 }
 0x2b3   : > { %v2760_v0 = vadd.f32 %v3768_v8, %v5425_v17 }
 0x2b4   : > { %v3857_v36 = vpop.f32.mrb[116].mxu0 }
 0x2b5   : > { %v3769_v45 = vpop.f32.mrb[68].mxu1  ;;  %v3858_v14 = vpop.f32.mrb[117].mxu0 }
 0x2b6   : > { %v3770_v24 = vpop.f32.mrb[69].mxu1  ;;  %v3859_v61 = vadd.f32 %v3858_v14, %v3857_v36  ;;  %v3860_v53 = vpop.f32.mrb[118].mxu0 }
 0x2b7   : > { %v3771_v56 = vadd.f32 %v3770_v24, %v3769_v45  ;;  %v3772_v51 = vpop.f32.mrb[70].mxu1  ;;  %v3861_v50 = vpop.f32.mrb[119].mxu0 }
 0x2b8   : > { %v3773_v63 = vpop.f32.mrb[71].mxu1  ;;  %v3862_v40 = vadd.f32 %v3861_v50, %v3860_v53  ;;  %v5527_v22 = vadd.f32 %v3859_v61, %v2749_v62 }
 0x2b9   : > { %v2765_v38 = vadd.f32 %v3771_v56, %v5433_v21  ;;  %v3774_v48 = vadd.f32 %v3773_v63, %v3772_v51 }
 0x2ba   : > { %v5530_v23 = vadd.f32 %v3862_v40, %v2752_v33 }
 0x2bb   : > { %v2768_v17 = vadd.f32 %v3774_v48, %v5435_v58 }
 0x2bc   : > { %v3863_v1 = vpop.f32.mrb[120].mxu0 }
 0x2bd   : > { %v3775_v5 = vpop.f32.mrb[72].mxu1  ;;  %v3864_v25 = vpop.f32.mrb[121].mxu0 }
 0x2be   : > { %v3776_v28 = vpop.f32.mrb[73].mxu1  ;;  %v3865_v39 = vadd.f32 %v3864_v25, %v3863_v1  ;;  %v3866_v55 = vpop.f32.mrb[122].mxu0 }
 0x2bf   : > { %v3777_v59 = vadd.f32 %v3776_v28, %v3775_v5  ;;  %v3778_v15 = vpop.f32.mrb[74].mxu1  ;;  %v3867_v32 = vpop.f32.mrb[123].mxu0 }
 0x2c0   : > { %v3779_v35 = vpop.f32.mrb[75].mxu1  ;;  %v3868_v49 = vadd.f32 %v3867_v32, %v3866_v55  ;;  %v5533_v62 = vadd.f32 %v3865_v39, %v2757_v43 }
 0x2c1   : > { %v2773_v21 = vadd.f32 %v3777_v59, %v5443_v26  ;;  %v3780_v11 = vadd.f32 %v3779_v35, %v3778_v15 }
 0x2c2   : > { %v5536_v33 = vadd.f32 %v3868_v49, %v2760_v0 }
 0x2c3   : > { %v2776_v58 = vadd.f32 %v3780_v11, %v5445_v47 }
 0x2c4   : > { %v3869_v52 = vpop.f32.mrb[124].mxu0 }
 0x2c5   : > { %v3781_v42 = vpop.f32.mrb[76].mxu1  ;;  %v3870_v37 = vpop.f32.mrb[125].mxu0 }
 0x2c6   : > { %v3782_v13 = vpop.f32.mrb[77].mxu1  ;;  %v3871_v7 = vadd.f32 %v3870_v37, %v3869_v52  ;;  %v3872_v29 = vpop.f32.mrb[126].mxu0 }
 0x2c7   : > { %v3783_v27 = vadd.f32 %v3782_v13, %v3781_v42  ;;  %v3784_v8 = vpop.f32.mrb[78].mxu1  ;;  %v3873_v36 = vpop.f32.mrb[127].mxu0 }
 0x2c8   : > { %v3785_v45 = vpop.f32.mrb[79].mxu1  ;;  %v3874_v14 = vadd.f32 %v3873_v36, %v3872_v29  ;;  %v5539_v43 = vadd.f32 %v3871_v7, %v2765_v38 }
 0x2c9   : > { %v2781_v26 = vadd.f32 %v3783_v27, %v5453_v60  ;;  %v3786_v24 = vadd.f32 %v3785_v45, %v3784_v8 }
 0x2ca   : > { %v5542_v0 = vadd.f32 %v3874_v14, %v2768_v17 }
 0x2cb   : > { %v2784_v47 = vadd.f32 %v3786_v24, %v5455_v6 }
 0x2cc   : > { %v3875_v61 = vpop.f32.mrb[128].mxu0 }
 0x2cd   : > { %v3787_v53 = vpop.f32.mrb[80].mxu1  ;;  %v3876_v56 = vpop.f32.mrb[129].mxu0 }
 0x2ce   : > { %v3788_v51 = vpop.f32.mrb[81].mxu1  ;;  %v3877_v50 = vadd.f32 %v3876_v56, %v3875_v61  ;;  %v3878_v63 = vpop.f32.mrb[130].mxu0 }
 0x2cf   : > { %v3789_v40 = vadd.f32 %v3788_v51, %v3787_v53  ;;  %v3790_v48 = vpop.f32.mrb[82].mxu1  ;;  %v3879_v1 = vpop.f32.mrb[131].mxu0 }
 0x2d0   : > { %v3791_v5 = vpop.f32.mrb[83].mxu1  ;;  %v3880_v25 = vadd.f32 %v3879_v1, %v3878_v63  ;;  %v5545_v38 = vadd.f32 %v3877_v50, %v2773_v21 }
 0x2d1   : > { %v2789_v60 = vadd.f32 %v3789_v40, %v5463_v12  ;;  %v3792_v28 = vadd.f32 %v3791_v5, %v3790_v48 }
 0x2d2   : > { %v5548_v17 = vadd.f32 %v3880_v25, %v2776_v58 }
 0x2d3   : > { %v2792_v6 = vadd.f32 %v3792_v28, %v5465_v19 }
 0x2d4   : > { %v3881_v39 = vpop.f32.mrb[132].mxu0 }
 0x2d5   : > { %v3793_v55 = vpop.f32.mrb[84].mxu1  ;;  %v3882_v59 = vpop.f32.mrb[133].mxu0 }
 0x2d6   : > { %v3794_v15 = vpop.f32.mrb[85].mxu1  ;;  %v3883_v32 = vadd.f32 %v3882_v59, %v3881_v39  ;;  %v3884_v35 = vpop.f32.mrb[134].mxu0 }
 0x2d7   : > { %v3795_v49 = vadd.f32 %v3794_v15, %v3793_v55  ;;  %v3796_v11 = vpop.f32.mrb[86].mxu1  ;;  %v3885_v52 = vpop.f32.mrb[135].mxu0 }
 0x2d8   : > { %v3797_v42 = vpop.f32.mrb[87].mxu1  ;;  %v3886_v12 = vadd.f32 %v3885_v52, %v3884_v35  ;;  %v5551_v21 = vadd.f32 %v3883_v32, %v2781_v26 }
 0x2d9   : > { %v2797_v37 = vadd.f32 %v3795_v49, %v5470_v9  ;;  %v3798_v13 = vadd.f32 %v3797_v42, %v3796_v11 }
 0x2da   : > { %v5554_v58 = vadd.f32 %v3886_v12, %v2784_v47 }
 0x2db   : > { %v2800_v19 = vadd.f32 %v3798_v13, %v5472_v54 }
 0x2dc   : > { %v3887_v29 = vpop.f32.mrb[136].mxu0 }
 0x2dd   : > { %v3799_v7 = vpop.f32.mrb[88].mxu1  ;;  %v3888_v8 = vpop.f32.mrb[137].mxu0 }
 0x2de   : > { %v3800_v27 = vpop.f32.mrb[89].mxu1  ;;  %v3889_v14 = vadd.f32 %v3888_v8, %v3887_v29  ;;  %v3890_v24 = vpop.f32.mrb[138].mxu0 }
 0x2df   : > { %v3801_v36 = vadd.f32 %v3800_v27, %v3799_v7  ;;  %v3802_v45 = vpop.f32.mrb[90].mxu1  ;;  %v3891_v53 = vpop.f32.mrb[139].mxu0 }
 0x2e0   : > { %v3803_v61 = vpop.f32.mrb[91].mxu1  ;;  %v3892_v51 = vadd.f32 %v3891_v53, %v3890_v24  ;;  %v5557_v26 = vadd.f32 %v3889_v14, %v2789_v60 }
 0x2e1   : > { %v2805_v9 = vadd.f32 %v3801_v36, %v5474_v3  ;;  %v3804_v56 = vadd.f32 %v3803_v61, %v3802_v45 }
 0x2e2   : > { %v5560_v47 = vadd.f32 %v3892_v51, %v2792_v6 }
 0x2e3   : > { %v2808_v54 = vadd.f32 %v3804_v56, %v5476_v4 }
 0x2e4   : > { %v3893_v63 = vpop.f32.mrb[140].mxu0 }
 0x2e5   : > { %v3805_v50 = vpop.f32.mrb[92].mxu1  ;;  %v3894_v48 = vpop.f32.mrb[141].mxu0 }
 0x2e6   : > { %v3806_v40 = vpop.f32.mrb[93].mxu1  ;;  %v3895_v25 = vadd.f32 %v3894_v48, %v3893_v63  ;;  %v3896_v28 = vpop.f32.mrb[142].mxu0 }
 0x2e7   : > { %v3807_v1 = vadd.f32 %v3806_v40, %v3805_v50  ;;  %v3808_v5 = vpop.f32.mrb[94].mxu1  ;;  %v3897_v55 = vpop.f32.mrb[143].mxu0 }
 0x2e8   : > { %v3809_v39 = vpop.f32.mrb[95].mxu1  ;;  %v3898_v15 = vadd.f32 %v3897_v55, %v3896_v28  ;;  %v5563_v60 = vadd.f32 %v3895_v25, %v2797_v37 }
 0x2e9   : > { %v2813_v3 = vadd.f32 %v3807_v1, %v5478_v34  ;;  %v3810_v59 = vadd.f32 %v3809_v39, %v3808_v5 }
 0x2ea   : > { %v5566_v6 = vadd.f32 %v3898_v15, %v2800_v19 }
 0x2eb   : > { %v2816_v4 = vadd.f32 %v3810_v59, %v5480_v46 }
 0x2ec   : > { %v3899_v35 = vpop.f32.mrb[144].mxu0 }
 0x2ed   : > { %v3811_v32 = vpop.f32.mrb[96].mxu1  ;;  %v3900_v11 = vpop.f32.mrb[145].mxu0 }
 0x2ee   : > { %v3812_v49 = vpop.f32.mrb[97].mxu1  ;;  %v3901_v12 = vadd.f32 %v3900_v11, %v3899_v35  ;;  %v3902_v13 = vpop.f32.mrb[146].mxu0 }
 0x2ef   : > { %v3813_v52 = vadd.f32 %v3812_v49, %v3811_v32  ;;  %v3814_v42 = vpop.f32.mrb[98].mxu1  ;;  %v3903_v29 = vpop.f32.mrb[147].mxu0 }
 0x2f0   : > { %v3815_v7 = vpop.f32.mrb[99].mxu1  ;;  %v3904_v8 = vadd.f32 %v3903_v29, %v3902_v13  ;;  %v5569_v37 = vadd.f32 %v3901_v12, %v2805_v9 }
 0x2f1   : > { %v2821_v34 = vadd.f32 %v3813_v52, %v5482_v57  ;;  %v3816_v27 = vadd.f32 %v3815_v7, %v3814_v42 }
 0x2f2   : > { %v5572_v19 = vadd.f32 %v3904_v8, %v2808_v54 }
 0x2f3   : > { %v2824_v46 = vadd.f32 %v3816_v27, %v5484_v16 }
 0x2f4   : > { %v3905_v45 = vpop.f32.mrb[148].mxu0 }
 0x2f5   : > { %v3817_v36 = vpop.f32.mrb[100].mxu1  ;;  %v3906_v24 = vpop.f32.mrb[149].mxu0 }
 0x2f6   : > { %v3818_v14 = vpop.f32.mrb[101].mxu1  ;;  %v3907_v56 = vadd.f32 %v3906_v24, %v3905_v45  ;;  %v3908_v51 = vpop.f32.mrb[150].mxu0 }
 0x2f7   : > { %v3819_v61 = vadd.f32 %v3818_v14, %v3817_v36  ;;  %v3820_v53 = vpop.f32.mrb[102].mxu1  ;;  %v3909_v63 = vpop.f32.mrb[151].mxu0 }
 0x2f8   : > { %v3821_v50 = vpop.f32.mrb[103].mxu1  ;;  %v3910_v48 = vadd.f32 %v3909_v63, %v3908_v51  ;;  %v5575_v9 = vadd.f32 %v3907_v56, %v2813_v3 }
 0x2f9   : > { %v2829_v57 = vadd.f32 %v3819_v61, %v5486_v31  ;;  %v3822_v40 = vadd.f32 %v3821_v50, %v3820_v53 }
 0x2fa   : > { %v5578_v54 = vadd.f32 %v3910_v48, %v2816_v4 }
 0x2fb   : > { %v2832_v16 = vadd.f32 %v3822_v40, %v5488_v18 }
 0x2fc   : > { %v3911_v5 = vpop.f32.mrb[152].mxu0 }
 0x2fd   : > { %v3823_v1 = vpop.f32.mrb[104].mxu1  ;;  %v3912_v28 = vpop.f32.mrb[153].mxu0 }
 0x2fe   : > { %v3824_v25 = vpop.f32.mrb[105].mxu1  ;;  %v3913_v59 = vadd.f32 %v3912_v28, %v3911_v5  ;;  %v3914_v15 = vpop.f32.mrb[154].mxu0 }
 0x2ff   : > { %v3825_v39 = vadd.f32 %v3824_v25, %v3823_v1  ;;  %v3826_v55 = vpop.f32.mrb[106].mxu1  ;;  %v3915_v35 = vpop.f32.mrb[155].mxu0 }
 0x300   : > { %v3827_v32 = vpop.f32.mrb[107].mxu1  ;;  %v3916_v11 = vadd.f32 %v3915_v35, %v3914_v15  ;;  %v5581_v3 = vadd.f32 %v3913_v59, %v2821_v34 }
 0x301   : > { %v2837_v31 = vadd.f32 %v3825_v39, %v5496_v10  ;;  %v3828_v49 = vadd.f32 %v3827_v32, %v3826_v55 }
 0x302   : > { %v5584_v4 = vadd.f32 %v3916_v11, %v2824_v46 }
 0x303   : > { %v2840_v18 = vadd.f32 %v3828_v49, %v5510_v30 }
 0x304   : > { %v3917_v42 = vpop.f32.mrb[156].mxu0 }
 0x305   : > { %v3829_v52 = vpop.f32.mrb[108].mxu1  ;;  %v3918_v13 = vpop.f32.mrb[157].mxu0 }
 0x306   : > { %v3830_v12 = vpop.f32.mrb[109].mxu1  ;;  %v3919_v27 = vadd.f32 %v3918_v13, %v3917_v42  ;;  %v3920_v8 = vpop.f32.mrb[158].mxu0 }
 0x307   : > { %v3831_v7 = vadd.f32 %v3830_v12, %v3829_v52  ;;  %v3832_v29 = vpop.f32.mrb[110].mxu1  ;;  %v3921_v45 = vpop.f32.mrb[159].mxu0 }
 0x308   : > { %v3833_v36 = vpop.f32.mrb[111].mxu1  ;;  %v3922_v24 = vadd.f32 %v3921_v45, %v3920_v8  ;;  %v5587_v34 = vadd.f32 %v3919_v27, %v2829_v57 }
 0x309   : > { %v2845_v10 = vadd.f32 %v3831_v7, %v5512_v2  ;;  %v3834_v14 = vadd.f32 %v3833_v36, %v3832_v29 }
 0x30a   : > { %v5590_v46 = vadd.f32 %v3922_v24, %v2832_v16 }
 0x30b   : > { %v2848_v30 = vadd.f32 %v3834_v14, %v5514_v41 }
 0x30c   : > { %v3923_v53 = vpop.f32.mrb[160].mxu0 }
 0x30d   : > { %v4103_v61 = vpop.f32.mrb[112].mxu1  ;;  %v3924_v50 = vpop.f32.mrb[161].mxu0 }
 0x30e   : > { %v3039_v56 = vadd.f32 %v4103_v61, %v5527_v22  ;;  %v3030_v51 = vpop.f32.mrb[113].mxu1  ;;  %v3925_v2 = vadd.f32 %v3924_v50, %v3923_v53  ;;  %v3926_v57 = vpop.f32.mrb[162].mxu0 }
 0x30f   : > { %v3031_v63 = vadd.f32 %v3030_v51, %v5521_v44  ;;  %v4104_v40 = vpop.f32.mrb[114].mxu1  ;;  %v3927_v1 = vpop.f32.mrb[163].mxu0 }
 0x310   : > { %v3545_v48 = vpack.c.bf16 %v3039_v56, %v3039_v56  ;;  %v3042_v41 = vadd.f32 %v4104_v40, %v5530_v23  ;;  %v3033_v16 = vpop.f32.mrb[115].mxu1  ;;  %v3928_v28 = vadd.f32 %v3927_v1, %v3926_v57  ;;  %v5596_v22 = vadd.f32 %v3925_v2, %v2837_v31 }
 0x311   : > { %v3543_v5 = vpack.c.bf16 %v3031_v63, %v3031_v63  ;;  %v3034_v25 = vadd.f32 %v3033_v16, %v5524_v20 }
 0x312   : > { %3258 = vst.msk [vmem:[%s5494_s6 + $0x10] sm:$0xf] %vm3141_vm1, %v3545_v48  ;;  %v3546_v39 = vpack.c.bf16 %v3042_v41, %v3042_v41  ;;  %v5602_v55 = vadd.f32 %v3928_v28, %v2840_v18 }
 0x313   : > { %3256 = vst.msk [vmem:[%s5494_s6 + $0x8] sm:$0xf] %vm3141_vm1, %v3543_v5  ;;  %v3544_v44 = vpack.c.bf16 %v3034_v25, %v3034_v25 }
 0x314   : > { %3259 = vst.msk [vmem:[%s5494_s6 + $0x14] sm:$0xf] %vm3141_vm1, %v3546_v39  ;;  %v3929_v59 = vpop.f32.mrb[164].mxu0 }
 0x315   : > { %3257 = vst.msk [vmem:[%s5494_s6 + $0xc] sm:$0xf] %vm3141_vm1, %v3544_v44  ;;  %v4107_v23 = vpop.f32.mrb[116].mxu1  ;;  %v3930_v32 = vpop.f32.mrb[165].mxu0 }
 0x316   : > { %v3055_v20 = vadd.f32 %v4107_v23, %v5539_v43  ;;  %v3046_v15 = vpop.f32.mrb[117].mxu1  ;;  %v3931_v49 = vadd.f32 %v3930_v32, %v3929_v59  ;;  %v3932_v11 = vpop.f32.mrb[166].mxu0 }
 0x317   : > { %v3047_v35 = vadd.f32 %v3046_v15, %v5533_v62  ;;  %v4108_v31 = vpop.f32.mrb[118].mxu1  ;;  %v3933_v12 = vpop.f32.mrb[167].mxu0 }
 0x318   : > { %v3549_v18 = vpack.c.bf16 %v3055_v20, %v3055_v20  ;;  %v3058_v52 = vadd.f32 %v4108_v31, %v5542_v0  ;;  %v3049_v42 = vpop.f32.mrb[119].mxu1  ;;  %v3934_v29 = vadd.f32 %v3933_v12, %v3932_v11  ;;  %v5612_v43 = vadd.f32 %v3931_v49, %v2845_v10 }
 0x319   : > { %v3547_v13 = vpack.c.bf16 %v3047_v35, %v3047_v35  ;;  %v3050_v7 = vadd.f32 %v3049_v42, %v5536_v33 }
 0x31a   : > { %3262 = vst.msk [vmem:[%s5494_s6 + $0x20] sm:$0xf] %vm3141_vm1, %v3549_v18  ;;  %v3550_v27 = vpack.c.bf16 %v3058_v52, %v3058_v52  ;;  %v5618_v8 = vadd.f32 %v3934_v29, %v2848_v30 }
 0x31b   : > { %3260 = vst.msk [vmem:[%s5494_s6 + $0x18] sm:$0xf] %vm3141_vm1, %v3547_v13  ;;  %v3548_v62 = vpack.c.bf16 %v3050_v7, %v3050_v7 }
 0x31c   : > { %3263 = vst.msk [vmem:[%s5494_s6 + $0x24] sm:$0xf] %vm3141_vm1, %v3550_v27 }
 0x31d   : > { %3261 = vst.msk [vmem:[%s5494_s6 + $0x1c] sm:$0xf] %vm3141_vm1, %v3548_v62  ;;  %v4111_v33 = vpop.f32.mrb[120].mxu1 }
 0x31e   : > { %v3071_v0 = vadd.f32 %v4111_v33, %v5551_v21  ;;  %v3062_v36 = vpop.f32.mrb[121].mxu1 }
 0x31f   : > { %v3063_v45 = vadd.f32 %v3062_v36, %v5545_v38  ;;  %v4112_v10 = vpop.f32.mrb[122].mxu1 }
 0x320   : > { %v3553_v14 = vpack.c.bf16 %v3071_v0, %v3071_v0  ;;  %v3074_v24 = vadd.f32 %v4112_v10, %v5554_v58  ;;  %v3065_v61 = vpop.f32.mrb[123].mxu1 }
 0x321   : > { %v3551_v53 = vpack.c.bf16 %v3063_v45, %v3063_v45  ;;  %v3066_v30 = vadd.f32 %v3065_v61, %v5548_v17 }
 0x322   : > { %3266 = vst.msk [vmem:[%s5494_s6 + $0x30] sm:$0xf] %vm3141_vm1, %v3553_v14  ;;  %v3554_v56 = vpack.c.bf16 %v3074_v24, %v3074_v24 }
 0x323   : > { %3264 = vst.msk [vmem:[%s5494_s6 + $0x28] sm:$0xf] %vm3141_vm1, %v3551_v53  ;;  %v3552_v51 = vpack.c.bf16 %v3066_v30, %v3066_v30 }
 0x324   : > { %3267 = vst.msk [vmem:[%s5494_s6 + $0x34] sm:$0xf] %vm3141_vm1, %v3554_v56 }
 0x325   : > { %3265 = vst.msk [vmem:[%s5494_s6 + $0x2c] sm:$0xf] %vm3141_vm1, %v3552_v51  ;;  %v4115_v38 = vpop.f32.mrb[124].mxu1 }
 0x326   : > { %v3087_v21 = vadd.f32 %v4115_v38, %v5563_v60  ;;  %v3078_v58 = vpop.f32.mrb[125].mxu1 }
 0x327   : > { %v3079_v17 = vadd.f32 %v3078_v58, %v5557_v26  ;;  %v4116_v50 = vpop.f32.mrb[126].mxu1 }
 0x328   : > { %v3557_v63 = vpack.c.bf16 %v3087_v21, %v3087_v21  ;;  %v3090_v40 = vadd.f32 %v4116_v50, %v5566_v6  ;;  %v3081_v2 = vpop.f32.mrb[127].mxu1 }
 0x329   : > { %v3555_v57 = vpack.c.bf16 %v3079_v17, %v3079_v17  ;;  %v3082_v48 = vadd.f32 %v3081_v2, %v5560_v47 }
 0x32a   : > { %3270 = vst.msk [vmem:[%s5494_s6 + $0x40] sm:$0xf] %vm3141_vm1, %v3557_v63  ;;  %v3558_v41 = vpack.c.bf16 %v3090_v40, %v3090_v40 }
 0x32b   : > { %3268 = vst.msk [vmem:[%s5494_s6 + $0x38] sm:$0xf] %vm3141_vm1, %v3555_v57  ;;  %v3556_v16 = vpack.c.bf16 %v3082_v48, %v3082_v48 }
 0x32c   : > { %3271 = vst.msk [vmem:[%s5494_s6 + $0x44] sm:$0xf] %vm3141_vm1, %v3558_v41 }
 0x32d   : > { %3269 = vst.msk [vmem:[%s5494_s6 + $0x3c] sm:$0xf] %vm3141_vm1, %v3556_v16  ;;  %v4119_v26 = vpop.f32.mrb[128].mxu1 }
 0x32e   : > { %v3103_v60 = vadd.f32 %v4119_v26, %v5575_v9  ;;  %v3094_v6 = vpop.f32.mrb[129].mxu1 }
 0x32f   : > { %v3095_v47 = vadd.f32 %v3094_v6, %v5569_v37  ;;  %v4120_v1 = vpop.f32.mrb[130].mxu1 }
 0x330   : > { %v3561_v5 = vpack.c.bf16 %v3103_v60, %v3103_v60  ;;  %v3106_v25 = vadd.f32 %v4120_v1, %v5578_v54  ;;  %v3097_v28 = vpop.f32.mrb[131].mxu1 }
 0x331   : > { %v3559_v39 = vpack.c.bf16 %v3095_v47, %v3095_v47  ;;  %v3098_v44 = vadd.f32 %v3097_v28, %v5572_v19 }
 0x332   : > { %3274 = vst.msk [vmem:[%s5494_s6 + $0x50] sm:$0xf] %vm3141_vm1, %v3561_v5  ;;  %v3562_v23 = vpack.c.bf16 %v3106_v25, %v3106_v25 }
 0x333   : > { %3272 = vst.msk [vmem:[%s5494_s6 + $0x48] sm:$0xf] %vm3141_vm1, %v3559_v39  ;;  %v3560_v59 = vpack.c.bf16 %v3098_v44, %v3098_v44 }
 0x334   : > { %3275 = vst.msk [vmem:[%s5494_s6 + $0x54] sm:$0xf] %vm3141_vm1, %v3562_v23 }
 0x335   : > { %3273 = vst.msk [vmem:[%s5494_s6 + $0x4c] sm:$0xf] %vm3141_vm1, %v3560_v59  ;;  %v4123_v37 = vpop.f32.mrb[132].mxu1 }
 0x336   : > { %v3119_v9 = vadd.f32 %v4123_v37, %v5587_v34  ;;  %v3110_v54 = vpop.f32.mrb[133].mxu1 }
 0x337   : > { %v3111_v19 = vadd.f32 %v3110_v54, %v5581_v3  ;;  %v4124_v20 = vpop.f32.mrb[134].mxu1 }
 0x338   : > { %v3565_v15 = vpack.c.bf16 %v3119_v9, %v3119_v9  ;;  %v3122_v32 = vadd.f32 %v4124_v20, %v5590_v46  ;;  %v3113_v35 = vpop.f32.mrb[135].mxu1 }
 0x339   : > { %v3563_v31 = vpack.c.bf16 %v3111_v19, %v3111_v19  ;;  %v3114_v49 = vadd.f32 %v3113_v35, %v5584_v4 }
 0x33a   : > { %3278 = vst.msk [vmem:[%s5494_s6 + $0x60] sm:$0xf] %vm3141_vm1, %v3565_v15  ;;  %v3566_v11 = vpack.c.bf16 %v3122_v32, %v3122_v32 }
 0x33b   : > { %3276 = vst.msk [vmem:[%s5494_s6 + $0x58] sm:$0xf] %vm3141_vm1, %v3563_v31  ;;  %v3564_v18 = vpack.c.bf16 %v3114_v49, %v3114_v49 }
 0x33c   : > { %3279 = vst.msk [vmem:[%s5494_s6 + $0x64] sm:$0xf] %vm3141_vm1, %v3566_v11 }
 0x33d   : > { %3277 = vst.msk [vmem:[%s5494_s6 + $0x5c] sm:$0xf] %vm3141_vm1, %v3564_v18  ;;  %v4127_v3 = vpop.f32.mrb[136].mxu1 }
 0x33e   : > { %v3135_v34 = vadd.f32 %v4127_v3, %v5612_v43  ;;  %v3126_v46 = vpop.f32.mrb[137].mxu1 }
 0x33f   : > { %v3127_v4 = vadd.f32 %v3126_v46, %v5596_v22  ;;  %v4128_v52 = vpop.f32.mrb[138].mxu1 }
 0x340   : > { %v3569_v42 = vpack.c.bf16 %v3135_v34, %v3135_v34  ;;  %v3138_v12 = vadd.f32 %v4128_v52, %v5618_v8  ;;  %v3129_v13 = vpop.f32.mrb[139].mxu1 }
 0x341   : > { %v3567_v7 = vpack.c.bf16 %v3127_v4, %v3127_v4  ;;  %v3130_v29 = vadd.f32 %v3129_v13, %v5602_v55 }
 0x342   : > { %3282 = vst.msk [vmem:[%s5494_s6 + $0x70] sm:$0xf] %vm3141_vm1, %v3569_v42  ;;  %v3570_v27 = vpack.c.bf16 %v3138_v12, %v3138_v12 }
 0x343   : > { %3280 = vst.msk [vmem:[%s5494_s6 + $0x68] sm:$0xf] %vm3141_vm1, %v3567_v7  ;;  %v3568_v62 = vpack.c.bf16 %v3130_v29, %v3130_v29 }
 0x344   : > { %3283 = vst.msk [vmem:[%s5494_s6 + $0x74] sm:$0xf] %vm3141_vm1, %v3570_v27 }
 0x345   : > { %3281 = vst.msk [vmem:[%s5494_s6 + $0x6c] sm:$0xf] %vm3141_vm1, %v3568_v62 }
 0x346 PF: > { %s14_s15 = sadd.s32 1, %s4338_s15  }
 0x347   : > { %p11_p4 = scmp.ge.s32.totalorder %s14_s15, 4  }
 0x349   :  { %13 = sbr.rel (!%p11_p4) target bundleno = 1 (0x1), region = 66 }

// kernel: net_forward.5
= control target key start
LH: loop header
LB: loop body
LE: loop exit
PB: predicated region body
PF: predicated region fallthrough
CT: control target
= control target key end

     0   :  { %vm3113_vm0 = vmmov 0   ;;  %vm1696_vm1 = vcmask 523264   ;;  %vm2333_vm2 = vcmask 15360   ;;  %s3818_s1 = inlined_call_operand.vmem [shape: bf16[3136,128], index: 1, kind: input, shape index: {}]   ;;  %s3819_s0 = inlined_call_operand.vmem [shape: bf16[8,3136], index: 0, kind: input, shape index: {}]   ;;  %s3820_s2 = inlined_call_operand.vmem [shape: f32[1,128], index: 2, kind: input, shape index: {}]   ;;  %s3821_s3 = inlined_call_operand.vmem [shape: bf16[128,2], index: 3, kind: input, shape index: {}]   ;;  %s3822_s4 = inlined_call_operand.vmem [shape: f32[1,2], index: 4, kind: input, shape index: {}]   ;;  %s3823_s5 = inlined_call_operand.vmem [shape: f32[8,2], index: 5, kind: output, shape index: {}]  }
   0x1   :  { %v2883_v0 = vld [vmem:[%s3818_s1 + $0x40] sm:$0xff]   ;;  %v2887_v4 = vld [vmem:[%s3818_s1 + $0x48] sm:$0xff]   ;;  %v2891_v8 = vld [vmem:[%s3818_s1 + $0x50] sm:$0xff]  }
   0x2   :  { %v2884_v1 = vld [vmem:[%s3818_s1] sm:$0xff]   ;;  %2571 = vmatprep.subr.bf16.mxu0 %v2883_v0  ;;  %v2888_v5 = vld [vmem:[%s3818_s1 + $0x8] sm:$0xff]   ;;  %v2892_v9 = vld [vmem:[%s3818_s1 + $0x10] sm:$0xff]  }
   0x3   :  { %v2885_v2 = vld [vmem:[%s3818_s1 + $0xc0] sm:$0xff]   ;;  %2572 = vmatpush3.bf16.msra.mxu0 %v2884_v1  ;;  %v2889_v6 = vld [vmem:[%s3818_s1 + $0xc8] sm:$0xff]   ;;  %v2893_v10 = vld [vmem:[%s3818_s1 + $0xd0] sm:$0xff]  }
   0x4   :  { %v2886_v3 = vld [vmem:[%s3818_s1 + $0x80] sm:$0xff]   ;;  %2593 = vmatprep.subr.bf16.mxu1 %v2885_v2  ;;  %2573 = vmatprep.subr.bf16.mxu0 %v2887_v4  ;;  %v2890_v7 = vld [vmem:[%s3818_s1 + $0x88] sm:$0xff]   ;;  %v2894_v11 = vld [vmem:[%s3818_s1 + $0x90] sm:$0xff]  }
   0x5   :  { %2594 = vmatpush3.bf16.msra.mxu1 %v2886_v3  ;;  %v2895_v12 = vld [vmem:[%s3818_s1 + $0x58] sm:$0xff]   ;;  %v2899_v16 = vld [vmem:[%s3818_s1 + $0x60] sm:$0xff]   ;;  %v2903_v20 = vld [vmem:[%s3818_s1 + $0x68] sm:$0xff]  }
   0x6   :  { %2595 = vmatprep.subr.bf16.mxu1 %v2889_v6  ;;  %v2896_v13 = vld [vmem:[%s3818_s1 + $0x18] sm:$0xff]   ;;  %v2900_v17 = vld [vmem:[%s3818_s1 + $0x20] sm:$0xff]   ;;  %v2904_v21 = vld [vmem:[%s3818_s1 + $0x28] sm:$0xff]  }
   0x7   :  { %2574 = vmatpush3.bf16.msra.mxu0 %v2888_v5  ;;  %v2897_v14 = vld [vmem:[%s3818_s1 + $0xd8] sm:$0xff]   ;;  %v2901_v18 = vld [vmem:[%s3818_s1 + $0xe0] sm:$0xff]   ;;  %v2905_v22 = vld [vmem:[%s3818_s1 + $0xe8] sm:$0xff]  }
   0x8   :  { %2575 = vmatprep.subr.bf16.mxu0 %v2891_v8  ;;  %v2898_v15 = vld [vmem:[%s3818_s1 + $0x98] sm:$0xff]   ;;  %v2902_v19 = vld [vmem:[%s3818_s1 + $0xa0] sm:$0xff]   ;;  %v2906_v23 = vld [vmem:[%s3818_s1 + $0xa8] sm:$0xff]  }
   0x9   :  { %2596 = vmatpush3.bf16.msra.mxu1 %v2890_v7  ;;  %v2907_v24 = vld [vmem:[%s3818_s1 + $0x70] sm:$0xff]   ;;  %v2911_v28 = vld [vmem:[%s3818_s1 + $0x78] sm:$0xff]   ;;  %v21_v31 = vld [vmem:[%s3819_s0] sm:$0xff] }
   0xa   :  { %2597 = vmatprep.subr.bf16.mxu1 %v2893_v10  ;;  %v2908_v25 = vld [vmem:[%s3818_s1 + $0x30] sm:$0xff]   ;;  %v2912_v29 = vld [vmem:[%s3818_s1 + $0x38] sm:$0xff]   ;;  %v2340_v32 = vcombine.low %v21_v31, %v21_v31  ;;  %v2341_v33 = vcombine.high %v21_v31, %v21_v31  ;;  %v2917_v35 = vld [vmem:[%s3818_s1 + $0x140] sm:$0xff]  }
   0xb   :  { %2576 = vmatpush3.bf16.msra.mxu0 %v2892_v9  ;;  %v2909_v26 = vld [vmem:[%s3818_s1 + $0xf0] sm:$0xff]   ;;  %v2913_v30 = vld [vmem:[%s3818_s1 + $0xf8] sm:$0xff]   ;;  %v22_v36 = vld [vmem:[%s3819_s0 + $0x8] sm:$0xff] }
   0xc   :  { %2577 = vmatprep.subr.bf16.mxu0 %v2895_v12  ;;  %v2910_v27 = vld [vmem:[%s3818_s1 + $0xb0] sm:$0xff]   ;;  %v2916_v34 = vld [vmem:[%s3818_s1 + $0xb8] sm:$0xff]   ;;  %1732 = vmatprep.mubr.bf16.mxu0 %v2341_v33  ;;  %v2342_v37 = vcombine.low %v22_v36, %v22_v36  ;;  %v2343_v38 = vcombine.high %v22_v36, %v22_v36  ;;  %v2920_v39 = vld [vmem:[%s3818_s1 + $0x100] sm:$0xff]  }
   0xd   :  { %2598 = vmatpush3.bf16.msra.mxu1 %v2894_v11  ;;  %v2921_v40 = vld [vmem:[%s3818_s1 + $0x1c0] sm:$0xff]   ;;  %v2923_v42 = vld [vmem:[%s3818_s1 + $0x148] sm:$0xff]   ;;  %v2927_v46 = vld [vmem:[%s3818_s1 + $0x150] sm:$0xff]  }
   0xe   :  { %2599 = vmatprep.subr.bf16.mxu1 %v2897_v14  ;;  %1772 = vmatprep.mubr.bf16.mxu1 %v2343_v38  ;;  %v2922_v41 = vld [vmem:[%s3818_s1 + $0x180] sm:$0xff]   ;;  %v2924_v43 = vld [vmem:[%s3818_s1 + $0x108] sm:$0xff]   ;;  %v2928_v47 = vld [vmem:[%s3818_s1 + $0x110] sm:$0xff]  }
   0xf   :  { %2578 = vmatpush3.bf16.msra.mxu0 %v2896_v13  ;;  %v2925_v44 = vld [vmem:[%s3818_s1 + $0x1c8] sm:$0xff]   ;;  %v2929_v48 = vld [vmem:[%s3818_s1 + $0x1d0] sm:$0xff]   ;;  %v2931_v50 = vld [vmem:[%s3818_s1 + $0x158] sm:$0xff]  }
  0x10   :  { %2579 = vmatprep.subr.bf16.mxu0 %v2899_v16  ;;  %v2926_v45 = vld [vmem:[%s3818_s1 + $0x188] sm:$0xff]   ;;  %v2930_v49 = vld [vmem:[%s3818_s1 + $0x190] sm:$0xff]   ;;  %v2932_v51 = vld [vmem:[%s3818_s1 + $0x118] sm:$0xff]  }
  0x11   :  { %2600 = vmatpush3.bf16.msra.mxu1 %v2898_v15  ;;  %v2933_v52 = vld [vmem:[%s3818_s1 + $0x1d8] sm:$0xff]   ;;  %v2935_v54 = vld [vmem:[%s3818_s1 + $0x160] sm:$0xff]   ;;  %v2939_v58 = vld [vmem:[%s3818_s1 + $0x168] sm:$0xff]  }
  0x12   :  { %2601 = vmatprep.subr.bf16.mxu1 %v2901_v18  ;;  %v2934_v53 = vld [vmem:[%s3818_s1 + $0x198] sm:$0xff]   ;;  %v2936_v55 = vld [vmem:[%s3818_s1 + $0x120] sm:$0xff]   ;;  %v2940_v59 = vld [vmem:[%s3818_s1 + $0x128] sm:$0xff]  }
  0x13   :  { %2580 = vmatpush3.bf16.msra.mxu0 %v2900_v17  ;;  %v2937_v56 = vld [vmem:[%s3818_s1 + $0x1e0] sm:$0xff]   ;;  %v2941_v60 = vld [vmem:[%s3818_s1 + $0x1e8] sm:$0xff]   ;;  %v2943_v62 = vld [vmem:[%s3818_s1 + $0x170] sm:$0xff]  }
  0x14   :  { %2581 = vmatprep.subr.bf16.mxu0 %v2903_v20  ;;  %v2938_v57 = vld [vmem:[%s3818_s1 + $0x1a0] sm:$0xff]   ;;  %v2942_v61 = vld [vmem:[%s3818_s1 + $0x1a8] sm:$0xff]   ;;  %v2944_v63 = vld [vmem:[%s3818_s1 + $0x130] sm:$0xff]  }
  0x15   :  { %2602 = vmatpush3.bf16.msra.mxu1 %v2902_v19  ;;  %v2945_v0 = vld [vmem:[%s3818_s1 + $0x1f0] sm:$0xff]   ;;  %v2947_v2 = vld [vmem:[%s3818_s1 + $0x178] sm:$0xff]   ;;  %v2953_v9 = vld [vmem:[%s3818_s1 + $0x240] sm:$0xff]  }
  0x16   :  { %2603 = vmatprep.subr.bf16.mxu1 %v2905_v22  ;;  %v2946_v1 = vld [vmem:[%s3818_s1 + $0x1b0] sm:$0xff]   ;;  %v2948_v3 = vld [vmem:[%s3818_s1 + $0x138] sm:$0xff]   ;;  %v2956_v13 = vld [vmem:[%s3818_s1 + $0x200] sm:$0xff]  }
  0x17   :  { %2582 = vmatpush3.bf16.msra.mxu0 %v2904_v21  ;;  %v2949_v4 = vld [vmem:[%s3818_s1 + $0x1f8] sm:$0xff]   ;;  %v23_v5 = vld [vmem:[%s3819_s0 + $0x10] sm:$0xff]  ;;  %v2957_v14 = vld [vmem:[%s3818_s1 + $0x2c0] sm:$0xff]  }
  0x18   :  { %2583 = vmatprep.subr.bf16.mxu0 %v2907_v24  ;;  %v2344_v6 = vcombine.low %v23_v5, %v23_v5  ;;  %v2345_v7 = vcombine.high %v23_v5, %v23_v5  ;;  %v2952_v8 = vld [vmem:[%s3818_s1 + $0x1b8] sm:$0xff]   ;;  %v2958_v15 = vld [vmem:[%s3818_s1 + $0x280] sm:$0xff]   ;;  %v2959_v16 = vld [vmem:[%s3818_s1 + $0x248] sm:$0xff]  }
  0x19   :  { %2604 = vmatpush3.bf16.msra.mxu1 %v2906_v23  ;;  %v24_v10 = vld [vmem:[%s3819_s0 + $0x18] sm:$0xff]  ;;  %v2960_v17 = vld [vmem:[%s3818_s1 + $0x208] sm:$0xff]   ;;  %v2963_v20 = vld [vmem:[%s3818_s1 + $0x250] sm:$0xff]  }
  0x1a   :  { %2605 = vmatprep.subr.bf16.mxu1 %v2909_v26  ;;  %v2346_v11 = vcombine.low %v24_v10, %v24_v10  ;;  %v2347_v12 = vcombine.high %v24_v10, %v24_v10  ;;  %v2961_v18 = vld [vmem:[%s3818_s1 + $0x2c8] sm:$0xff]   ;;  %v2964_v21 = vld [vmem:[%s3818_s1 + $0x210] sm:$0xff]   ;;  %v2967_v24 = vld [vmem:[%s3818_s1 + $0x258] sm:$0xff]  }
  0x1b   :  { %2584 = vmatpush3.bf16.msra.mxu0 %v2908_v25  ;;  %v2962_v19 = vld [vmem:[%s3818_s1 + $0x288] sm:$0xff]   ;;  %v2965_v22 = vld [vmem:[%s3818_s1 + $0x2d0] sm:$0xff]   ;;  %v2968_v25 = vld [vmem:[%s3818_s1 + $0x218] sm:$0xff]  }
  0x1c   :  { %2585 = vmatprep.subr.bf16.mxu0 %v2911_v28  ;;  %v2966_v23 = vld [vmem:[%s3818_s1 + $0x290] sm:$0xff]   ;;  %v2969_v26 = vld [vmem:[%s3818_s1 + $0x2d8] sm:$0xff]   ;;  %v2971_v28 = vld [vmem:[%s3818_s1 + $0x260] sm:$0xff]  }
  0x1d   :  { %2606 = vmatpush3.bf16.msra.mxu1 %v2910_v27  ;;  %v2970_v27 = vld [vmem:[%s3818_s1 + $0x298] sm:$0xff]   ;;  %v2974_v31 = vld [vmem:[%s3818_s1 + $0x2a0] sm:$0xff]   ;;  %v2976_v33 = vld [vmem:[%s3818_s1 + $0x228] sm:$0xff]  }
  0x1e   :  { %2607 = vmatprep.subr.bf16.mxu1 %v2913_v30  ;;  %v2973_v30 = vld [vmem:[%s3818_s1 + $0x2e0] sm:$0xff]   ;;  %v2979_v36 = vld [vmem:[%s3818_s1 + $0x270] sm:$0xff]  }
  0x1f   :  { %2586 = vmatpush3.bf16.msra.mxu0 %v2912_v29  ;;  %v2972_v29 = vld [vmem:[%s3818_s1 + $0x220] sm:$0xff]   ;;  %v2981_v38 = vld [vmem:[%s3818_s1 + $0x2f0] sm:$0xff]  }
  0x20   :  { %2615 = vmatprep.subr.bf16.mxu0 %v2917_v35  ;;  %v2978_v35 = vld [vmem:[%s3818_s1 + $0x2a8] sm:$0xff]   ;;  %v3010_v5 = vld [vmem:[%s3818_s1 + $0x3a0] sm:$0xff]   ;;  %v3015_v10 = vld [vmem:[%s3818_s1 + $0x370] sm:$0xff]  }
  0x21   :  { %2608 = vmatpush3.bf16.msra.mxu1 %v2916_v34  ;;  %v2977_v34 = vld [vmem:[%s3818_s1 + $0x2e8] sm:$0xff]  }
  0x22   :  { %1733 = vmatmul.mubr.bf16.vlgmr.msra.gmra.mrb[0].mxu0 %v2340_v32  ;;  %2637 = vmatprep.subr.bf16.mxu1 %v2921_v40  ;;  %v2975_v32 = vld [vmem:[%s3818_s1 + $0x268] sm:$0xff]   ;;  %v2983_v40 = vld [vmem:[%s3818_s1 + $0x278] sm:$0xff]  }
  0x23   :  { %2616 = vmatpush3.bf16.msra.mxu0 %v2920_v39  ;;  %1812 = vmatprep.mubr.bf16.mxu0 %v2345_v7  ;;  %v2982_v39 = vld [vmem:[%s3818_s1 + $0x2b0] sm:$0xff]   ;;  %v3012_v7 = vld [vmem:[%s3818_s1 + $0x328] sm:$0xff]  }
  0x24   :  { %1773 = vmatmul.mubr.bf16.vlgmr.msra.gmra.mrb[0].mxu1 %v2342_v37  ;;  %2617 = vmatprep.subr.bf16.mxu0 %v2923_v42  ;;  %v2980_v37 = vld [vmem:[%s3818_s1 + $0x230] sm:$0xff]   ;;  %v2985_v42 = vld [vmem:[%s3818_s1 + $0x2f8] sm:$0xff]  }
  0x25   :  { %2638 = vmatpush3.bf16.msra.mxu1 %v2922_v41  ;;  %1852 = vmatprep.mubr.bf16.mxu1 %v2347_v12  ;;  %v2984_v41 = vld [vmem:[%s3818_s1 + $0x238] sm:$0xff]   ;;  %v3017_v12 = vld [vmem:[%s3818_s1 + $0x3f0] sm:$0xff]  }
  0x26   :  { %2639 = vmatprep.subr.bf16.mxu1 %v2925_v44 }
  0x27   :  { %2618 = vmatpush3.bf16.msra.mxu0 %v2924_v43  ;;  %v25_v43 = vld [vmem:[%s3819_s0 + $0x20] sm:$0xff] }
  0x28   :  { %2619 = vmatprep.subr.bf16.mxu0 %v2927_v46  ;;  %v2348_v44 = vcombine.low %v25_v43, %v25_v43  ;;  %v2988_v46 = vld [vmem:[%s3818_s1 + $0x2b8] sm:$0xff]  }
  0x29   :  { %2640 = vmatpush3.bf16.msra.mxu1 %v2926_v45  ;;  %v2349_v45 = vcombine.high %v25_v43, %v25_v43  ;;  %v3046_v43 = vld [vmem:[%s3818_s1 + $0x4a0] sm:$0xff]  }
  0x2a   :  { %2641 = vmatprep.subr.bf16.mxu1 %v2929_v48  ;;  %v26_v48 = vld [vmem:[%s3819_s0 + $0x28] sm:$0xff] }
  0x2b   :  { %2620 = vmatpush3.bf16.msra.mxu0 %v2928_v47  ;;  %v2989_v47 = vld [vmem:[%s3818_s1 + $0x340] sm:$0xff]  }
  0x2c   :  { %2621 = vmatprep.subr.bf16.mxu0 %v2931_v50  ;;  %v2351_v50 = vcombine.high %v26_v48, %v26_v48 }
  0x2d   :  { %2642 = vmatpush3.bf16.msra.mxu1 %v2930_v49  ;;  %v2350_v49 = vcombine.low %v26_v48, %v26_v48  ;;  %v3051_v48 = vld [vmem:[%s3818_s1 + $0x470] sm:$0xff]  }
  0x2e   :  { %2643 = vmatprep.subr.bf16.mxu1 %v2933_v52  ;;  %v2993_v52 = vld [vmem:[%s3818_s1 + $0x3c0] sm:$0xff]  }
  0x2f   :  { %2622 = vmatpush3.bf16.msra.mxu0 %v2932_v51  ;;  %v2992_v51 = vld [vmem:[%s3818_s1 + $0x300] sm:$0xff]  }
  0x30   :  { %2623 = vmatprep.subr.bf16.mxu0 %v2935_v54  ;;  %v2995_v54 = vld [vmem:[%s3818_s1 + $0x348] sm:$0xff]  }
  0x31   :  { %2644 = vmatpush3.bf16.msra.mxu1 %v2934_v53  ;;  %v2994_v53 = vld [vmem:[%s3818_s1 + $0x380] sm:$0xff]  }
  0x32   :  { %2645 = vmatprep.subr.bf16.mxu1 %v2937_v56  ;;  %v2997_v56 = vld [vmem:[%s3818_s1 + $0x3c8] sm:$0xff]  }
  0x33   :  { %2624 = vmatpush3.bf16.msra.mxu0 %v2936_v55  ;;  %v2996_v55 = vld [vmem:[%s3818_s1 + $0x308] sm:$0xff]  }
  0x34   :  { %2625 = vmatprep.subr.bf16.mxu0 %v2939_v58  ;;  %v2999_v58 = vld [vmem:[%s3818_s1 + $0x350] sm:$0xff]  }
  0x35   :  { %2646 = vmatpush3.bf16.msra.mxu1 %v2938_v57  ;;  %v2998_v57 = vld [vmem:[%s3818_s1 + $0x388] sm:$0xff]  }
  0x36   :  { %2647 = vmatprep.subr.bf16.mxu1 %v2941_v60  ;;  %v3001_v60 = vld [vmem:[%s3818_s1 + $0x3d0] sm:$0xff]  }
  0x37   :  { %2626 = vmatpush3.bf16.msra.mxu0 %v2940_v59  ;;  %v3000_v59 = vld [vmem:[%s3818_s1 + $0x310] sm:$0xff]  }
  0x38   :  { %2627 = vmatprep.subr.bf16.mxu0 %v2943_v62  ;;  %v3003_v62 = vld [vmem:[%s3818_s1 + $0x358] sm:$0xff]  }
  0x39   :  { %2648 = vmatpush3.bf16.msra.mxu1 %v2942_v61  ;;  %v3002_v61 = vld [vmem:[%s3818_s1 + $0x390] sm:$0xff]  }
  0x3a   :  { %2649 = vmatprep.subr.bf16.mxu1 %v2945_v0  ;;  %v3005_v0 = vld [vmem:[%s3818_s1 + $0x3d8] sm:$0xff]  }
  0x3b   :  { %2628 = vmatpush3.bf16.msra.mxu0 %v2944_v63  ;;  %v3004_v63 = vld [vmem:[%s3818_s1 + $0x318] sm:$0xff]  }
  0x3c   :  { %2629 = vmatprep.subr.bf16.mxu0 %v2947_v2  ;;  %v3007_v2 = vld [vmem:[%s3818_s1 + $0x360] sm:$0xff]  }
  0x3d   :  { %2650 = vmatpush3.bf16.msra.mxu1 %v2946_v1  ;;  %v3006_v1 = vld [vmem:[%s3818_s1 + $0x398] sm:$0xff]  }
  0x3e   :  { %2651 = vmatprep.subr.bf16.mxu1 %v2949_v4  ;;  %v3009_v4 = vld [vmem:[%s3818_s1 + $0x3e0] sm:$0xff]  }
  0x3f   :  { %2630 = vmatpush3.bf16.msra.mxu0 %v2948_v3  ;;  %v3008_v3 = vld [vmem:[%s3818_s1 + $0x320] sm:$0xff]  }
  0x40   :  { %2659 = vmatprep.subr.bf16.mxu0 %v2953_v9  ;;  %v3014_v9 = vld [vmem:[%s3818_s1 + $0x3a8] sm:$0xff]  }
  0x41   :  { %2652 = vmatpush3.bf16.msra.mxu1 %v2952_v8  ;;  %v3013_v8 = vld [vmem:[%s3818_s1 + $0x3e8] sm:$0xff]  }
  0x42   :  { %1813 = vmatmul.mubr.bf16.vlgmr.msra.gmra.mrb[4].mxu0 %v2344_v6  ;;  %2681 = vmatprep.subr.bf16.mxu1 %v2957_v14  ;;  %v3011_v6 = vld [vmem:[%s3818_s1 + $0x368] sm:$0xff]   ;;  %v3019_v14 = vld [vmem:[%s3818_s1 + $0x378] sm:$0xff]  }
  0x43   :  { %2660 = vmatpush3.bf16.msra.mxu0 %v2956_v13  ;;  %1892 = vmatprep.mubr.bf16.mxu0 %v2349_v45  ;;  %v3018_v13 = vld [vmem:[%s3818_s1 + $0x3b0] sm:$0xff]   ;;  %v3048_v45 = vld [vmem:[%s3818_s1 + $0x428] sm:$0xff]  }
  0x44   :  { %1853 = vmatmul.mubr.bf16.vlgmr.msra.gmra.mrb[4].mxu1 %v2346_v11  ;;  %2661 = vmatprep.subr.bf16.mxu0 %v2959_v16  ;;  %v3016_v11 = vld [vmem:[%s3818_s1 + $0x330] sm:$0xff]   ;;  %v3021_v16 = vld [vmem:[%s3818_s1 + $0x3f8] sm:$0xff]  }
  0x45   :  { %2682 = vmatpush3.bf16.msra.mxu1 %v2958_v15  ;;  %1932 = vmatprep.mubr.bf16.mxu1 %v2351_v50  ;;  %v3020_v15 = vld [vmem:[%s3818_s1 + $0x338] sm:$0xff]   ;;  %v3053_v50 = vld [vmem:[%s3818_s1 + $0x4f0] sm:$0xff]  }
  0x46   :  { %2683 = vmatprep.subr.bf16.mxu1 %v2961_v18 }
  0x47   :  { %2662 = vmatpush3.bf16.msra.mxu0 %v2960_v17  ;;  %v27_v17 = vld [vmem:[%s3819_s0 + $0x30] sm:$0xff] }
  0x48   :  { %2663 = vmatprep.subr.bf16.mxu0 %v2963_v20  ;;  %v2352_v18 = vcombine.low %v27_v17, %v27_v17  ;;  %v3024_v20 = vld [vmem:[%s3818_s1 + $0x3b8] sm:$0xff]  }
  0x49   :  { %2684 = vmatpush3.bf16.msra.mxu1 %v2962_v19  ;;  %v2353_v19 = vcombine.high %v27_v17, %v27_v17  ;;  %v3082_v17 = vld [vmem:[%s3818_s1 + $0x5a0] sm:$0xff]  }
  0x4a   :  { %2685 = vmatprep.subr.bf16.mxu1 %v2965_v22  ;;  %v28_v22 = vld [vmem:[%s3819_s0 + $0x38] sm:$0xff] }
  0x4b   :  { %2664 = vmatpush3.bf16.msra.mxu0 %v2964_v21  ;;  %v3025_v21 = vld [vmem:[%s3818_s1 + $0x440] sm:$0xff]  }
  0x4c   :  { %2665 = vmatprep.subr.bf16.mxu0 %v2967_v24  ;;  %v2355_v24 = vcombine.high %v28_v22, %v28_v22 }
  0x4d   :  { %2686 = vmatpush3.bf16.msra.mxu1 %v2966_v23  ;;  %v2354_v23 = vcombine.low %v28_v22, %v28_v22  ;;  %v3087_v22 = vld [vmem:[%s3818_s1 + $0x570] sm:$0xff]  }
  0x4e   :  { %2687 = vmatprep.subr.bf16.mxu1 %v2969_v26  ;;  %v3029_v26 = vld [vmem:[%s3818_s1 + $0x4c0] sm:$0xff]  }
  0x4f   :  { %2666 = vmatpush3.bf16.msra.mxu0 %v2968_v25  ;;  %v3028_v25 = vld [vmem:[%s3818_s1 + $0x400] sm:$0xff]  }
  0x50   :  { %2667 = vmatprep.subr.bf16.mxu0 %v2971_v28  ;;  %v3031_v28 = vld [vmem:[%s3818_s1 + $0x448] sm:$0xff]  }
  0x51   :  { %2688 = vmatpush3.bf16.msra.mxu1 %v2970_v27  ;;  %v3030_v27 = vld [vmem:[%s3818_s1 + $0x480] sm:$0xff]  }
  0x52   :  { %2689 = vmatprep.subr.bf16.mxu1 %v2973_v30  ;;  %v3033_v30 = vld [vmem:[%s3818_s1 + $0x4c8] sm:$0xff]  }
  0x53   :  { %2668 = vmatpush3.bf16.msra.mxu0 %v2972_v29  ;;  %v3032_v29 = vld [vmem:[%s3818_s1 + $0x408] sm:$0xff]  }
  0x54   :  { %2669 = vmatprep.subr.bf16.mxu0 %v2975_v32  ;;  %v3035_v32 = vld [vmem:[%s3818_s1 + $0x450] sm:$0xff]  }
  0x55   :  { %2690 = vmatpush3.bf16.msra.mxu1 %v2974_v31  ;;  %v3034_v31 = vld [vmem:[%s3818_s1 + $0x488] sm:$0xff]  }
  0x56   :  { %2691 = vmatprep.subr.bf16.mxu1 %v2977_v34  ;;  %v3037_v34 = vld [vmem:[%s3818_s1 + $0x4d0] sm:$0xff]  }
  0x57   :  { %2670 = vmatpush3.bf16.msra.mxu0 %v2976_v33  ;;  %v3036_v33 = vld [vmem:[%s3818_s1 + $0x410] sm:$0xff]  }
  0x58   :  { %2671 = vmatprep.subr.bf16.mxu0 %v2979_v36  ;;  %v3039_v36 = vld [vmem:[%s3818_s1 + $0x458] sm:$0xff]  }
  0x59   :  { %2692 = vmatpush3.bf16.msra.mxu1 %v2978_v35  ;;  %v3038_v35 = vld [vmem:[%s3818_s1 + $0x490] sm:$0xff]  }
  0x5a   :  { %2693 = vmatprep.subr.bf16.mxu1 %v2981_v38  ;;  %v3041_v38 = vld [vmem:[%s3818_s1 + $0x4d8] sm:$0xff]  }
  0x5b   :  { %2672 = vmatpush3.bf16.msra.mxu0 %v2980_v37  ;;  %v3040_v37 = vld [vmem:[%s3818_s1 + $0x418] sm:$0xff]  }
  0x5c   :  { %2673 = vmatprep.subr.bf16.mxu0 %v2983_v40  ;;  %v3043_v40 = vld [vmem:[%s3818_s1 + $0x460] sm:$0xff]  }
  0x5d   :  { %2694 = vmatpush3.bf16.msra.mxu1 %v2982_v39  ;;  %v3042_v39 = vld [vmem:[%s3818_s1 + $0x498] sm:$0xff]  }
  0x5e   :  { %2695 = vmatprep.subr.bf16.mxu1 %v2985_v42  ;;  %v3045_v42 = vld [vmem:[%s3818_s1 + $0x4e0] sm:$0xff]  }
  0x5f   :  { %2674 = vmatpush3.bf16.msra.mxu0 %v2984_v41  ;;  %v3044_v41 = vld [vmem:[%s3818_s1 + $0x420] sm:$0xff]  }
  0x60   :  { %2703 = vmatprep.subr.bf16.mxu0 %v2989_v47  ;;  %v3050_v47 = vld [vmem:[%s3818_s1 + $0x4a8] sm:$0xff]  }
  0x61   :  { %2696 = vmatpush3.bf16.msra.mxu1 %v2988_v46  ;;  %v3049_v46 = vld [vmem:[%s3818_s1 + $0x4e8] sm:$0xff]  }
  0x62   :  { %1893 = vmatmul.mubr.bf16.vlgmr.msra.gmra.mrb[8].mxu0 %v2348_v44  ;;  %2725 = vmatprep.subr.bf16.mxu1 %v2993_v52  ;;  %v3047_v44 = vld [vmem:[%s3818_s1 + $0x468] sm:$0xff]   ;;  %v3055_v52 = vld [vmem:[%s3818_s1 + $0x478] sm:$0xff]  }
  0x63   :  { %2704 = vmatpush3.bf16.msra.mxu0 %v2992_v51  ;;  %1972 = vmatprep.mubr.bf16.mxu0 %v2353_v19  ;;  %v3054_v51 = vld [vmem:[%s3818_s1 + $0x4b0] sm:$0xff]   ;;  %v3084_v19 = vld [vmem:[%s3818_s1 + $0x528] sm:$0xff]  }
  0x64   :  { %1933 = vmatmul.mubr.bf16.vlgmr.msra.gmra.mrb[8].mxu1 %v2350_v49  ;;  %2705 = vmatprep.subr.bf16.mxu0 %v2995_v54  ;;  %v3052_v49 = vld [vmem:[%s3818_s1 + $0x430] sm:$0xff]   ;;  %v3057_v54 = vld [vmem:[%s3818_s1 + $0x4f8] sm:$0xff]  }
  0x65   :  { %2726 = vmatpush3.bf16.msra.mxu1 %v2994_v53  ;;  %2012 = vmatprep.mubr.bf16.mxu1 %v2355_v24  ;;  %v3056_v53 = vld [vmem:[%s3818_s1 + $0x438] sm:$0xff]   ;;  %v3089_v24 = vld [vmem:[%s3818_s1 + $0x5f0] sm:$0xff]  }
  0x66   :  { %2727 = vmatprep.subr.bf16.mxu1 %v2997_v56 }
  0x67   :  { %2706 = vmatpush3.bf16.msra.mxu0 %v2996_v55  ;;  %v29_v55 = vld [vmem:[%s3819_s0 + $0x40] sm:$0xff] }
  0x68   :  { %2707 = vmatprep.subr.bf16.mxu0 %v2999_v58  ;;  %v2356_v56 = vcombine.low %v29_v55, %v29_v55  ;;  %v3060_v58 = vld [vmem:[%s3818_s1 + $0x4b8] sm:$0xff]  }
  0x69   :  { %2728 = vmatpush3.bf16.msra.mxu1 %v2998_v57  ;;  %v2357_v57 = vcombine.high %v29_v55, %v29_v55  ;;  %v3104_v55 = vld [vmem:[%s3821_s3] sm:$0xff]  }
  0x6a   :  { %2729 = vmatprep.subr.bf16.mxu1 %v3001_v60  ;;  %v30_v60 = vld [vmem:[%s3819_s0 + $0x48] sm:$0xff] }
  0x6b   :  { %2708 = vmatpush3.bf16.msra.mxu0 %v3000_v59  ;;  %v3061_v59 = vld [vmem:[%s3818_s1 + $0x540] sm:$0xff]  }
  0x6c   :  { %2709 = vmatprep.subr.bf16.mxu0 %v3003_v62  ;;  %v2359_v62 = vcombine.high %v30_v60, %v30_v60 }
  0x6d   :  { %2730 = vmatpush3.bf16.msra.mxu1 %v3002_v61  ;;  %v2358_v61 = vcombine.low %v30_v60, %v30_v60 }
  0x6e   :  { %2731 = vmatprep.subr.bf16.mxu1 %v3005_v0  ;;  %v3065_v0 = vld [vmem:[%s3818_s1 + $0x5c0] sm:$0xff]  }
  0x6f   :  { %2710 = vmatpush3.bf16.msra.mxu0 %v3004_v63  ;;  %v3064_v63 = vld [vmem:[%s3818_s1 + $0x500] sm:$0xff]  }
  0x70   :  { %2711 = vmatprep.subr.bf16.mxu0 %v3007_v2  ;;  %v3067_v2 = vld [vmem:[%s3818_s1 + $0x548] sm:$0xff]  }
  0x71   :  { %2732 = vmatpush3.bf16.msra.mxu1 %v3006_v1  ;;  %v3066_v1 = vld [vmem:[%s3818_s1 + $0x580] sm:$0xff]  }
  0x72   :  { %2733 = vmatprep.subr.bf16.mxu1 %v3009_v4  ;;  %v3069_v4 = vld [vmem:[%s3818_s1 + $0x5c8] sm:$0xff]  }
  0x73   :  { %2712 = vmatpush3.bf16.msra.mxu0 %v3008_v3  ;;  %v3068_v3 = vld [vmem:[%s3818_s1 + $0x508] sm:$0xff]  }
  0x74   :  { %2713 = vmatprep.subr.bf16.mxu0 %v3011_v6  ;;  %v3071_v6 = vld [vmem:[%s3818_s1 + $0x550] sm:$0xff]  }
  0x75   :  { %2734 = vmatpush3.bf16.msra.mxu1 %v3010_v5  ;;  %v3070_v5 = vld [vmem:[%s3818_s1 + $0x588] sm:$0xff]  }
  0x76   :  { %2735 = vmatprep.subr.bf16.mxu1 %v3013_v8  ;;  %v3073_v8 = vld [vmem:[%s3818_s1 + $0x5d0] sm:$0xff]  }
  0x77   :  { %2714 = vmatpush3.bf16.msra.mxu0 %v3012_v7  ;;  %v3072_v7 = vld [vmem:[%s3818_s1 + $0x510] sm:$0xff]  }
  0x78   :  { %2715 = vmatprep.subr.bf16.mxu0 %v3015_v10  ;;  %v3075_v10 = vld [vmem:[%s3818_s1 + $0x558] sm:$0xff]  }
  0x79   :  { %2736 = vmatpush3.bf16.msra.mxu1 %v3014_v9  ;;  %v3074_v9 = vld [vmem:[%s3818_s1 + $0x590] sm:$0xff]  }
  0x7a   :  { %2737 = vmatprep.subr.bf16.mxu1 %v3017_v12  ;;  %v3077_v12 = vld [vmem:[%s3818_s1 + $0x5d8] sm:$0xff]  }
  0x7b   :  { %2716 = vmatpush3.bf16.msra.mxu0 %v3016_v11  ;;  %v3076_v11 = vld [vmem:[%s3818_s1 + $0x518] sm:$0xff]  }
  0x7c   :  { %2717 = vmatprep.subr.bf16.mxu0 %v3019_v14  ;;  %v3079_v14 = vld [vmem:[%s3818_s1 + $0x560] sm:$0xff]  }
  0x7d   :  { %2738 = vmatpush3.bf16.msra.mxu1 %v3018_v13  ;;  %v3078_v13 = vld [vmem:[%s3818_s1 + $0x598] sm:$0xff]  }
  0x7e   :  { %2739 = vmatprep.subr.bf16.mxu1 %v3021_v16  ;;  %v3081_v16 = vld [vmem:[%s3818_s1 + $0x5e0] sm:$0xff]  }
  0x7f   :  { %2718 = vmatpush3.bf16.msra.mxu0 %v3020_v15  ;;  %v3080_v15 = vld [vmem:[%s3818_s1 + $0x520] sm:$0xff]  }
  0x80   :  { %2747 = vmatprep.subr.bf16.mxu0 %v3025_v21  ;;  %v3086_v21 = vld [vmem:[%s3818_s1 + $0x5a8] sm:$0xff]  }
  0x81   :  { %2740 = vmatpush3.bf16.msra.mxu1 %v3024_v20  ;;  %v3085_v20 = vld [vmem:[%s3818_s1 + $0x5e8] sm:$0xff]  }
  0x82   :  { %1973 = vmatmul.mubr.bf16.vlgmr.msra.gmra.mrb[12].mxu0 %v2352_v18  ;;  %2769 = vmatprep.subr.bf16.mxu1 %v3029_v26  ;;  %v3083_v18 = vld [vmem:[%s3818_s1 + $0x568] sm:$0xff]   ;;  %v3091_v26 = vld [vmem:[%s3818_s1 + $0x578] sm:$0xff]  }
  0x83   :  { %2748 = vmatpush3.bf16.msra.mxu0 %v3028_v25  ;;  %2052 = vmatprep.mubr.bf16.mxu0 %v2357_v57  ;;  %v3090_v25 = vld [vmem:[%s3818_s1 + $0x5b0] sm:$0xff]  }
  0x84   :  { %2013 = vmatmul.mubr.bf16.vlgmr.msra.gmra.mrb[12].mxu1 %v2354_v23  ;;  %2749 = vmatprep.subr.bf16.mxu0 %v3031_v28  ;;  %v3088_v23 = vld [vmem:[%s3818_s1 + $0x530] sm:$0xff]   ;;  %v3093_v28 = vld [vmem:[%s3818_s1 + $0x5f8] sm:$0xff]  }
  0x85   :  { %2770 = vmatpush3.bf16.msra.mxu1 %v3030_v27  ;;  %2092 = vmatprep.mubr.bf16.mxu1 %v2359_v62  ;;  %v3092_v27 = vld [vmem:[%s3818_s1 + $0x538] sm:$0xff]  }
  0x86   :  { %2771 = vmatprep.subr.bf16.mxu1 %v3033_v30 }
  0x87   :  { %2750 = vmatpush3.bf16.msra.mxu0 %v3032_v29  ;;  %v31_v29 = vld [vmem:[%s3819_s0 + $0x50] sm:$0xff] }
  0x88   :  { %2751 = vmatprep.subr.bf16.mxu0 %v3035_v32  ;;  %v2360_v30 = vcombine.low %v31_v29, %v31_v29  ;;  %v3096_v32 = vld [vmem:[%s3818_s1 + $0x5b8] sm:$0xff]  }
  0x89   :  { %2772 = vmatpush3.bf16.msra.mxu1 %v3034_v31  ;;  %v2361_v31 = vcombine.high %v31_v29, %v31_v29 }
  0x8a   :  { %2773 = vmatprep.subr.bf16.mxu1 %v3037_v34  ;;  %v3112_v34 = vmov 0.0  }
  0x8b   :  { %2752 = vmatpush3.bf16.msra.mxu0 %v3036_v33  ;;  %v32_v33 = vld [vmem:[%s3819_s0 + $0x58] sm:$0xff] }
  0x8c   :  { %2753 = vmatprep.subr.bf16.mxu0 %v3039_v36  ;;  %v2363_v36 = vcombine.high %v32_v33, %v32_v33 }
  0x8d   :  { %2774 = vmatpush3.bf16.msra.mxu1 %v3038_v35  ;;  %v2362_v35 = vcombine.low %v32_v33, %v32_v33 }
  0x8e   :  { %2775 = vmatprep.subr.bf16.mxu1 %v3041_v38  ;;  %v3100_v38 = vld [vmem:[%s3818_s1 + $0x608] sm:$0xff]  }
  0x8f   :  { %2754 = vmatpush3.bf16.msra.mxu0 %v3040_v37  ;;  %v3099_v37 = vld [vmem:[%s3818_s1 + $0x600] sm:$0xff]  }
  0x90   :  { %2755 = vmatprep.subr.bf16.mxu0 %v3043_v40  ;;  %v3102_v40 = vld [vmem:[%s3818_s1 + $0x618] sm:$0xff]  }
  0x91   :  { %2776 = vmatpush3.bf16.msra.mxu1 %v3042_v39  ;;  %v3101_v39 = vld [vmem:[%s3818_s1 + $0x610] sm:$0xff]  }
  0x92   :  { %2777 = vmatprep.subr.bf16.mxu1 %v3045_v42 }
  0x93   :  { %2756 = vmatpush3.bf16.msra.mxu0 %v3044_v41  ;;  %v3103_v41 = vld [vmem:[%s3819_s0 + $0x60] ss:$0 sps:$4 sm:$0xff]  }
  0x94   :  { %2757 = vmatprep.subr.bf16.mxu0 %v3047_v44 }
  0x95   :  { %2778 = vmatpush3.bf16.msra.mxu1 %v3046_v43  ;;  %v2339_v43 = vld [vmem:[%s3820_s2] ss:$0 sm:$0xff] }
  0x96   :  { %2779 = vmatprep.subr.bf16.mxu1 %v3049_v46 }
  0x97   :  { %2758 = vmatpush3.bf16.msra.mxu0 %v3048_v45 }
  0x98   :  { %2759 = vmatprep.subr.bf16.mxu0 %v3051_v48 }
  0x99   :  { %2780 = vmatpush3.bf16.msra.mxu1 %v3050_v47 }
  0x9a   :  { %2781 = vmatprep.subr.bf16.mxu1 %v3053_v50 }
  0x9b   :  { %2760 = vmatpush3.bf16.msra.mxu0 %v3052_v49 }
  0x9c   :  { %2761 = vmatprep.subr.bf16.mxu0 %v3055_v52 }
  0x9d   :  { %2782 = vmatpush3.bf16.msra.mxu1 %v3054_v51 }
  0x9e   :  { %2783 = vmatprep.subr.bf16.mxu1 %v3057_v54 }
  0x9f   :  { %2762 = vmatpush3.bf16.msra.mxu0 %v3056_v53 }
  0xa0   :  { %2791 = vmatprep.subr.bf16.mxu0 %v3061_v59  ;;  %v3106_v59 = vld [vmem:[%s3821_s3 + $0x10] sm:$0xff]  }
  0xa1   :  { %2784 = vmatpush3.bf16.msra.mxu1 %v3060_v58 }
  0xa2   :  { %2053 = vmatmul.mubr.bf16.vlgmr.msra.gmra.mrb[16].mxu0 %v2356_v56  ;;  %2813 = vmatprep.subr.bf16.mxu1 %v3065_v0  ;;  %v3105_v56 = vld [vmem:[%s3821_s3 + $0x8] sm:$0xff]  }
  0xa3   :  { %2792 = vmatpush3.bf16.msra.mxu0 %v3064_v63  ;;  %2132 = vmatprep.mubr.bf16.mxu0 %v2361_v31 }
  0xa4   :  { %2093 = vmatmul.mubr.bf16.vlgmr.msra.gmra.mrb[16].mxu1 %v2358_v61  ;;  %2793 = vmatprep.subr.bf16.mxu0 %v3067_v2 }
  0xa5   :  { %2814 = vmatpush3.bf16.msra.mxu1 %v3066_v1  ;;  %2172 = vmatprep.mubr.bf16.mxu1 %v2363_v36 }
  0xa6   :  { %2815 = vmatprep.subr.bf16.mxu1 %v3069_v4  ;;  %v3107_v4 = vld [vmem:[%s3821_s3 + $0x18] sm:$0xff]  }
  0xa7   :  { %2794 = vmatpush3.bf16.msra.mxu0 %v3068_v3 }
  0xa8   :  { %2795 = vmatprep.subr.bf16.mxu0 %v3071_v6 }
  0xa9   :  { %2816 = vmatpush3.bf16.msra.mxu1 %v3070_v5 }
  0xaa   :  { %2817 = vmatprep.subr.bf16.mxu1 %v3073_v8  ;;  %v3109_v8 = vld [vmem:[%s3821_s3 + $0x28] sm:$0xff]  }
  0xab   :  { %2796 = vmatpush3.bf16.msra.mxu0 %v3072_v7  ;;  %v3108_v7 = vld [vmem:[%s3821_s3 + $0x20] sm:$0xff]  }
  0xac   :  { %2797 = vmatprep.subr.bf16.mxu0 %v3075_v10  ;;  %v3111_v10 = vld [vmem:[%s3821_s3 + $0x38] sm:$0xff]  }
  0xad   :  { %2818 = vmatpush3.bf16.msra.mxu1 %v3074_v9  ;;  %v3110_v9 = vld [vmem:[%s3821_s3 + $0x30] sm:$0xff]  }
  0xae   :  { %2819 = vmatprep.subr.bf16.mxu1 %v3077_v12 }
  0xaf   :  { %2798 = vmatpush3.bf16.msra.mxu0 %v3076_v11 }
  0xb0   :  { %2799 = vmatprep.subr.bf16.mxu0 %v3079_v14 }
  0xb1   :  { %2820 = vmatpush3.bf16.msra.mxu1 %v3078_v13 }
  0xb2   :  { %2821 = vmatprep.subr.bf16.mxu1 %v3081_v16 }
  0xb3   :  { %2800 = vmatpush3.bf16.msra.mxu0 %v3080_v15 }
  0xb4   :  { %2801 = vmatprep.subr.bf16.mxu0 %v3083_v18 }
  0xb5   :  { %2822 = vmatpush3.bf16.msra.mxu1 %v3082_v17 }
  0xb6   :  { %2823 = vmatprep.subr.bf16.mxu1 %v3085_v20 }
  0xb7   :  { %2802 = vmatpush3.bf16.msra.mxu0 %v3084_v19 }
  0xb8   :  { %2803 = vmatprep.subr.bf16.mxu0 %v3087_v22 }
  0xb9   :  { %2824 = vmatpush3.bf16.msra.mxu1 %v3086_v21 }
  0xba   :  { %2825 = vmatprep.subr.bf16.mxu1 %v3089_v24 }
  0xbb   :  { %2804 = vmatpush3.bf16.msra.mxu0 %v3088_v23 }
  0xbc   :  { %2805 = vmatprep.subr.bf16.mxu0 %v3091_v26 }
  0xbd   :  { %2826 = vmatpush3.bf16.msra.mxu1 %v3090_v25 }
  0xbe   :  { %2827 = vmatprep.subr.bf16.mxu1 %v3093_v28 }
  0xbf   :  { %2806 = vmatpush3.bf16.msra.mxu0 %v3092_v27 }
  0xc0   :  { %2849 = vmatprep.subr.bf16.mxu0 %v3112_v34 }
  0xc1   :  { %2828 = vmatpush3.bf16.msra.mxu1 %v3096_v32 }
  0xc2   :  { %2133 = vmatmul.mubr.bf16.vlgmr.msra.gmra.mrb[20].mxu0 %v2360_v30  ;;  %2861 = vmatprep.subr.bf16.mxu1 %v3112_v34 }
  0xc3   :  { %2850 = vmatpush3.bf16.msra.mxu0 %v3099_v37  ;;  %2857 = vmatprep.mubr.msk.bf16.mxu0 %vm3113_vm0, %v3112_v34 }
  0xc4   :  { %2173 = vmatmul.mubr.bf16.vlgmr.msra.gmra.mrb[20].mxu1 %v2362_v35  ;;  %2851 = vmatprep.subr.bf16.mxu0 %v3112_v34 }
  0xc5   :  { %2877 = vmatprep.mubr.msk.bf16.mxu1 %vm3113_vm0, %v3112_v34  ;;  %2862 = vmatpush3.bf16.msra.mxu1 %v3104_v55 }
  0xc6   :  { %2863 = vmatprep.subr.bf16.mxu1 %v3112_v34 }
  0xc7   :  { %2852 = vmatpush3.bf16.msra.mxu0 %v3100_v38 }
  0xc8   :  { %2853 = vmatprep.subr.bf16.mxu0 %v3112_v34 }
  0xc9   :  { %2864 = vmatpush3.bf16.msra.mxu1 %v3105_v56 }
  0xca   :  { %2865 = vmatprep.subr.bf16.mxu1 %v3112_v34 }
  0xcb   :  { %2854 = vmatpush3.bf16.msra.mxu0 %v3101_v39 }
  0xcc   :  { %2855 = vmatprep.subr.bf16.mxu0 %v3112_v34 }
  0xcd   :  { %2866 = vmatpush3.bf16.msra.mxu1 %v3106_v59 }
  0xce   :  { %2867 = vmatprep.subr.bf16.mxu1 %v3112_v34 }
  0xcf   :  { %2856 = vmatpush3.bf16.msra.mxu0 %v3102_v40 }
  0xd1   :  { %2868 = vmatpush3.bf16.msra.mxu1 %v3107_v4 }
  0xd2   :  { %2858 = vmatmul.mubr.msk.bf16.vlgmr.msra.gmra.mrb[24].mxu0 %vm1696_vm1, %v3103_v41  ;;  %2869 = vmatprep.subr.bf16.mxu1 %v3112_v34 }
  0xd5   :  { %2870 = vmatpush3.bf16.msra.mxu1 %v3108_v7 }
  0xd6   :  { %2871 = vmatprep.subr.bf16.mxu1 %v3112_v34 }
  0xd9   :  { %2872 = vmatpush3.bf16.msra.mxu1 %v3109_v8 }
  0xda   :  { %2873 = vmatprep.subr.bf16.mxu1 %v3112_v34 }
  0xdd   :  { %2874 = vmatpush3.bf16.msra.mxu1 %v3110_v9 }
  0xde   :  { %2875 = vmatprep.subr.bf16.mxu1 %v3112_v34 }
  0xe1   :  { %2876 = vmatpush3.bf16.msra.mxu1 %v3111_v10 }
  0xf5   :  { %v2587_v42 = vpop.f32.mrb[0].mxu0 }
  0xf6   :  { %v2588_v44 = vpop.f32.mrb[1].mxu0 }
  0xf7   :  { %v2589_v45 = vadd.f32 %v2588_v44, %v2587_v42  ;;  %v2590_v46 = vpop.f32.mrb[2].mxu0  ;;  %v2609_v47 = vpop.f32.mrb[0].mxu1 }
  0xf8   :  { %v2591_v48 = vpop.f32.mrb[3].mxu0  ;;  %v2610_v49 = vpop.f32.mrb[1].mxu1 }
  0xf9   :  { %v1735_v50 = vadd.f32 %v2589_v45, %v2339_v43  ;;  %v2611_v51 = vadd.f32 %v2610_v49, %v2609_v47  ;;  %v2612_v52 = vpop.f32.mrb[2].mxu1 }
  0xfa   :  { %v2613_v53 = vpop.f32.mrb[3].mxu1 }
  0xfb   :  { %v1775_v54 = vadd.f32 %v2611_v51, %v1735_v50 }
 0x115   :  { %v2631_v57 = vpop.f32.mrb[4].mxu0 }
 0x116   :  { %v2632_v58 = vpop.f32.mrb[5].mxu0 }
 0x117   :  { %v2633_v60 = vadd.f32 %v2632_v58, %v2631_v57  ;;  %v2634_v61 = vpop.f32.mrb[6].mxu0  ;;  %v2653_v62 = vpop.f32.mrb[4].mxu1 }
 0x118   :  { %v2635_v63 = vpop.f32.mrb[7].mxu0  ;;  %v2654_v1 = vpop.f32.mrb[5].mxu1 }
 0x119   :  { %v1815_v0 = vadd.f32 %v2633_v60, %v1775_v54  ;;  %v2655_v2 = vadd.f32 %v2654_v1, %v2653_v62  ;;  %v2656_v3 = vpop.f32.mrb[6].mxu1 }
 0x11a   :  { %v2657_v5 = vpop.f32.mrb[7].mxu1 }
 0x11b   :  { %v1855_v6 = vadd.f32 %v2655_v2, %v1815_v0  ;;  %v2562_v2 = vld [vmem:[%s3822_s4] ss:$0 sm:$0xff] }
 0x135   :  { %v2675_v11 = vpop.f32.mrb[8].mxu0 }
 0x136   :  { %v2676_v12 = vpop.f32.mrb[9].mxu0 }
 0x137   :  { %v2677_v13 = vadd.f32 %v2676_v12, %v2675_v11  ;;  %v2678_v14 = vpop.f32.mrb[10].mxu0  ;;  %v2697_v15 = vpop.f32.mrb[8].mxu1 }
 0x138   :  { %v2679_v16 = vpop.f32.mrb[11].mxu0  ;;  %v2698_v17 = vpop.f32.mrb[9].mxu1 }
 0x139   :  { %v1895_v18 = vadd.f32 %v2677_v13, %v1855_v6  ;;  %v2699_v19 = vadd.f32 %v2698_v17, %v2697_v15  ;;  %v2700_v20 = vpop.f32.mrb[10].mxu1 }
 0x13a   :  { %v2701_v21 = vpop.f32.mrb[11].mxu1 }
 0x13b   :  { %v1935_v22 = vadd.f32 %v2699_v19, %v1895_v18 }
 0x155   :  { %v2719_v23 = vpop.f32.mrb[12].mxu0 }
 0x156   :  { %v2720_v24 = vpop.f32.mrb[13].mxu0 }
 0x157   :  { %v2721_v25 = vadd.f32 %v2720_v24, %v2719_v23  ;;  %v2722_v26 = vpop.f32.mrb[14].mxu0  ;;  %v2741_v27 = vpop.f32.mrb[12].mxu1 }
 0x158   :  { %v2723_v28 = vpop.f32.mrb[15].mxu0  ;;  %v2742_v29 = vpop.f32.mrb[13].mxu1 }
 0x159   :  { %v1975_v30 = vadd.f32 %v2721_v25, %v1935_v22  ;;  %v2743_v31 = vadd.f32 %v2742_v29, %v2741_v27  ;;  %v2744_v32 = vpop.f32.mrb[14].mxu1 }
 0x15a   :  { %v2745_v33 = vpop.f32.mrb[15].mxu1 }
 0x15b   :  { %v2015_v34 = vadd.f32 %v2743_v31, %v1975_v30 }
 0x175   :  { %v2763_v35 = vpop.f32.mrb[16].mxu0 }
 0x176   :  { %v2764_v36 = vpop.f32.mrb[17].mxu0 }
 0x177   :  { %v2765_v37 = vadd.f32 %v2764_v36, %v2763_v35  ;;  %v2766_v38 = vpop.f32.mrb[18].mxu0  ;;  %v2785_v39 = vpop.f32.mrb[16].mxu1 }
 0x178   :  { %v2767_v40 = vpop.f32.mrb[19].mxu0  ;;  %v2786_v42 = vpop.f32.mrb[17].mxu1 }
 0x179   :  { %v2055_v41 = vadd.f32 %v2765_v37, %v2015_v34  ;;  %v2787_v43 = vadd.f32 %v2786_v42, %v2785_v39  ;;  %v2788_v44 = vpop.f32.mrb[18].mxu1 }
 0x17a   :  { %v2789_v45 = vpop.f32.mrb[19].mxu1 }
 0x17b   :  { %v2095_v46 = vadd.f32 %v2787_v43, %v2055_v41 }
 0x195   :  { %v2807_v47 = vpop.f32.mrb[20].mxu0 }
 0x196   :  { %v2808_v48 = vpop.f32.mrb[21].mxu0 }
 0x197   :  { %v2809_v49 = vadd.f32 %v2808_v48, %v2807_v47  ;;  %v2810_v50 = vpop.f32.mrb[22].mxu0  ;;  %v2829_v51 = vpop.f32.mrb[20].mxu1 }
 0x198   :  { %v2811_v52 = vpop.f32.mrb[23].mxu0  ;;  %v2830_v53 = vpop.f32.mrb[21].mxu1 }
 0x199   :  { %v2135_v54 = vadd.f32 %v2809_v49, %v2095_v46  ;;  %v2831_v55 = vadd.f32 %v2830_v53, %v2829_v51  ;;  %v2832_v56 = vpop.f32.mrb[22].mxu1 }
 0x19a   :  { %v2833_v57 = vpop.f32.mrb[23].mxu1 }
 0x19b   :  { %v2175_v58 = vadd.f32 %v2831_v55, %v2135_v54 }
 0x1a5   :  { %v2214_v59 = vpop.f32.mrb[24].mxu0 }
 0x1a6   :  { %v2215_v60 = vadd.f32 %v2214_v59, %v2175_v58  ;;  %v2859_v61 = vpop.f32.mrb[25].mxu0 }
 0x1a7   :  { %v2217_v62 = vpop.f32.mrb[26].mxu0 }
 0x1a8   :  { %v2220_v63 = vmax.f32 %v2215_v60, 0.0  ;;  %v2860_v0 = vpop.f32.mrb[27].mxu0 }
 0x1aa   :  { %v2221_v1 = vpack.c.bf16 %v2220_v63, %v2220_v63 }
 0x1ac   :  { %2878 = vmatmul.mubr.bf16.vlgmr.msra.gmra.mrb[24].mxu1 %v2221_v1 }
 0x27f   :  { %v2327_v3 = vpop.f32.mrb[24].mxu1 }
 0x280   :  { %v2328_v4 = vadd.f32 %v2562_v2, %v2327_v3  ;;  %v2879_v5 = vpop.f32.mrb[25].mxu1 }
 0x281   :  { %v2330_v6 = vpop.f32.mrb[26].mxu1 }
 0x282   :  { %2334 = vst.msk [vmem:[%s3823_s5] sm:$0xff] %vm2333_vm2, %v2328_v4  ;;  %v2880_v7 = vpop.f32.mrb[27].mxu1 }

// kernel: net_forward.4
= control target key start
LH: loop header
LB: loop body
LE: loop exit
PB: predicated region body
PF: predicated region fallthrough
CT: control target
= control target key end

     0   :  { %s4665_s15 = smov 0   ;;  %s5474_s0 = inlined_call_operand.vmem [shape: bf16[2,272,32], index: 0, kind: input, shape index: {}]   ;;  %s5475_s1 = inlined_call_operand.vmem [shape: bf16[288,64], index: 1, kind: input, shape index: {}]   ;;  %s5476_s2 = inlined_call_operand.vmem [shape: f32[1,64], index: 2, kind: input, shape index: {}]   ;;  %s5477_s3 = inlined_call_operand.vmem [shape: bf16[49,224], index: 3, kind: input, shape index: {}]   ;;  %s5478_s4 = inlined_call_operand.vmem [shape: bf16[2,49,64], index: 4, kind: output, shape index: {}]  }
   0x1 LB: > { %s3601_s16 = sadd.s32 4294967295, %s4636_s15   ;;  %p3605_p0 = scmp.ge.s32.totalorder %s4636_s15, 1  ;;  %s4636_s15 = sphi %s4665_s15, %s14_s15  }
   0x2   : > { %p162_p1 = scmp.lt.s32.totalorder %s4636_s15, 3 }
   0x4   : > { %p163_p2 = pnand %p3605_p0, %p162_p1 }
   0x5   : > { %v4525_v0 = vld [vmem:[%s5475_s1 + $0x10] sm:$0xff] (!%p163_p2)   ;;  %p188_p3 = scmp.lt.s32.totalorder (!%p163_p2), %s3601_s16, 1  ;;  %v4526_v1 = vld [vmem:[%s5475_s1 + $0x40] sm:$0xff] (!%p163_p2)   ;;  %v4527_v2 = vld [vmem:[%s5475_s1 + $0x18] sm:$0xff] (!%p163_p2)   ;;  %vm313_vm0 = vsmask.f32 (!%p163_p2), 7424 }
   0x6   : > { %166 = sbr.rel (%p163_p2) target bundleno = 790 (0x316), region = 36  ;;  %4001 = vmatprep.subr.bf16.mxu1 (!%p163_p2), %v4525_v0  ;;  %4129 = vmatprep.subr.bf16.mxu0 (!%p163_p2), %v4526_v1  ;;  %v4528_v3 = vld [vmem:[%s5475_s1 + $0x48] sm:$0xff] (!%p163_p2)   ;;  %v4691_v4 = vld [vmem:[%s5475_s1 + $0x50] sm:$0xff] (!%p163_p2)   ;;  %vm442_vm1 = vcmask (!%p163_p2), 261120   ;;  %v4548_v45 = vld [vmem:[%s5475_s1 + $0x58] sm:$0xff] (!%p163_p2)   ;;  %vm823_vm2 = vcmask (!%p163_p2), 1046528  }
   0x7   : > { %4002 = vmatpush3.bf16.msra.mxu1 (!%p163_p2), %v4525_v0  ;;  %4130 = vmatpush3.bf16.msra.mxu0 (!%p163_p2), %v4526_v1  ;;  %vm199_vm3 = vcmask (!%p163_p2), 523264   ;;  %vm3427_vm4 = vcmask (!%p163_p2), 785408   ;;  %vm3533_vm5 = vcmask (!%p163_p2), 519168   ;;  %vm3540_vm6 = vcmask (!%p163_p2), 516096  }
   0x8   : > { %4003 = vmatprep.subr.bf16.mxu1 (!%p163_p2), %v4527_v2  ;;  %4131 = vmatprep.subr.bf16.mxu0 (!%p163_p2), %v4528_v3  ;;  %vm3541_vm7 = vsmask.f32 (!%p163_p2), 256 }
   0x9   : > { %vm3542_vm8 = vmand (!%p163_p2), %vm3540_vm6, %vm3541_vm7 }
   0xb   : > { %4004 = vmatpush3.bf16.msra.mxu1 (!%p163_p2), %v4527_v2  ;;  %4132 = vmatpush3.bf16.msra.mxu0 (!%p163_p2), %v4528_v3 }
   0xc   : > { %4161 = vmatprep.subr.bf16.mxu0 (!%p163_p2), %v4691_v4 }
   0xd   : > { %s5480_s16 = smov (!%p188_p3, %s3601_s16), 1 }
   0xe   : > { %s4513_s25 = smul.u32 136, %s5480_s16 }
  0x10   : > { %s4696_s30 = scalar_lea.vmem %s5474_s0, %s4513_s25  ;;  %s4514_s25 = smul.u32 28, %s5480_s16 }
  0x11   : > { %v203_v5 = vld [vmem:[%s4696_s30] sm:$0xf]  ;;  %v4700_v6 = vld [vmem:[%s4696_s30 + $0x4] sm:$0xf]  ;;  %v4706_v8 = vld [vmem:[%s4696_s30 + $0x8] sm:$0xff]  }
  0x12   : > { %v4703_v7 = vcombine.low %v203_v5, %v4700_v6  ;;  %v1409_v9 = vld [vmem:[%s4696_s30 + $0x8] sm:$0xf]  ;;  %v4710_v10 = vld [vmem:[%s4696_s30 + $0xc] sm:$0xf]  ;;  %v322_v13 = vshll.u32 %v4706_v8, 16  ;;  %v326_v14 = vshrl.u32 %v4706_v8, 16  ;;  %s5455_s28 = scalar_lea.vmem %s5478_s4, %s4514_s25 }
  0x13   : > { %v4718_v15 = vld [vmem:[%s4696_s30 + $0x10] sm:$0xff]   ;;  %v3702_v17 = vcombine.low %v1409_v9, %v4710_v10  ;;  %v4728_v25 = vld [vmem:[%s4696_s30 + $0x18] sm:$0xff]   ;;  %v4735_v31 = vld [vmem:[%s4696_s30 + $0x20] sm:$0xff]  }
  0x14   : > { %v315_v11 = vshrl.u32 %v4703_v7, 16  ;;  %v317_v12 = vshll.u32 %v4703_v7, 16  ;;  %v4721_v16 = vld [vmem:[%s4696_s30 + $0x10] sm:$0xff]   ;;  %v324_v19 = vrot.slane %v322_v13, 1  ;;  %v1523_v20 = vshll.u32 %v4718_v15, 16  ;;  %v4731_v29 = vld [vmem:[%s4696_s30 + $0x18] sm:$0xff]  }
  0x15   : > { %v1527_v21 = vshrl.u32 %v4718_v15, 16  ;;  %v1516_v22 = vshrl.u32 %v3702_v17, 16  ;;  %v1518_v23 = vshll.u32 %v3702_v17, 16  ;;  %v330_v24 = vshll.u32 %v4721_v16, 16  ;;  %v4745_v44 = vld [vmem:[%s4696_s30 + $0x20] sm:$0xff]   ;;  %v4753_v49 = vld [vmem:[%s4696_s30 + $0x28] sm:$0xff]  }
  0x16   : > { %v319_v18 = vrot.slane %v317_v12, 1  ;;  %v328_v27 = vor.u32 %v326_v14, %v324_v19  ;;  %v1525_v28 = vrot.slane %v1523_v20, 1  ;;  %v334_v30 = vshrl.u32 %v4721_v16, 16  ;;  %v4759_v54 = vld [vmem:[%s4696_s30 + $0x28] sm:$0xff]   ;;  %v4771_v63 = vld [vmem:[%s4696_s30 + $0x30] sm:$0xff]   ;;  %v4784_v17 = vld [vmem:[%s4696_s30 + $0x38] sm:$0xff]  }
  0x17   : > { %v1520_v32 = vrot.slane %v1518_v23, 1  ;;  %v332_v33 = vrot.slane %v330_v24, 1  ;;  %v1531_v34 = vshll.u32 %v4728_v25, 16  ;;  %v1535_v35 = vshrl.u32 %v4728_v25, 16  ;;  %v4777_v3 = vld [vmem:[%s4696_s30 + $0x30] sm:$0xff]  }
  0x18   : > { %v320_v26 = vor.u32 %v319_v18, %v315_v11  ;;  %v1529_v37 = vor.u32 %v1527_v21, %v1525_v28  ;;  %v338_v38 = vshll.u32 %v4731_v29, 16  ;;  %v1539_v39 = vshll.u32 %v4735_v31, 16 }
  0x19   : > { %v1521_v40 = vor.u32 %v1520_v32, %v1516_v22  ;;  %v333_v41 = vsel %vm313_vm0, %v328_v27, %v332_v33  ;;  %v1533_v42 = vrot.slane %v1531_v34, 1  ;;  %v336_v43 = vor.u32 %v334_v30, %v332_v33  ;;  %v4803_v34 = vld [vmem:[%s4696_s30 + $0x40] sm:$0xff]  }
  0x1a   : > { %v325_v36 = vsel %vm313_vm0, %v320_v26, %v324_v19  ;;  %v340_v46 = vrot.slane %v338_v38, 1  ;;  %v1541_v47 = vrot.slane %v1539_v39, 1  ;;  %v342_v48 = vshrl.u32 %v4731_v29, 16  ;;  %v4788_v19 = vld [vmem:[%s4696_s30 + $0x38] sm:$0xff]   ;;  %v4808_v39 = vld [vmem:[%s4696_s30 + $0x48] sm:$0xff]  }
  0x1b   : > { %4005 = vmatprep.mubr.msk.bf16.mxu1 %vm442_vm1, %v325_v36  ;;  %v1526_v50 = vsel %vm313_vm0, %v1521_v40, %v1525_v28  ;;  %v1534_v51 = vsel %vm313_vm0, %v1529_v37, %v1533_v42  ;;  %v1537_v52 = vor.u32 %v1535_v35, %v1533_v42  ;;  %v346_v53 = vshll.u32 %v4745_v44, 16  ;;  %v4797_v28 = vld [vmem:[%s4696_s30 + $0x40] sm:$0xff]   ;;  %v4811_v40 = vld [vmem:[%s4696_s30 + $0x48] sm:$0xff]  }
  0x1c   : > { %4006 = vmatmul.mubr.msk.bf16.vlgmr.msra.gmra.mrb[0].mxu1 %vm442_vm1, %v333_v41  ;;  %4133 = vmatprep.mubr.msk.bf16.mxu0 %vm442_vm1, %v1526_v50  ;;  %v341_v55 = vsel %vm313_vm0, %v336_v43, %v340_v46  ;;  %v344_v56 = vor.u32 %v342_v48, %v340_v46  ;;  %v1543_v57 = vshrl.u32 %v4735_v31, 16  ;;  %v1547_v58 = vshll.u32 %v4753_v49, 16  ;;  %v4818_v48 = vld [vmem:[%s4696_s30 + $0x50] sm:$0xff]  }
  0x1d   : > { %4134 = vmatmul.mubr.msk.bf16.vlgmr.msra.gmra.mrb[0].mxu0 %vm442_vm1, %v1534_v51  ;;  %4009 = vmatprep.mubr.msk.bf16.mxu1 %vm442_vm1, %v341_v55  ;;  %v1542_v59 = vsel %vm313_vm0, %v1537_v52, %v1541_v47  ;;  %v348_v60 = vrot.slane %v346_v53, 1  ;;  %v350_v61 = vshrl.u32 %v4745_v44, 16  ;;  %v354_v62 = vshll.u32 %v4759_v54, 16 }
  0x1e   : > { %4162 = vmatpush3.bf16.msra.mxu0 %v4691_v4  ;;  %4137 = vmatprep.mubr.msk.bf16.mxu0 %vm442_vm1, %v1542_v59  ;;  %v1545_v0 = vor.u32 %v1543_v57, %v1541_v47  ;;  %v1549_v1 = vrot.slane %v1547_v58, 1  ;;  %v1551_v2 = vshrl.u32 %v4753_v49, 16  ;;  %v358_v5 = vshrl.u32 %v4759_v54, 16  ;;  %v4828_v58 = vld [vmem:[%s4696_s30 + $0x50] sm:$0xff]  }
  0x1f   : > { %v349_v9 = vsel %vm313_vm0, %v344_v56, %v348_v60  ;;  %v352_v11 = vor.u32 %v350_v61, %v348_v60  ;;  %v356_v12 = vrot.slane %v354_v62, 1  ;;  %v1555_v13 = vshll.u32 %v4771_v63, 16  ;;  %4163 = vmatprep.subr.bf16.mxu0 %v4548_v45 }
  0x20   : > { %v1553_v4 = vor.u32 %v1551_v2, %v1549_v1  ;;  %v362_v14 = vshll.u32 %v4777_v3, 16  ;;  %v1559_v18 = vshrl.u32 %v4771_v63, 16  ;;  %v366_v22 = vshrl.u32 %v4777_v3, 16  ;;  %v4835_v2 = vld [vmem:[%s4696_s30 + $0x58] sm:$0xff]  }
  0x21   : > { %v357_v20 = vsel %vm313_vm0, %v352_v11, %v356_v12  ;;  %v1557_v21 = vrot.slane %v1555_v13, 1  ;;  %v1550_v23 = vsel %vm313_vm0, %v1545_v0, %v1549_v1  ;;  %v1563_v26 = vshll.u32 %v4784_v17, 16 }
  0x22   : > { %v364_v24 = vrot.slane %v362_v14, 1  ;;  %v370_v27 = vshll.u32 %v4788_v19, 16  ;;  %4164 = vmatpush3.bf16.msra.mxu0 %v4548_v45  ;;  %v360_v32 = vor.u32 %v358_v5, %v356_v12  ;;  %v1567_v33 = vshrl.u32 %v4784_v17, 16 }
  0x23   : > { %v1558_v30 = vsel %vm313_vm0, %v1553_v4, %v1557_v21  ;;  %v1565_v37 = vrot.slane %v1563_v26, 1  ;;  %v1571_v38 = vshll.u32 %v4797_v28, 16  ;;  %v1561_v41 = vor.u32 %v1559_v18, %v1557_v21 }
  0x24   : > { %4010 = vmatmul.mubr.msk.bf16.gmra.mrb[4].mxu1 %vm442_vm1, %v349_v9  ;;  %v368_v35 = vor.u32 %v366_v22, %v364_v24  ;;  %v372_v36 = vrot.slane %v370_v27, 1  ;;  %v378_v42 = vshll.u32 %v4803_v34, 16  ;;  %v365_v43 = vsel %vm313_vm0, %v360_v32, %v364_v24  ;;  %v4839_v9 = vld [vmem:[%s4696_s30 + $0x58] sm:$0xff]  }
  0x25   : > { %4013 = vmatprep.mubr.msk.bf16.mxu1 %vm442_vm1, %v357_v20  ;;  %4138 = vmatmul.mubr.msk.bf16.gmra.mrb[4].mxu0 %vm442_vm1, %v1550_v23  ;;  %v1569_v45 = vor.u32 %v1567_v33, %v1565_v37  ;;  %v1573_v46 = vrot.slane %v1571_v38, 1  ;;  %v374_v47 = vshrl.u32 %v4788_v19, 16  ;;  %v382_v51 = vshrl.u32 %v4803_v34, 16  ;;  %v4846_v20 = vld [vmem:[%s4696_s30 + $0x60] sm:$0xff]   ;;  %v4863_v38 = vld [vmem:[%s4696_s30 + $0x68] sm:$0xff]  }
  0x26   : > { %4141 = vmatprep.mubr.msk.bf16.mxu0 %vm442_vm1, %v1558_v30  ;;  %v373_v50 = vsel %vm313_vm0, %v368_v35, %v372_v36  ;;  %v386_v52 = vshll.u32 %v4811_v40, 16  ;;  %v1579_v53 = vshll.u32 %v4808_v39, 16  ;;  %v1566_v55 = vsel %vm313_vm0, %v1561_v41, %v1565_v37  ;;  %v4856_v33 = vld [vmem:[%s4696_s30 + $0x60] sm:$0xff]  }
  0x27   : > { %v380_v56 = vrot.slane %v378_v42, 1  ;;  %v1575_v57 = vshrl.u32 %v4797_v28, 16  ;;  %v1574_v59 = vsel %vm313_vm0, %v1569_v45, %v1573_v46  ;;  %v376_v60 = vor.u32 %v374_v47, %v372_v36  ;;  %v4560_v45 = vld [vmem:[%s5475_s1] sm:$0xff]   ;;  %v4873_v47 = vld [vmem:[%s4696_s30 + $0x70] sm:$0xff]  }
  0x28   : > { %v1583_v61 = vshrl.u32 %v4808_v39, 16  ;;  %v1587_v62 = vshll.u32 %v4818_v48, 16  ;;  %v388_v1 = vrot.slane %v386_v52, 1  ;;  %v1581_v5 = vrot.slane %v1579_v53, 1  ;;  %4033 = vmatprep.subr.bf16.mxu1 %v4560_v45  ;;  %v4562_v53 = vld [vmem:[%s5475_s1 + $0x8] sm:$0xff]  }
  0x29   : > { %v384_v0 = vor.u32 %v382_v51, %v380_v56  ;;  %v1577_v11 = vor.u32 %v1575_v57, %v1573_v46  ;;  %v390_v12 = vshrl.u32 %v4811_v40, 16  ;;  %v394_v13 = vshll.u32 %v4828_v58, 16  ;;  %4034 = vmatpush3.bf16.msra.mxu1 %v4560_v45 }
  0x2a   : > { %v381_v4 = vsel %vm313_vm0, %v376_v60, %v380_v56  ;;  %v1585_v14 = vor.u32 %v1583_v61, %v1581_v5  ;;  %v1589_v18 = vrot.slane %v1587_v62, 1  ;;  %v398_v22 = vshrl.u32 %v4828_v58, 16  ;;  %v4886_v60 = vld [vmem:[%s5475_s1 + $0x60] sm:$0xff]   ;;  %4035 = vmatprep.subr.bf16.mxu1 %v4562_v53 }
  0x2b   : > { %v389_v21 = vsel %vm313_vm0, %v384_v0, %v388_v1  ;;  %v402_v23 = vshll.u32 %v4835_v2, 16  ;;  %v1595_v24 = vshll.u32 %v4839_v9, 16  ;;  %v1582_v26 = vsel %vm313_vm0, %v1577_v11, %v1581_v5  ;;  %4193 = vmatprep.subr.bf16.mxu0 %v4886_v60  ;;  %v4898_v5 = vld [vmem:[%s5475_s1 + $0x20] sm:$0xff]  }
  0x2c   : > { %4014 = vmatmul.mubr.msk.bf16.gmra.mrb[8].mxu1 %vm442_vm1, %v365_v43  ;;  %v392_v27 = vor.u32 %v390_v12, %v388_v1  ;;  %v396_v30 = vrot.slane %v394_v13, 1  ;;  %v1591_v32 = vshrl.u32 %v4818_v48, 16  ;;  %v1590_v35 = vsel %vm313_vm0, %v1585_v14, %v1589_v18  ;;  %v4866_v43 = vld [vmem:[%s4696_s30 + $0x68] sm:$0xff]   ;;  %v4892_v1 = vld [vmem:[%s4696_s30 + $0x70] ss:$0 sps:$4 sm:$0x11]  }
  0x2d   : > { %4017 = vmatprep.mubr.msk.bf16.mxu1 %vm442_vm1, %v373_v50  ;;  %4142 = vmatmul.mubr.msk.bf16.gmra.mrb[8].mxu0 %vm442_vm1, %v1566_v55  ;;  %v1599_v36 = vshrl.u32 %v4839_v9, 16  ;;  %v1603_v37 = vshll.u32 %v4846_v20, 16  ;;  %v404_v42 = vrot.slane %v402_v23, 1  ;;  %v1597_v46 = vrot.slane %v1595_v24, 1 }
  0x2e   : > { %4145 = vmatprep.mubr.msk.bf16.mxu0 %vm442_vm1, %v1574_v59  ;;  %v400_v41 = vor.u32 %v398_v22, %v396_v30  ;;  %v397_v50 = vsel %vm313_vm0, %v392_v27, %v396_v30  ;;  %v1593_v51 = vor.u32 %v1591_v32, %v1589_v18  ;;  %v410_v52 = vshll.u32 %v4856_v33, 16  ;;  %4036 = vmatpush3.bf16.msra.mxu1 %v4562_v53  ;;  %v4911_v27 = vld [vmem:[%s4696_s30 + $0x78] ss:$0 sps:$4 sm:$0x11]   ;;  %v815_v30 = vld [vmem:[%s4696_s30] sm:$0xe] }
  0x2f   : > { %v1601_v55 = vor.u32 %v1599_v36, %v1597_v46  ;;  %v1605_v56 = vrot.slane %v1603_v37, 1  ;;  %v406_v57 = vshrl.u32 %v4835_v2, 16  ;;  %v1611_v59 = vshll.u32 %v4863_v38, 16  ;;  %4065 = vmatprep.subr.bf16.mxu1 %v4898_v5  ;;  %v1858_v37 = vld [vmem:[%s4696_s30 + $0x8] sm:$0xe] }
  0x30   : > { %v405_v61 = vsel %vm313_vm0, %v400_v41, %v404_v42  ;;  %v414_v62 = vshrl.u32 %v4856_v33, 16  ;;  %v418_v0 = vshll.u32 %v4866_v43, 16  ;;  %v1598_v11 = vsel %vm313_vm0, %v1593_v51, %v1597_v46 }
  0x31   : > { %v412_v12 = vrot.slane %v410_v52, 1  ;;  %v1607_v13 = vshrl.u32 %v4846_v20, 16  ;;  %v1606_v14 = vsel %vm313_vm0, %v1601_v55, %v1605_v56  ;;  %v408_v18 = vor.u32 %v406_v57, %v404_v42 }
  0x32   : > { %v1613_v22 = vrot.slane %v1611_v59, 1  ;;  %v420_v24 = vrot.slane %v418_v0, 1  ;;  %v422_v36 = vshrl.u32 %v4866_v43, 16  ;;  %v3655_v45 = vcombine.low %v815_v30, %v4700_v6 }
  0x33   : > { %v416_v23 = vor.u32 %v414_v62, %v412_v12  ;;  %v1609_v32 = vor.u32 %v1607_v13, %v1605_v56  ;;  %v413_v41 = vsel %vm313_vm0, %v408_v18, %v412_v12  ;;  %v825_v51 = vrot.slane %v4706_v8, 1 }
  0x34   : > { %4018 = vmatmul.mubr.msk.bf16.gmra.mrb[12].mxu1 %vm442_vm1, %v381_v4  ;;  %v1619_v4 = vshll.u32 %v4873_v47, 16  ;;  %v1627_v53 = vshll.u32 %v4911_v27, 16  ;;  %v824_v55 = vrot.slane %v3655_v45, 1  ;;  %v827_v56 = vrot.slane %v4721_v16, 1 }
  0x35   : > { %4021 = vmatprep.mubr.msk.bf16.mxu1 %vm442_vm1, %v389_v21  ;;  %4146 = vmatmul.mubr.msk.bf16.gmra.mrb[12].mxu0 %vm442_vm1, %v1582_v26  ;;  %v1615_v21 = vshrl.u32 %v4863_v38, 16  ;;  %v426_v26 = vshll.u32 %v4892_v1, 16  ;;  %v421_v46 = vsel %vm313_vm0, %v416_v23, %v420_v24  ;;  %v1614_v57 = vsel %vm313_vm0, %v1609_v32, %v1613_v22 }
  0x36   : > { %4149 = vmatprep.mubr.msk.bf16.mxu0 %vm442_vm1, %v1590_v35  ;;  %v1621_v35 = vrot.slane %v1619_v4, 1  ;;  %v424_v59 = vor.u32 %v422_v36, %v420_v24  ;;  %v4930_v62 = vsel %vm823_vm2, %v824_v55, %v825_v51  ;;  %v4935_v0 = vsel %vm823_vm2, %v825_v51, %v827_v56 }
  0x37   : > { %v1617_v42 = vor.u32 %v1615_v21, %v1613_v22  ;;  %v428_v52 = vrot.slane %v426_v26, 1  ;;  %v1629_v12 = vrot.slane %v1627_v53, 1  ;;  %v1869_v21 = vrot.slane %v4728_v25, 1  ;;  %v4565_v25 = vld [vmem:[%s5475_s1 + $0x68] sm:$0xff]   ;;  %v4572_v53 = vld [vmem:[%s4696_s30 + $0x20] sm:$0xff]  }
  0x38   : > { %v1871_v22 = vrot.slane %v4735_v31, 1  ;;  %v4966_v31 = vld [vmem:[%s5475_s1 + $0x30] sm:$0xff]   ;;  %v1875_v24 = vrot.slane %v4771_v63, 1  ;;  %v1877_v63 = vrot.slane %v4784_v17, 1  ;;  %v1883_v17 = vrot.slane %v4818_v48, 1 }
  0x39   : > { %v1622_v6 = vsel %vm313_vm0, %v1617_v42, %v1621_v35  ;;  %v429_v13 = vsel %vm313_vm0, %v424_v59, %v428_v52  ;;  %v1889_v42 = vrot.slane %v4863_v38, 1  ;;  %v1893_v38 = vrot.slane %v4911_v27, 1  ;;  %v4586_v27 = vld [vmem:[%s5475_s1 + $0x38] sm:$0xff]   ;;  %v4574_v59 = vld [vmem:[%s4696_s30 + $0x30] sm:$0xff]  }
  0x3a   : > { %v1878_v30 = vsel %vm823_vm2, %v1875_v24, %v1877_v63  ;;  %v4570_v52 = vld [vmem:[%s4696_s30 + $0x18] sm:$0xff]   ;;  %v833_v55 = vrot.slane %v4759_v54, 1 }
  0x3c   : > { %4022 = vmatmul.mubr.msk.bf16.gmra.mrb[16].mxu1 %vm442_vm1, %v397_v50  ;;  %v1623_v50 = vshrl.u32 %v4873_v47, 16 }
  0x3d   : > { %4025 = vmatprep.mubr.msk.bf16.mxu1 %vm442_vm1, %v405_v61  ;;  %4150 = vmatmul.mubr.msk.bf16.gmra.mrb[16].mxu0 %vm442_vm1, %v1598_v11  ;;  %v3733_v61 = vcombine.low %v1858_v37, %v4710_v10  ;;  %v1885_v37 = vrot.slane %v4839_v9, 1  ;;  %v1891_v9 = vrot.slane %v4873_v47, 1 }
  0x3e   : > { %4153 = vmatprep.mubr.msk.bf16.mxu0 %vm442_vm1, %v1606_v14  ;;  %v1625_v11 = vor.u32 %v1623_v50, %v1621_v35  ;;  %v1867_v14 = vrot.slane %v4718_v15, 1  ;;  %v4567_v15 = vld [vmem:[%s5475_s1 + $0x28] sm:$0xff]   ;;  %v1881_v35 = vrot.slane %v4808_v39, 1  ;;  %v1887_v39 = vrot.slane %v4846_v20, 1 }
  0x3f   : > { %v1866_v4 = vrot.slane %v3733_v61, 1  ;;  %v1886_v48 = vsel %vm823_vm2, %v1883_v17, %v1885_v37  ;;  %v1892_v45 = vsel %vm823_vm2, %v1889_v42, %v1891_v9  ;;  %v1894_v47 = vsel %vm823_vm2, %v1891_v9, %v1893_v38  ;;  %v4590_v38 = vld [vmem:[%s4696_s30 + $0x10] sm:$0xff]  }
  0x40   : > { %v1630_v10 = vsel %vm313_vm0, %v1625_v11, %v1629_v12  ;;  %v1870_v23 = vsel %vm823_vm2, %v1867_v14, %v1869_v21  ;;  %v1884_v36 = vsel %vm823_vm2, %v1881_v35, %v1883_v17  ;;  %v1890_v20 = vsel %vm823_vm2, %v1887_v39, %v1889_v42  ;;  %v4575_v11 = vld [vmem:[%s4696_s30 + $0x38] sm:$0xff]   ;;  %v4576_v12 = vld [vmem:[%s4696_s30 + $0x40] sm:$0xff]  }
  0x41   : > { %v1868_v18 = vsel %vm823_vm2, %v1866_v4, %v1867_v14  ;;  %v829_v50 = vrot.slane %v4731_v29, 1  ;;  %v837_v61 = vrot.slane %v4788_v19, 1  ;;  %v4577_v14 = vld [vmem:[%s4696_s30 + $0x48] sm:$0xff]  }
  0x43   : > { %v830_v51 = vsel %vm823_vm2, %v827_v56, %v829_v50 }
  0x44   : > { %4026 = vmatmul.mubr.msk.bf16.gmra.mrb[20].mxu1 %vm442_vm1, %v413_v41  ;;  %v1888_v41 = vsel %vm823_vm2, %v1885_v37, %v1887_v39 }
  0x45   : > { %4029 = vmatprep.mubr.msk.bf16.mxu1 %vm442_vm1, %v421_v46  ;;  %4154 = vmatmul.mubr.msk.bf16.gmra.mrb[20].mxu0 %vm442_vm1, %v1614_v57  ;;  %v4569_v46 = vld [vmem:[%s4696_s30 + $0x10] sm:$0xff]  }
  0x46   : > { %4157 = vmatprep.mubr.msk.bf16.mxu0 %vm442_vm1, %v1622_v6  ;;  %v835_v6 = vrot.slane %v4777_v3, 1 }
  0x4c   : > { %4030 = vmatmul.mubr.msk.bf16.gmra.mrb[24].mxu1 %vm442_vm1, %v429_v13 }
  0x4d   : > { %4037 = vmatprep.mubr.msk.bf16.mxu1 %vm442_vm1, %v4703_v7  ;;  %4158 = vmatmul.mubr.msk.bf16.gmra.mrb[24].mxu0 %vm442_vm1, %v1630_v10  ;;  %v1872_v7 = vsel %vm823_vm2, %v1869_v21, %v1871_v22  ;;  %v4579_v10 = vld [vmem:[%s4696_s30 + $0x50] sm:$0xff]  }
  0x4e   : > { %4165 = vmatprep.mubr.msk.bf16.mxu0 %vm442_vm1, %v1868_v18 }
  0x54   : > { %4038 = vmatmul.mubr.msk.bf16.vlgmr.msra.gmra.mrb[0].mxu1 %vm442_vm1, %v4706_v8  ;;  %v1873_v8 = vrot.slane %v4753_v49, 1 }
  0x55   : > { %4041 = vmatprep.mubr.msk.bf16.mxu1 %vm442_vm1, %v4721_v16  ;;  %4066 = vmatpush3.bf16.msra.mxu1 %v4898_v5  ;;  %v4571_v5 = vld [vmem:[%s5475_s1 + $0x70] sm:$0xff]   ;;  %v4578_v16 = vld [vmem:[%s5475_s1 + $0x78] sm:$0xff]  }
  0x56   : > { %4067 = vmatprep.subr.bf16.mxu1 %v4567_v15  ;;  %4166 = vmatmul.mubr.msk.bf16.vlgmr.msra.gmra.mrb[0].mxu0 %vm442_vm1, %v1870_v23  ;;  %v1874_v26 = vsel %vm823_vm2, %v1871_v22, %v1873_v8  ;;  %v1876_v49 = vsel %vm823_vm2, %v1873_v8, %v1875_v24  ;;  %v2451_v22 = vld [vmem:[%s4696_s30 + $0x10] sm:$0xf]  ;;  %v4580_v23 = vld [vmem:[%s4696_s30 + $0x58] sm:$0xff]  }
  0x57   : > { %4194 = vmatpush3.bf16.msra.mxu0 %v4886_v60  ;;  %4169 = vmatprep.mubr.msk.bf16.mxu0 %vm442_vm1, %v1872_v7  ;;  %v1879_v60 = vrot.slane %v4797_v28, 1  ;;  %v5107_v8 = vld [vmem:[%s4696_s30 + $0x18] sm:$0xff]  }
  0x58   : > { %4195 = vmatprep.subr.bf16.mxu0 %v4565_v25  ;;  %v2569_v39 = vshrl.u32 %v5107_v8, 16 }
  0x59   : > { %4068 = vmatpush3.bf16.msra.mxu1 %v4567_v15  ;;  %v1880_v32 = vsel %vm823_vm2, %v1877_v63, %v1879_v60  ;;  %v1882_v28 = vsel %vm823_vm2, %v1879_v60, %v1881_v35  ;;  %v5094_v15 = vld [vmem:[%s4696_s30 + $0x14] sm:$0xf]  ;;  %v2565_v60 = vshll.u32 %v5107_v8, 16  ;;  %v4587_v35 = vld [vmem:[%s4696_s30 + $0x8] sm:$0xff]  }
  0x5a   : > { %4097 = vmatprep.subr.bf16.mxu1 %v4966_v31  ;;  %v3780_v7 = vcombine.low %v2451_v22, %v5094_v15 }
  0x5b   : > { %4196 = vmatpush3.bf16.msra.mxu0 %v4565_v25  ;;  %v849_v25 = vrot.slane %v4866_v43, 1 }
  0x5c   : > { %4042 = vmatmul.mubr.msk.bf16.gmra.mrb[4].mxu1 %vm442_vm1, %v4731_v29  ;;  %4225 = vmatprep.subr.bf16.mxu0 %v4571_v5  ;;  %v831_v29 = vrot.slane %v4745_v44, 1  ;;  %v2560_v24 = vshll.u32 %v3780_v7, 16 }
  0x5d   : > { %4045 = vmatprep.mubr.msk.bf16.mxu1 %vm442_vm1, %v4745_v44  ;;  %v5058_v44 = vld [vmem:[%s5475_s1 + $0x80] sm:$0xff]  }
  0x5e   : > { %4170 = vmatmul.mubr.msk.bf16.gmra.mrb[4].mxu0 %vm442_vm1, %v1874_v26  ;;  %v832_v56 = vsel %vm823_vm2, %v829_v50, %v831_v29  ;;  %v834_v57 = vsel %vm823_vm2, %v831_v29, %v833_v55  ;;  %v4582_v26 = vld [vmem:[%s4696_s30 + $0x68] sm:$0xff]   ;;  %v2562_v63 = vrot.slane %v2560_v24, 1 }
  0x5f   : > { %4173 = vmatprep.mubr.msk.bf16.mxu0 %vm442_vm1, %v1876_v49  ;;  %v2558_v49 = vshrl.u32 %v3780_v7, 16 }
  0x61   : > { %v2563_v17 = vor.u32 %v2562_v63, %v2558_v49  ;;  %v4606_v49 = vld [vmem:[%s4696_s30 + $0x48] sm:$0xff]  }
  0x64   : > { %4046 = vmatmul.mubr.msk.bf16.gmra.mrb[8].mxu1 %vm442_vm1, %v4759_v54  ;;  %v4573_v54 = vld [vmem:[%s4696_s30 + $0x28] sm:$0xff]  }
  0x65   : > { %4049 = vmatprep.mubr.msk.bf16.mxu1 %vm442_vm1, %v4777_v3  ;;  %v839_v3 = vrot.slane %v4803_v34, 1 }
  0x66   : > { %4174 = vmatmul.mubr.msk.bf16.gmra.mrb[8].mxu0 %vm442_vm1, %v1878_v30  ;;  %v5118_v30 = vld [vmem:[%s4696_s30 + $0x20] sm:$0xff]  }
  0x67   : > { %4177 = vmatprep.mubr.msk.bf16.mxu0 %vm442_vm1, %v1880_v32  ;;  %v840_v13 = vsel %vm823_vm2, %v837_v61, %v839_v3  ;;  %v2573_v37 = vshll.u32 %v5118_v30, 16 }
  0x69   : > { %v2575_v9 = vrot.slane %v2573_v37, 1 }
  0x6c   : > { %4050 = vmatmul.mubr.msk.bf16.gmra.mrb[12].mxu1 %vm442_vm1, %v4788_v19  ;;  %v841_v19 = vrot.slane %v4811_v40, 1 }
  0x6d   : > { %4053 = vmatprep.mubr.msk.bf16.mxu1 %vm442_vm1, %v4803_v34  ;;  %v843_v34 = vrot.slane %v4828_v58, 1 }
  0x6e   : > { %4178 = vmatmul.mubr.msk.bf16.gmra.mrb[12].mxu0 %vm442_vm1, %v1882_v28  ;;  %v842_v4 = vsel %vm823_vm2, %v839_v3, %v841_v19  ;;  %v2567_v28 = vrot.slane %v2565_v60, 1 }
  0x6f   : > { %4181 = vmatprep.mubr.msk.bf16.mxu0 %vm442_vm1, %v1884_v36  ;;  %v844_v18 = vsel %vm823_vm2, %v841_v19, %v843_v34  ;;  %v5124_v36 = vld [vmem:[%s4696_s30 + $0x28] sm:$0xff]  }
  0x70   : > { %v2581_v42 = vshll.u32 %v5124_v36, 16 }
  0x72   : > { %v2583_v50 = vrot.slane %v2581_v42, 1  ;;  %v4608_v42 = vld [vmem:[%s4696_s30 + $0x50] sm:$0xff]  }
  0x74   : > { %4054 = vmatmul.mubr.msk.bf16.gmra.mrb[16].mxu1 %vm442_vm1, %v4811_v40  ;;  %v845_v40 = vrot.slane %v4835_v2, 1 }
  0x75   : > { %4057 = vmatprep.mubr.msk.bf16.mxu1 %vm442_vm1, %v4828_v58  ;;  %v4581_v58 = vld [vmem:[%s4696_s30 + $0x60] sm:$0xff]  }
  0x76   : > { %4182 = vmatmul.mubr.msk.bf16.gmra.mrb[16].mxu0 %vm442_vm1, %v1886_v48  ;;  %v846_v21 = vsel %vm823_vm2, %v843_v34, %v845_v40  ;;  %v2568_v48 = vsel %vm313_vm0, %v2563_v17, %v2567_v28  ;;  %v4599_v34 = vld [vmem:[%s4696_s30 + $0x30] sm:$0xff]  }
  0x77   : > { %4185 = vmatprep.mubr.msk.bf16.mxu0 %vm442_vm1, %v1888_v41  ;;  %v2577_v41 = vshrl.u32 %v5118_v30, 16 }
  0x7c   : > { %4058 = vmatmul.mubr.msk.bf16.gmra.mrb[20].mxu1 %vm442_vm1, %v4835_v2  ;;  %v847_v2 = vrot.slane %v4856_v33, 1 }
  0x7d   : > { %4061 = vmatprep.mubr.msk.bf16.mxu1 %vm442_vm1, %v4856_v33  ;;  %v4583_v33 = vld [vmem:[%s4696_s30 + $0x70] sm:$0xff]  }
  0x7e   : > { %4186 = vmatmul.mubr.msk.bf16.gmra.mrb[20].mxu0 %vm442_vm1, %v1890_v20  ;;  %v5136_v20 = vld [vmem:[%s4696_s30 + $0x30] sm:$0xff]  }
  0x7f   : > { %4189 = vmatprep.mubr.msk.bf16.mxu0 %vm442_vm1, %v1892_v45  ;;  %v2571_v45 = vor.u32 %v2569_v39, %v2567_v28 }
  0x84   : > { %4062 = vmatmul.mubr.msk.bf16.gmra.mrb[24].mxu1 %vm442_vm1, %v4866_v43  ;;  %v851_v43 = vrot.slane %v4892_v1, 1  ;;  %v4585_v1 = vld [vmem:[%s4696_s30 + $0x78] sm:$0xff]  }
  0x85   : > { %4069 = vmatprep.mubr.msk.bf16.mxu1 %vm442_vm1, %v4930_v62  ;;  %v836_v62 = vsel %vm823_vm2, %v833_v55, %v835_v6 }
  0x86   : > { %4190 = vmatmul.mubr.msk.bf16.gmra.mrb[24].mxu0 %vm442_vm1, %v1894_v47  ;;  %v852_v32 = vsel %vm823_vm2, %v849_v25, %v851_v43  ;;  %v4593_v47 = vld [vmem:[%s4696_s30 + $0x18] sm:$0xff]  }
  0x87   : > { %4197 = vmatprep.mubr.msk.bf16.mxu0 %vm442_vm1, %v4569_v46  ;;  %v2579_v46 = vor.u32 %v2577_v41, %v2575_v9  ;;  %v5212_v41 = vld [vmem:[%s4696_s30 + $0x70] sm:$0xff]  }
  0x89   : > { %v2584_v29 = vsel %vm313_vm0, %v2579_v46, %v2583_v50  ;;  %v5218_v46 = vld [vmem:[%s4696_s30 + $0x78] sm:$0xff]  }
  0x8c   : > { %4070 = vmatmul.mubr.msk.bf16.vlgmr.msra.gmra.mrb[0].mxu1 %vm442_vm1, %v4935_v0  ;;  %v838_v0 = vsel %vm823_vm2, %v835_v6, %v837_v61  ;;  %v4597_v61 = vld [vmem:[%s4696_s30 + $0x28] sm:$0xff]  }
  0x8d   : > { %4073 = vmatprep.mubr.msk.bf16.mxu1 %vm442_vm1, %v830_v51  ;;  %4098 = vmatpush3.bf16.msra.mxu1 %v4966_v31  ;;  %v848_v31 = vsel %vm823_vm2, %v845_v40, %v847_v2  ;;  %v5142_v51 = vld [vmem:[%s4696_s30 + $0x38] sm:$0xff]  }
  0x8e   : > { %4099 = vmatprep.subr.bf16.mxu1 %v4586_v27  ;;  %4198 = vmatmul.mubr.msk.bf16.vlgmr.msra.gmra.mrb[0].mxu0 %vm442_vm1, %v4570_v52  ;;  %v2576_v52 = vsel %vm313_vm0, %v2571_v45, %v2575_v9  ;;  %v2597_v55 = vshll.u32 %v5142_v51, 16  ;;  %v4610_v45 = vld [vmem:[%s4696_s30 + $0x58] sm:$0xff]  }
  0x8f   : > { %4226 = vmatpush3.bf16.msra.mxu0 %v4571_v5  ;;  %4201 = vmatprep.mubr.msk.bf16.mxu0 %vm442_vm1, %v4572_v53  ;;  %v850_v5 = vsel %vm823_vm2, %v847_v2, %v849_v25  ;;  %v2585_v53 = vshrl.u32 %v5124_v36, 16 }
  0x90   : > { %4227 = vmatprep.subr.bf16.mxu0 %v4578_v16 }
  0x91   : > { %4100 = vmatpush3.bf16.msra.mxu1 %v4586_v27  ;;  %v2589_v27 = vshll.u32 %v5136_v20, 16  ;;  %v2587_v6 = vor.u32 %v2585_v53, %v2583_v50  ;;  %v2653_v50 = vshll.u32 %v5212_v41, 16 }
  0x93   : > { %4228 = vmatpush3.bf16.msra.mxu0 %v4578_v16  ;;  %v2593_v16 = vshrl.u32 %v5136_v20, 16 }
  0x94   : > { %4074 = vmatmul.mubr.msk.bf16.gmra.mrb[4].mxu1 %vm442_vm1, %v832_v56  ;;  %4257 = vmatprep.subr.bf16.mxu0 %v5058_v44  ;;  %v4605_v56 = vld [vmem:[%s5475_s1 + $0x88] sm:$0xff]  }
  0x95   : > { %4077 = vmatprep.mubr.msk.bf16.mxu1 %vm442_vm1, %v834_v57  ;;  %v2591_v57 = vrot.slane %v2589_v27, 1 }
  0x96   : > { %4202 = vmatmul.mubr.msk.bf16.gmra.mrb[4].mxu0 %vm442_vm1, %v4573_v54  ;;  %v5157_v54 = vld [vmem:[%s4696_s30 + $0x40] sm:$0xff]  }
  0x97   : > { %4205 = vmatprep.mubr.msk.bf16.mxu0 %vm442_vm1, %v4574_v59  ;;  %v4595_v59 = vld [vmem:[%s4696_s30 + $0x20] sm:$0xff]   ;;  %v2592_v3 = vsel %vm313_vm0, %v2587_v6, %v2591_v57  ;;  %v4614_v6 = vld [vmem:[%s4696_s30 + $0x68] sm:$0xff]  }
  0x9c   : > { %4078 = vmatmul.mubr.msk.bf16.gmra.mrb[8].mxu1 %vm442_vm1, %v836_v62  ;;  %v2595_v62 = vor.u32 %v2593_v16, %v2591_v57  ;;  %v2661_v16 = vshll.u32 %v5218_v46, 16 }
  0x9d   : > { %4081 = vmatprep.mubr.msk.bf16.mxu1 %vm442_vm1, %v838_v0  ;;  %v2599_v0 = vrot.slane %v2597_v55, 1  ;;  %v2655_v55 = vrot.slane %v2653_v50, 1 }
  0x9e   : > { %4206 = vmatmul.mubr.msk.bf16.gmra.mrb[8].mxu0 %vm442_vm1, %v4575_v11  ;;  %v5164_v11 = vld [vmem:[%s4696_s30 + $0x48] sm:$0xff]  }
  0x9f   : > { %4209 = vmatprep.mubr.msk.bf16.mxu0 %vm442_vm1, %v4576_v12  ;;  %v2605_v12 = vshll.u32 %v5157_v54, 16  ;;  %v2600_v19 = vsel %vm313_vm0, %v2595_v62, %v2599_v0  ;;  %v2617_v7 = vshrl.u32 %v5164_v11, 16  ;;  %v2663_v62 = vrot.slane %v2661_v16, 1 }
  0xa4   : > { %4082 = vmatmul.mubr.msk.bf16.gmra.mrb[12].mxu1 %vm442_vm1, %v840_v13  ;;  %v2609_v13 = vshrl.u32 %v5157_v54, 16 }
  0xa5   : > { %4085 = vmatprep.mubr.msk.bf16.mxu1 %vm442_vm1, %v842_v4  ;;  %v2613_v4 = vshll.u32 %v5164_v11, 16 }
  0xa6   : > { %4210 = vmatmul.mubr.msk.bf16.gmra.mrb[12].mxu0 %vm442_vm1, %v4577_v14  ;;  %v2607_v14 = vrot.slane %v2605_v12, 1 }
  0xa7   : > { %4213 = vmatprep.mubr.msk.bf16.mxu0 %vm442_vm1, %v4579_v10  ;;  %v5176_v10 = vld [vmem:[%s4696_s30 + $0x50] sm:$0xff]   ;;  %v2615_v22 = vrot.slane %v2613_v4, 1 }
  0xa8   : > { %v4616_v4 = vld [vmem:[%s4696_s30 + $0x70] sm:$0xff]  }
  0xa9   : > { %v2619_v43 = vor.u32 %v2617_v7, %v2615_v22 }
  0xac   : > { %4086 = vmatmul.mubr.msk.bf16.gmra.mrb[16].mxu1 %vm442_vm1, %v844_v18  ;;  %v4601_v18 = vld [vmem:[%s4696_s30 + $0x38] sm:$0xff]  }
  0xad   : > { %4089 = vmatprep.mubr.msk.bf16.mxu1 %vm442_vm1, %v846_v21  ;;  %v2611_v21 = vor.u32 %v2609_v13, %v2607_v14 }
  0xae   : > { %4214 = vmatmul.mubr.msk.bf16.gmra.mrb[16].mxu0 %vm442_vm1, %v4580_v23  ;;  %v5182_v23 = vld [vmem:[%s4696_s30 + $0x58] sm:$0xff]  }
  0xaf   : > { %4217 = vmatprep.mubr.msk.bf16.mxu0 %vm442_vm1, %v4581_v58  ;;  %v2621_v58 = vshll.u32 %v5176_v10, 16  ;;  %v2616_v25 = vsel %vm313_vm0, %v2611_v21, %v2615_v22  ;;  %v2629_v24 = vshll.u32 %v5182_v23, 16  ;;  %v2633_v28 = vshrl.u32 %v5182_v23, 16 }
  0xb1   : > { %v2631_v60 = vrot.slane %v2629_v24, 1 }
  0xb3   : > { %v2635_v9 = vor.u32 %v2633_v28, %v2631_v60  ;;  %v4638_v28 = vmov 0  }
  0xb4   : > { %4090 = vmatmul.mubr.msk.bf16.gmra.mrb[20].mxu1 %vm442_vm1, %v848_v31  ;;  %v2625_v31 = vshrl.u32 %v5176_v10, 16  ;;  %3440 = vmatprep.subr.bf16.mxu1 %v4638_v28 }
  0xb5   : > { %4093 = vmatprep.mubr.msk.bf16.mxu1 %vm442_vm1, %v850_v5  ;;  %v2623_v5 = vrot.slane %v2621_v58, 1  ;;  %v2913_v58 = vrot.slane %v5124_v36, 1  ;;  %v2921_v36 = vrot.slane %v5164_v11, 1 }
  0xb6   : > { %4218 = vmatmul.mubr.msk.bf16.gmra.mrb[20].mxu0 %vm442_vm1, %v4582_v26  ;;  %v5194_v26 = vld [vmem:[%s4696_s30 + $0x60] sm:$0xff]  }
  0xb7   : > { %4221 = vmatprep.mubr.msk.bf16.mxu0 %vm442_vm1, %v4583_v33  ;;  %v4603_v33 = vld [vmem:[%s4696_s30 + $0x40] sm:$0xff]   ;;  %v2627_v63 = vor.u32 %v2625_v31, %v2623_v5  ;;  %v2624_v17 = vsel %vm313_vm0, %v2619_v43, %v2623_v5  ;;  %v2641_v37 = vshrl.u32 %v5194_v26, 16 }
  0xbc   : > { %4094 = vmatmul.mubr.msk.bf16.gmra.mrb[24].mxu1 %vm442_vm1, %v852_v32  ;;  %v5200_v32 = vld [vmem:[%s4696_s30 + $0x68] sm:$0xff]  }
  0xbd   : > { %4101 = vmatprep.mubr.msk.bf16.mxu1 %vm442_vm1, %v4587_v35  ;;  %v2637_v35 = vshll.u32 %v5194_v26, 16  ;;  %v2645_v39 = vshll.u32 %v5200_v32, 16  ;;  %v2929_v11 = vrot.slane %v5200_v32, 1 }
  0xbe   : > { %4222 = vmatmul.mubr.msk.bf16.gmra.mrb[24].mxu0 %vm442_vm1, %v4585_v1  ;;  %v2632_v1 = vsel %vm313_vm0, %v2627_v63, %v2631_v60 }
  0xbf   : > { %4229 = vmatprep.mubr.msk.bf16.mxu0 %vm442_vm1, %v2568_v48  ;;  %v2639_v48 = vrot.slane %v2637_v35, 1 }
  0xc1   : > { %v2640_v27 = vsel %vm313_vm0, %v2635_v9, %v2639_v48 }
  0xc4   : > { %4102 = vmatmul.mubr.msk.bf16.vlgmr.msra.gmra.mrb[0].mxu1 %vm442_vm1, %v4590_v38  ;;  %v2643_v38 = vor.u32 %v2641_v37, %v2639_v48 }
  0xc5   : > { %4105 = vmatprep.mubr.msk.bf16.mxu1 %vm442_vm1, %v4593_v47  ;;  %v2647_v47 = vrot.slane %v2645_v39, 1 }
  0xc6   : > { %4230 = vmatmul.mubr.msk.bf16.vlgmr.msra.gmra.mrb[0].mxu0 %vm442_vm1, %v2576_v52  ;;  %v2649_v52 = vshrl.u32 %v5200_v32, 16 }
  0xc7   : > { %4258 = vmatpush3.bf16.msra.mxu0 %v5058_v44  ;;  %4233 = vmatprep.mubr.msk.bf16.mxu0 %vm442_vm1, %v2584_v29  ;;  %v2601_v44 = vshrl.u32 %v5142_v51, 16  ;;  %v2648_v53 = vsel %vm313_vm0, %v2643_v38, %v2647_v47  ;;  %v2657_v29 = vshrl.u32 %v5212_v41, 16 }
  0xc8   : > { %4259 = vmatprep.subr.bf16.mxu0 %v4605_v56  ;;  %v2651_v57 = vor.u32 %v2649_v52, %v2647_v47  ;;  %v4621_v47 = vld [vmem:[%s5477_s3 + $0x4] ss:$8 sps:$4 sm:$0xff]  }
  0xc9   : > { %v2603_v40 = vor.u32 %v2601_v44, %v2599_v0  ;;  %v2900_v0 = vld [vmem:[%s4696_s30 + $0x10] sm:$0xe] }
  0xca   : > { %v2656_v12 = vsel %vm313_vm0, %v2651_v57, %v2655_v55  ;;  %v3811_v13 = vcombine.low %v2900_v0, %v5094_v15  ;;  %v2911_v15 = vrot.slane %v5118_v30, 1  ;;  %v2919_v30 = vrot.slane %v5157_v54, 1 }
  0xcb   : > { %4260 = vmatpush3.bf16.msra.mxu0 %v4605_v56  ;;  %v2608_v2 = vsel %vm313_vm0, %v2603_v40, %v2607_v14  ;;  %v4612_v56 = vld [vmem:[%s4696_s30 + $0x60] sm:$0xff]   ;;  %v2927_v54 = vrot.slane %v5194_v26, 1 }
  0xcc   : > { %4106 = vmatmul.mubr.msk.bf16.gmra.mrb[4].mxu1 %vm442_vm1, %v4595_v59  ;;  %v5232_v59 = vld [vmem:[%s4696_s30 + $0x80] ss:$0 sps:$4 sm:$0x11]   ;;  %v2908_v40 = vrot.slane %v3811_v13, 1  ;;  %v2914_v7 = vsel %vm823_vm2, %v2911_v15, %v2913_v58 }
  0xcd   : > { %4109 = vmatprep.mubr.msk.bf16.mxu1 %vm442_vm1, %v4597_v61  ;;  %v2659_v61 = vor.u32 %v2657_v29, %v2655_v55  ;;  %v2669_v44 = vshll.u32 %v5232_v59, 16  ;;  %v2930_v60 = vsel %vm823_vm2, %v2927_v54, %v2929_v11  ;;  %v2935_v26 = vrot.slane %v5232_v59, 1 }
  0xce   : > { %4234 = vmatmul.mubr.msk.bf16.gmra.mrb[4].mxu0 %vm442_vm1, %v2592_v3  ;;  %v2665_v3 = vshrl.u32 %v5218_v46, 16 }
  0xcf   : > { %4237 = vmatprep.mubr.msk.bf16.mxu0 %vm442_vm1, %v2600_v19  ;;  %v2664_v19 = vsel %vm313_vm0, %v2659_v61, %v2663_v62 }
  0xd0   : > { %v2667_v14 = vor.u32 %v2665_v3, %v2663_v62 }
  0xd4   : > { %4110 = vmatmul.mubr.msk.bf16.gmra.mrb[8].mxu1 %vm442_vm1, %v4599_v34  ;;  %v2671_v34 = vrot.slane %v2669_v44, 1 }
  0xd5   : > { %4113 = vmatprep.mubr.msk.bf16.mxu1 %vm442_vm1, %v4601_v18  ;;  %v2909_v18 = vrot.slane %v5107_v8, 1  ;;  %v2915_v8 = vrot.slane %v5136_v20, 1  ;;  %v2923_v20 = vrot.slane %v5176_v10, 1  ;;  %v2931_v10 = vrot.slane %v5212_v41, 1 }
  0xd6   : > { %4238 = vmatmul.mubr.msk.bf16.gmra.mrb[8].mxu0 %vm442_vm1, %v2608_v2  ;;  %v2672_v21 = vsel %vm313_vm0, %v2667_v14, %v2671_v34  ;;  %v5340_v14 = vld [vmem:[%s5476_s2] ss:$0 sm:$0xff] }
  0xd7   : > { %4241 = vmatprep.mubr.msk.bf16.mxu0 %vm442_vm1, %v2616_v25  ;;  %v2910_v22 = vsel %vm823_vm2, %v2908_v40, %v2909_v18  ;;  %v2912_v2 = vsel %vm823_vm2, %v2909_v18, %v2911_v15  ;;  %v2917_v25 = vrot.slane %v5142_v51, 1  ;;  %v2916_v31 = vsel %vm823_vm2, %v2913_v58, %v2915_v8 }
  0xd8   : > { %v2925_v51 = vrot.slane %v5182_v23, 1  ;;  %v2924_v43 = vsel %vm823_vm2, %v2921_v36, %v2923_v20  ;;  %v2933_v23 = vrot.slane %v5218_v46, 1  ;;  %v2932_v35 = vsel %vm823_vm2, %v2929_v11, %v2931_v10 }
  0xd9   : > { %v2918_v24 = vsel %vm823_vm2, %v2915_v8, %v2917_v25  ;;  %v2920_v5 = vsel %vm823_vm2, %v2917_v25, %v2919_v30 }
  0xda   : > { %v2928_v63 = vsel %vm823_vm2, %v2925_v51, %v2927_v54  ;;  %v2936_v32 = vsel %vm823_vm2, %v2933_v23, %v2935_v26 }
  0xdc   : > { %4114 = vmatmul.mubr.msk.bf16.gmra.mrb[12].mxu1 %vm442_vm1, %v4603_v33  ;;  %v2922_v33 = vsel %vm823_vm2, %v2919_v30, %v2921_v36 }
  0xdd   : > { %4117 = vmatprep.mubr.msk.bf16.mxu1 %vm442_vm1, %v4606_v49  ;;  %v2926_v49 = vsel %vm823_vm2, %v2923_v20, %v2925_v51 }
  0xde   : > { %4242 = vmatmul.mubr.msk.bf16.gmra.mrb[12].mxu0 %vm442_vm1, %v2624_v17  ;;  %v2934_v17 = vsel %vm823_vm2, %v2931_v10, %v2933_v23 }
  0xdf   : > { %4245 = vmatprep.mubr.msk.bf16.mxu0 %vm442_vm1, %v2632_v1  ;;  %v4639_v1 = vmov 0.0  }
  0xe0   : > { %200 = vst.msk [vmem:[#allocation2 + $0xe0] sm:$0xff] %vm199_vm3, %v4639_v1  ;;  %201 = vst.msk [vmem:[#allocation2 + $0xe8] sm:$0xff] %vm199_vm3, %v4639_v1 }
  0xe1   : > { %202 = vst.msk [vmem:[#allocation2 + $0xf0] sm:$0xff] %vm199_vm3, %v4639_v1 }
  0xe4   : > { %4118 = vmatmul.mubr.msk.bf16.gmra.mrb[16].mxu1 %vm442_vm1, %v4608_v42 }
  0xe5   : > { %4121 = vmatprep.mubr.msk.bf16.mxu1 %vm442_vm1, %v4610_v45 }
  0xe6   : > { %4246 = vmatmul.mubr.msk.bf16.gmra.mrb[16].mxu0 %vm442_vm1, %v2640_v27 }
  0xe7   : > { %4249 = vmatprep.mubr.msk.bf16.mxu0 %vm442_vm1, %v2648_v53 }
  0xec   : > { %4122 = vmatmul.mubr.msk.bf16.gmra.mrb[20].mxu1 %vm442_vm1, %v4612_v56 }
  0xed   : > { %4125 = vmatprep.mubr.msk.bf16.mxu1 %vm442_vm1, %v4614_v6 }
  0xee   : > { %4250 = vmatmul.mubr.msk.bf16.gmra.mrb[20].mxu0 %vm442_vm1, %v2656_v12 }
  0xef   : > { %4253 = vmatprep.mubr.msk.bf16.mxu0 %vm442_vm1, %v2664_v19 }
  0xf4   : > { %4126 = vmatmul.mubr.msk.bf16.gmra.mrb[24].mxu1 %vm442_vm1, %v4616_v4 }
  0xf5   : > { %3837 = vmatprep.mubr.msk.bf16.mxu1 %vm3427_vm4, %v4621_v47 }
  0xf6   : > { %4254 = vmatmul.mubr.msk.bf16.gmra.mrb[24].mxu0 %vm442_vm1, %v2672_v21 }
  0xf7   : > { %4261 = vmatprep.mubr.msk.bf16.mxu0 %vm442_vm1, %v2910_v22 }
  0xfe   : > { %4262 = vmatmul.mubr.msk.bf16.vlgmr.msra.gmra.mrb[0].mxu0 %vm442_vm1, %v2912_v2 }
  0xff   : > { %4265 = vmatprep.mubr.msk.bf16.mxu0 %vm442_vm1, %v2914_v7 }
 0x106   : > { %4266 = vmatmul.mubr.msk.bf16.gmra.mrb[4].mxu0 %vm442_vm1, %v2916_v31 }
 0x107   : > { %4269 = vmatprep.mubr.msk.bf16.mxu0 %vm442_vm1, %v2918_v24 }
 0x10e   : > { %4270 = vmatmul.mubr.msk.bf16.gmra.mrb[8].mxu0 %vm442_vm1, %v2920_v5 }
 0x10f   : > { %4273 = vmatprep.mubr.msk.bf16.mxu0 %vm442_vm1, %v2922_v33 }
 0x116   : > { %4274 = vmatmul.mubr.msk.bf16.gmra.mrb[12].mxu0 %vm442_vm1, %v2924_v43 }
 0x117   : > { %4277 = vmatprep.mubr.msk.bf16.mxu0 %vm442_vm1, %v2926_v49 }
 0x11e   : > { %4278 = vmatmul.mubr.msk.bf16.gmra.mrb[16].mxu0 %vm442_vm1, %v2928_v63 }
 0x11f   : > { %4281 = vmatprep.mubr.msk.bf16.mxu0 %vm442_vm1, %v2930_v60 }
 0x126   : > { %4282 = vmatmul.mubr.msk.bf16.gmra.mrb[20].mxu0 %vm442_vm1, %v2932_v35 }
 0x127   : > { %4285 = vmatprep.mubr.msk.bf16.mxu0 %vm442_vm1, %v2934_v17 }
 0x12e   : > { %4286 = vmatmul.mubr.msk.bf16.gmra.mrb[24].mxu0 %vm442_vm1, %v2936_v32 }
 0x197   : > { %v4103_v37 = vpop.f32.mrb[0].mxu1 }
 0x198   : > { %v1270_v39 = vpop.f32.mrb[1].mxu1 }
 0x199   : > { %v4104_v48 = vpop.f32.mrb[2].mxu1 }
 0x19a   : > { %v1273_v41 = vpop.f32.mrb[3].mxu1 }
 0x19f   : > { %v4107_v42 = vpop.f32.mrb[4].mxu1 }
 0x1a0   : > { %v1286_v9 = vpop.f32.mrb[5].mxu1 }
 0x1a1   : > { %v4108_v45 = vpop.f32.mrb[6].mxu1 }
 0x1a2   : > { %v1289_v38 = vpop.f32.mrb[7].mxu1 }
 0x1a7   : > { %v4111_v46 = vpop.f32.mrb[8].mxu1 }
 0x1a8   : > { %v5299_v50 = vpop.f32.mrb[9].mxu1 }
 0x1a9   : > { %v5301_v27 = vpop.f32.mrb[10].mxu1 }
 0x1aa   : > { %v5303_v52 = vpop.f32.mrb[11].mxu1 }
 0x1af   : > { %v5305_v53 = vpop.f32.mrb[12].mxu1 }
 0x1b0   : > { %v5307_v29 = vpop.f32.mrb[13].mxu1 }
 0x1b1   : > { %v5309_v16 = vpop.f32.mrb[14].mxu1 }
 0x1b2   : > { %v5311_v55 = vpop.f32.mrb[15].mxu1 }
 0x1b7   : > { %v5313_v56 = vpop.f32.mrb[16].mxu1 }
 0x1b8   : > { %v5315_v57 = vpop.f32.mrb[17].mxu1 }
 0x1b9   : > { %v5317_v59 = vpop.f32.mrb[18].mxu1 }
 0x1ba   : > { %v5319_v6 = vpop.f32.mrb[19].mxu1 }
 0x1bf   : > { %v5321_v61 = vpop.f32.mrb[20].mxu1 }
 0x1c0   : > { %v5323_v62 = vpop.f32.mrb[21].mxu1 }
 0x1c1   : > { %v5325_v0 = vpop.f32.mrb[22].mxu1 }
 0x1c2   : > { %v5327_v12 = vpop.f32.mrb[23].mxu1 }
 0x1c7   : > { %v5329_v3 = vpop.f32.mrb[24].mxu1 }
 0x1c8   : > { %v5331_v44 = vpop.f32.mrb[25].mxu1 }
 0x1c9   : > { %v5333_v19 = vpop.f32.mrb[26].mxu1 }
 0x1ca   : > { %v5335_v13 = vpop.f32.mrb[27].mxu1 }
 0x1d1   : > { %v4263_v4 = vpop.f32.mrb[0].mxu0 }
 0x1d2   : > { %v4289_v34 = vadd.f32 %v4263_v4, %v4103_v37  ;;  %v3025_v40 = vpop.f32.mrb[1].mxu0 }
 0x1d3   : > { %v4290_v18 = vadd.f32 %v3025_v40, %v1270_v39  ;;  %v4264_v21 = vpop.f32.mrb[2].mxu0 }
 0x1d4   : > { %v3173_v22 = vadd.f32 %v4289_v34, %v5340_v14  ;;  %v4291_v15 = vadd.f32 %v4264_v21, %v4104_v48  ;;  %v3028_v58 = vpop.f32.mrb[3].mxu0 }
 0x1d5   : > { %v3171_v2 = vadd.f32 %v4290_v18, %v5340_v14  ;;  %v4292_v7 = vadd.f32 %v3028_v58, %v1273_v41 }
 0x1d6   : > { %v3201_v8 = vmax.f32 %v3173_v22, 0.0  ;;  %v3174_v25 = vadd.f32 %v4291_v15, %v5340_v14 }
 0x1d7   : > { %v3199_v31 = vmax.f32 %v3171_v2, 0.0  ;;  %v3172_v24 = vadd.f32 %v4292_v7, %v5340_v14 }
 0x1d8   : > { %3229 = vst.msk [vmem:[#allocation2 + $0x10] sm:$0xff] %vm199_vm3, %v3201_v8  ;;  %v3202_v30 = vmax.f32 %v3174_v25, 0.0 }
 0x1d9   : > { %3227 = vst.msk [vmem:[#allocation2] sm:$0xff] %vm199_vm3, %v3199_v31  ;;  %v3200_v36 = vmax.f32 %v3172_v24, 0.0  ;;  %v4267_v5 = vpop.f32.mrb[4].mxu0 }
 0x1da   : > { %3230 = vst.msk [vmem:[#allocation2 + $0x18] sm:$0xff] %vm199_vm3, %v3202_v30  ;;  %v4293_v33 = vadd.f32 %v4267_v5, %v4107_v42  ;;  %v3041_v20 = vpop.f32.mrb[5].mxu0 }
 0x1db   : > { %3228 = vst.msk [vmem:[#allocation2 + $0x8] sm:$0xff] %vm199_vm3, %v3200_v36  ;;  %v4294_v51 = vadd.f32 %v3041_v20, %v1286_v9  ;;  %v4268_v43 = vpop.f32.mrb[6].mxu0 }
 0x1dc   : > { %v3177_v49 = vadd.f32 %v4293_v33, %v5340_v14  ;;  %v4295_v54 = vadd.f32 %v4268_v43, %v4108_v45  ;;  %v3044_v11 = vpop.f32.mrb[7].mxu0 }
 0x1dd   : > { %v3175_v63 = vadd.f32 %v4294_v51, %v5340_v14  ;;  %v4296_v60 = vadd.f32 %v3044_v11, %v1289_v38 }
 0x1de   : > { %v3205_v10 = vmax.f32 %v3177_v49, 0.0  ;;  %v3178_v23 = vadd.f32 %v4295_v54, %v5340_v14 }
 0x1df   : > { %v3203_v35 = vmax.f32 %v3175_v63, 0.0  ;;  %v3176_v17 = vadd.f32 %v4296_v60, %v5340_v14  ;;  %v3257_v18 = vld [vmem:[#allocation2 + $0x10] sm:$0xff] }
 0x1e0   : > { %3233 = vst.msk [vmem:[#allocation2 + $0x30] sm:$0xff] %vm199_vm3, %v3205_v10  ;;  %v3206_v26 = vmax.f32 %v3178_v23, 0.0  ;;  %v3255_v40 = vld [vmem:[#allocation2] sm:$0xff] }
 0x1e1   : > { %3231 = vst.msk [vmem:[#allocation2 + $0x20] sm:$0xff] %vm199_vm3, %v3203_v35  ;;  %v3204_v32 = vmax.f32 %v3176_v17, 0.0  ;;  %v4271_v1 = vpop.f32.mrb[8].mxu0  ;;  %v3285_v9 = vld [vmem:[#allocation2 + $0x11] sm:$0xff] }
 0x1e2   : > { %3234 = vst.msk [vmem:[#allocation2 + $0x38] sm:$0xff] %vm199_vm3, %v3206_v26  ;;  %v4297_v37 = vadd.f32 %v4271_v1, %v4111_v46  ;;  %v3057_v39 = vpop.f32.mrb[9].mxu0  ;;  %v3283_v42 = vld [vmem:[#allocation2 + $0x1] sm:$0xff]  ;;  %v3284_v15 = vld [vmem:[#allocation2 + $0x9] sm:$0xff]  ;;  %v3313_v58 = vmax.f32 %v3257_v18, %v3285_v9  ;;  %v3258_v8 = vld [vmem:[#allocation2 + $0x18] sm:$0xff] }
 0x1e3   : > { %3232 = vst.msk [vmem:[#allocation2 + $0x28] sm:$0xff] %vm199_vm3, %v3204_v32  ;;  %v4298_v48 = vadd.f32 %v3057_v39, %v5299_v50  ;;  %v4272_v41 = vpop.f32.mrb[10].mxu0  ;;  %v3256_v22 = vld [vmem:[#allocation2 + $0x8] sm:$0xff]  ;;  %v3311_v50 = vmax.f32 %v3255_v40, %v3283_v42 }
 0x1e4   : > { %v3181_v45 = vadd.f32 %v4297_v37, %v5340_v14  ;;  %v4299_v38 = vadd.f32 %v4272_v41, %v5301_v27  ;;  %v3060_v47 = vpop.f32.mrb[11].mxu0  ;;  %v3312_v24 = vmax.f32 %v3256_v22, %v3284_v15 }
 0x1e5   : > { %v3179_v4 = vadd.f32 %v4298_v48, %v5340_v14  ;;  %v4300_v34 = vadd.f32 %v3060_v47, %v5303_v52  ;;  %v3345_v20 = vmax.f32 %v3311_v50, %v3313_v58 }
 0x1e6   : > { %v3209_v46 = vmax.f32 %v3181_v45, 0.0  ;;  %v3182_v21 = vadd.f32 %v4299_v38, %v5340_v14 }
 0x1e7   : > { %v3207_v2 = vmax.f32 %v3179_v4, 0.0  ;;  %v3180_v7 = vadd.f32 %v4300_v34, %v5340_v14  ;;  %v3261_v39 = vld [vmem:[#allocation2 + $0x30] sm:$0xff] }
 0x1e8   : > { %3237 = vst.msk [vmem:[#allocation2 + $0x50] sm:$0xff] %vm199_vm3, %v3209_v46  ;;  %v3210_v27 = vmax.f32 %v3182_v21, 0.0  ;;  %v3286_v25 = vld [vmem:[#allocation2 + $0x19] sm:$0xff] }
 0x1e9   : > { %3235 = vst.msk [vmem:[#allocation2 + $0x40] sm:$0xff] %vm199_vm3, %v3207_v2  ;;  %v3208_v52 = vmax.f32 %v3180_v7, 0.0  ;;  %v4275_v31 = vpop.f32.mrb[12].mxu0  ;;  %v3314_v30 = vmax.f32 %v3258_v8, %v3286_v25  ;;  %v3259_v36 = vld [vmem:[#allocation2 + $0x20] sm:$0xff]  ;;  %v3289_v23 = vld [vmem:[#allocation2 + $0x31] sm:$0xff] }
 0x1ea   : > { %3238 = vst.msk [vmem:[#allocation2 + $0x58] sm:$0xff] %vm199_vm3, %v3210_v27  ;;  %v4301_v5 = vadd.f32 %v4275_v31, %v5305_v53  ;;  %v3073_v33 = vpop.f32.mrb[13].mxu0  ;;  %v3260_v51 = vld [vmem:[#allocation2 + $0x28] sm:$0xff]  ;;  %v3317_v42 = vmax.f32 %v3261_v39, %v3289_v23  ;;  %v3262_v38 = vld [vmem:[#allocation2 + $0x38] sm:$0xff] }
 0x1eb   : > { %v3287_v43 = vld [vmem:[#allocation2 + $0x21] sm:$0xff]  ;;  %v3288_v49 = vld [vmem:[#allocation2 + $0x29] sm:$0xff]  ;;  %3236 = vst.msk [vmem:[#allocation2 + $0x48] sm:$0xff] %vm199_vm3, %v3208_v52  ;;  %v4302_v54 = vadd.f32 %v3073_v33, %v5307_v29  ;;  %v4276_v11 = vpop.f32.mrb[14].mxu0  ;;  %v3346_v63 = vmax.f32 %v3312_v24, %v3314_v30 }
 0x1ec   : > { %v3315_v60 = vmax.f32 %v3259_v36, %v3287_v43  ;;  %v3316_v10 = vmax.f32 %v3260_v51, %v3288_v49  ;;  %v3185_v35 = vadd.f32 %v4301_v5, %v5340_v14  ;;  %v4303_v17 = vadd.f32 %v4276_v11, %v5309_v16  ;;  %v3076_v26 = vpop.f32.mrb[15].mxu0 }
 0x1ed   : > { %v3183_v53 = vadd.f32 %v4302_v54, %v5340_v14  ;;  %v4304_v32 = vadd.f32 %v3076_v26, %v5311_v55  ;;  %v3373_v1 = vpack.c.bf16 %v3346_v63, %v3345_v20 }
 0x1ee   : > { %v3347_v37 = vmax.f32 %v3313_v58, %v3315_v60  ;;  %v3213_v48 = vmax.f32 %v3185_v35, 0.0  ;;  %v3186_v29 = vadd.f32 %v4303_v17, %v5340_v14  ;;  %v3348_v41 = vmax.f32 %v3314_v30, %v3316_v10 }
 0x1ef   : > { %v3211_v9 = vmax.f32 %v3183_v53, 0.0  ;;  %v3184_v45 = vadd.f32 %v4304_v32, %v5340_v14  ;;  %3441 = vmatpush1.bf16.msra.mxu1 %v3373_v1  ;;  %v3349_v22 = vmax.f32 %v3315_v60, %v3317_v42 }
 0x1f0   : > { %3241 = vst.msk [vmem:[#allocation2 + $0x70] sm:$0xff] %vm199_vm3, %v3213_v48  ;;  %v3214_v16 = vmax.f32 %v3186_v29, 0.0  ;;  %3442 = vmatprep.subr.bf16.mxu1 %v4638_v28  ;;  %v3290_v47 = vld [vmem:[#allocation2 + $0x39] sm:$0xff]  ;;  %v3374_v34 = vpack.c.bf16 %v3348_v41, %v3347_v37 }
 0x1f1   : > { %3239 = vst.msk [vmem:[#allocation2 + $0x60] sm:$0xff] %vm199_vm3, %v3211_v9  ;;  %v3212_v55 = vmax.f32 %v3184_v45, 0.0  ;;  %v4279_v4 = vpop.f32.mrb[16].mxu0  ;;  %v3318_v40 = vmax.f32 %v3262_v38, %v3290_v47  ;;  %v3263_v18 = vld [vmem:[#allocation2 + $0x40] sm:$0xff]  ;;  %v3293_v52 = vld [vmem:[#allocation2 + $0x51] sm:$0xff] }
 0x1f2   : > { %3242 = vst.msk [vmem:[#allocation2 + $0x78] sm:$0xff] %vm199_vm3, %v3214_v16  ;;  %v4305_v46 = vadd.f32 %v4279_v4, %v5313_v56  ;;  %v3089_v21 = vpop.f32.mrb[17].mxu0  ;;  %v3264_v15 = vld [vmem:[#allocation2 + $0x48] sm:$0xff]  ;;  %v3266_v63 = vld [vmem:[#allocation2 + $0x58] sm:$0xff] }
 0x1f3   : > { %v3291_v50 = vld [vmem:[#allocation2 + $0x41] sm:$0xff]  ;;  %v3292_v58 = vld [vmem:[#allocation2 + $0x49] sm:$0xff]  ;;  %3240 = vst.msk [vmem:[#allocation2 + $0x68] sm:$0xff] %vm199_vm3, %v3212_v55  ;;  %v4306_v2 = vadd.f32 %v3089_v21, %v5315_v57  ;;  %v4280_v7 = vpop.f32.mrb[18].mxu0  ;;  %3443 = vmatpush1.bf16.msra.mxu1 %v3374_v34  ;;  %v3350_v27 = vmax.f32 %v3316_v10, %v3318_v40 }
 0x1f4   : > { %v3319_v8 = vmax.f32 %v3263_v18, %v3291_v50  ;;  %v3320_v25 = vmax.f32 %v3264_v15, %v3292_v58  ;;  %v3189_v31 = vadd.f32 %v4305_v46, %v5340_v14  ;;  %v4307_v24 = vadd.f32 %v4280_v7, %v5317_v59  ;;  %v3092_v56 = vpop.f32.mrb[19].mxu0  ;;  %3444 = vmatprep.subr.bf16.mxu1 %v4638_v28  ;;  %v3265_v57 = vld [vmem:[#allocation2 + $0x50] sm:$0xff] }
 0x1f5   : > { %v3187_v30 = vadd.f32 %v4306_v2, %v5340_v14  ;;  %v4308_v36 = vadd.f32 %v3092_v56, %v5319_v6  ;;  %v3375_v5 = vpack.c.bf16 %v3350_v27, %v3349_v22  ;;  %v3321_v49 = vmax.f32 %v3265_v57, %v3293_v52 }
 0x1f6   : > { %v3351_v33 = vmax.f32 %v3317_v42, %v3319_v8  ;;  %v3217_v20 = vmax.f32 %v3189_v31, 0.0  ;;  %v3190_v51 = vadd.f32 %v4307_v24, %v5340_v14  ;;  %v3352_v43 = vmax.f32 %v3318_v40, %v3320_v25 }
 0x1f7   : > { %v3215_v54 = vmax.f32 %v3187_v30, 0.0  ;;  %v3188_v11 = vadd.f32 %v4308_v36, %v5340_v14  ;;  %3445 = vmatpush1.bf16.msra.mxu1 %v3375_v5  ;;  %v3353_v32 = vmax.f32 %v3319_v8, %v3321_v49 }
 0x1f8   : > { %3245 = vst.msk [vmem:[#allocation2 + $0x90] sm:$0xff] %vm199_vm3, %v3217_v20  ;;  %v3218_v59 = vmax.f32 %v3190_v51, 0.0  ;;  %3446 = vmatprep.subr.bf16.mxu1 %v4638_v28  ;;  %v3294_v60 = vld [vmem:[#allocation2 + $0x59] sm:$0xff]  ;;  %v3376_v23 = vpack.c.bf16 %v3352_v43, %v3351_v33 }
 0x1f9   : > { %3243 = vst.msk [vmem:[#allocation2 + $0x80] sm:$0xff] %vm199_vm3, %v3215_v54  ;;  %v3216_v6 = vmax.f32 %v3188_v11, 0.0  ;;  %v4283_v10 = vpop.f32.mrb[20].mxu0  ;;  %v3322_v35 = vmax.f32 %v3266_v63, %v3294_v60  ;;  %v3267_v17 = vld [vmem:[#allocation2 + $0x60] sm:$0xff]  ;;  %v3297_v45 = vld [vmem:[#allocation2 + $0x71] sm:$0xff] }
 0x1fa   : > { %3246 = vst.msk [vmem:[#allocation2 + $0x98] sm:$0xff] %vm199_vm3, %v3218_v59  ;;  %v4309_v26 = vadd.f32 %v4283_v10, %v5321_v61  ;;  %v3105_v53 = vpop.f32.mrb[21].mxu0  ;;  %v3268_v1 = vld [vmem:[#allocation2 + $0x68] sm:$0xff]  ;;  %v3270_v50 = vld [vmem:[#allocation2 + $0x78] sm:$0xff] }
 0x1fb   : > { %v3295_v37 = vld [vmem:[#allocation2 + $0x61] sm:$0xff]  ;;  %v3296_v39 = vld [vmem:[#allocation2 + $0x69] sm:$0xff]  ;;  %3244 = vst.msk [vmem:[#allocation2 + $0x88] sm:$0xff] %vm199_vm3, %v3216_v6  ;;  %v4310_v48 = vadd.f32 %v3105_v53, %v5323_v62  ;;  %v4284_v29 = vpop.f32.mrb[22].mxu0  ;;  %3447 = vmatpush1.bf16.msra.mxu1 %v3376_v23  ;;  %v3354_v41 = vmax.f32 %v3320_v25, %v3322_v35 }
 0x1fc   : > { %v3323_v42 = vmax.f32 %v3267_v17, %v3295_v37  ;;  %v3324_v9 = vmax.f32 %v3268_v1, %v3296_v39  ;;  %v3193_v16 = vadd.f32 %v4309_v26, %v5340_v14  ;;  %v4311_v38 = vadd.f32 %v4284_v29, %v5325_v0  ;;  %v3108_v61 = vpop.f32.mrb[23].mxu0  ;;  %3448 = vmatprep.subr.bf16.mxu1 %v4638_v28  ;;  %v3269_v62 = vld [vmem:[#allocation2 + $0x70] sm:$0xff] }
 0x1fd   : > { %v3191_v47 = vadd.f32 %v4310_v48, %v5340_v14  ;;  %v4312_v55 = vadd.f32 %v3108_v61, %v5327_v12  ;;  %v3377_v4 = vpack.c.bf16 %v3354_v41, %v3353_v32  ;;  %v3325_v21 = vmax.f32 %v3269_v62, %v3297_v45 }
 0x1fe   : > { %v3355_v34 = vmax.f32 %v3321_v49, %v3323_v42  ;;  %v3221_v40 = vmax.f32 %v3193_v16, 0.0  ;;  %v3194_v18 = vadd.f32 %v4311_v38, %v5340_v14  ;;  %v3356_v46 = vmax.f32 %v3322_v35, %v3324_v9 }
 0x1ff   : > { %v3219_v22 = vmax.f32 %v3191_v47, 0.0  ;;  %v3192_v15 = vadd.f32 %v4312_v55, %v5340_v14  ;;  %3449 = vmatpush1.bf16.msra.mxu1 %v3377_v4  ;;  %v3357_v31 = vmax.f32 %v3323_v42, %v3325_v21  ;;  %v3273_v10 = vld [vmem:[#allocation2 + $0x90] sm:$0xff] }
 0x200   : > { %3249 = vst.msk [vmem:[#allocation2 + $0xb0] sm:$0xff] %vm199_vm3, %v3221_v40  ;;  %v3222_v0 = vmax.f32 %v3194_v18, 0.0  ;;  %3450 = vmatprep.subr.bf16.mxu1 %v4638_v28  ;;  %v3298_v58 = vld [vmem:[#allocation2 + $0x79] sm:$0xff]  ;;  %v3378_v7 = vpack.c.bf16 %v3356_v46, %v3355_v34 }
 0x201   : > { %3247 = vst.msk [vmem:[#allocation2 + $0xa0] sm:$0xff] %vm199_vm3, %v3219_v22  ;;  %v3220_v12 = vmax.f32 %v3192_v15, 0.0  ;;  %v4287_v2 = vpop.f32.mrb[24].mxu0  ;;  %v3326_v27 = vmax.f32 %v3270_v50, %v3298_v58  ;;  %v3271_v8 = vld [vmem:[#allocation2 + $0x80] sm:$0xff]  ;;  %v3274_v26 = vld [vmem:[#allocation2 + $0x98] sm:$0xff] }
 0x202   : > { %3250 = vst.msk [vmem:[#allocation2 + $0xb8] sm:$0xff] %vm199_vm3, %v3222_v0  ;;  %v4313_v25 = vadd.f32 %v4287_v2, %v5329_v3  ;;  %v3121_v52 = vpop.f32.mrb[25].mxu0  ;;  %v3272_v24 = vld [vmem:[#allocation2 + $0x88] sm:$0xff]  ;;  %v3301_v3 = vld [vmem:[#allocation2 + $0x91] sm:$0xff] }
 0x203   : > { %v3299_v56 = vld [vmem:[#allocation2 + $0x81] sm:$0xff]  ;;  %v3300_v30 = vld [vmem:[#allocation2 + $0x89] sm:$0xff]  ;;  %3248 = vst.msk [vmem:[#allocation2 + $0xa8] sm:$0xff] %vm199_vm3, %v3220_v12  ;;  %v4314_v36 = vadd.f32 %v3121_v52, %v5331_v44  ;;  %v4288_v5 = vpop.f32.mrb[26].mxu0  ;;  %3451 = vmatpush1.bf16.msra.mxu1 %v3378_v7  ;;  %v3358_v33 = vmax.f32 %v3324_v9, %v3326_v27 }
 0x204   : > { %v3327_v57 = vmax.f32 %v3271_v8, %v3299_v56  ;;  %v3328_v20 = vmax.f32 %v3272_v24, %v3300_v30  ;;  %v3197_v51 = vadd.f32 %v4313_v25, %v5340_v14  ;;  %v4315_v43 = vadd.f32 %v4288_v5, %v5333_v19  ;;  %v3124_v49 = vpop.f32.mrb[27].mxu0  ;;  %3452 = vmatprep.subr.bf16.mxu1 %v4638_v28  ;;  %v3339_v56 = vld [vmem:[#allocation2 + $0xe0] sm:$0xff]  ;;  %v3342_v5 = vld [vmem:[#allocation2 + $0xe9] sm:$0xff] }
 0x205   : > { %v3195_v54 = vadd.f32 %v4314_v36, %v5340_v14  ;;  %v4316_v11 = vadd.f32 %v3124_v49, %v5335_v13  ;;  %v3379_v59 = vpack.c.bf16 %v3358_v33, %v3357_v31  ;;  %v3329_v19 = vmax.f32 %v3273_v10, %v3301_v3  ;;  %v3341_v30 = vld [vmem:[#allocation2 + $0xe1] sm:$0xff] }
 0x206   : > { %v3359_v63 = vmax.f32 %v3325_v21, %v3327_v57  ;;  %v3225_v44 = vmax.f32 %v3197_v51, 0.0  ;;  %v3198_v60 = vadd.f32 %v4315_v43, %v5340_v14  ;;  %v3360_v6 = vmax.f32 %v3326_v27, %v3328_v20  ;;  %v3340_v36 = vld [vmem:[#allocation2 + $0xe8] sm:$0xff] }
 0x207   : > { %v3223_v23 = vmax.f32 %v3195_v54, 0.0  ;;  %v3196_v35 = vadd.f32 %v4316_v11, %v5340_v14  ;;  %3453 = vmatpush1.bf16.msra.mxu1 %v3379_v59  ;;  %v3361_v29 = vmax.f32 %v3327_v57, %v3329_v19  ;;  %v3277_v47 = vld [vmem:[#allocation2 + $0xb0] sm:$0xff]  ;;  %v3343_v33 = vmax.f32 %v3339_v56, %v3341_v30  ;;  %v4619_v59 = vld [vmem:[%s5477_s3] ss:$8 sps:$4 sm:$0xff]  }
 0x208   : > { %3253 = vst.msk [vmem:[#allocation2 + $0xd0] sm:$0xff] %vm199_vm3, %v3225_v44  ;;  %v3226_v17 = vmax.f32 %v3198_v60, 0.0  ;;  %3454 = vmatprep.subr.bf16.mxu1 %v4638_v28  ;;  %v3302_v53 = vld [vmem:[#allocation2 + $0x99] sm:$0xff]  ;;  %v3380_v32 = vpack.c.bf16 %v3360_v6, %v3359_v63  ;;  %v3344_v43 = vmax.f32 %v3340_v36, %v3342_v5  ;;  %v3393_v60 = vld [vmem:[%s5477_s3 + $0x30] sm:$0x11] }
 0x209   : > { %3251 = vst.msk [vmem:[#allocation2 + $0xc0] sm:$0xff] %vm199_vm3, %v3223_v23  ;;  %v3224_v13 = vmax.f32 %v3196_v35, 0.0  ;;  %v3330_v1 = vmax.f32 %v3274_v26, %v3302_v53  ;;  %v3275_v37 = vld [vmem:[#allocation2 + $0xa0] sm:$0xff]  ;;  %v3305_v45 = vld [vmem:[#allocation2 + $0xb1] sm:$0xff]  ;;  %v3836_v10 = vcombine.high %v3393_v60, %v3393_v60  ;;  %v3835_v23 = vcombine.low %v3393_v60, %v3393_v60 }
 0x20a   : > { %3254 = vst.msk [vmem:[#allocation2 + $0xd8] sm:$0xff] %vm199_vm3, %v3226_v17  ;;  %v3276_v39 = vld [vmem:[#allocation2 + $0xa8] sm:$0xff]  ;;  %v3333_v55 = vmax.f32 %v3277_v47, %v3305_v45  ;;  %v3278_v4 = vld [vmem:[#allocation2 + $0xb8] sm:$0xff] }
 0x20b   : > { %v3303_v48 = vld [vmem:[#allocation2 + $0xa1] sm:$0xff]  ;;  %v3304_v14 = vld [vmem:[#allocation2 + $0xa9] sm:$0xff]  ;;  %3252 = vst.msk [vmem:[#allocation2 + $0xc8] sm:$0xff] %vm199_vm3, %v3224_v13  ;;  %3455 = vmatpush1.bf16.msra.mxu1 %v3380_v32  ;;  %v3362_v41 = vmax.f32 %v3328_v20, %v3330_v1  ;;  %v4622_v63 = vld [vmem:[%s5477_s3 + $0x14] ss:$8 sps:$4 sm:$0xff]  }
 0x20c   : > { %v3331_v42 = vmax.f32 %v3275_v37, %v3303_v48  ;;  %v3332_v9 = vmax.f32 %v3276_v39, %v3304_v14  ;;  %3456 = vmatprep.subr.bf16.mxu1 %v4638_v28  ;;  %v4624_v44 = vld [vmem:[%s5477_s3 + $0x10] ss:$8 sps:$4 sm:$0xff]   ;;  %v4627_v6 = vld [vmem:[%s5477_s3 + $0x20] ss:$8 sps:$4 sm:$0xff]  }
 0x20d   : > { %v3381_v16 = vpack.c.bf16 %v3362_v41, %v3361_v29 }
 0x20e   : > { %v3363_v38 = vmax.f32 %v3329_v19, %v3331_v42  ;;  %v3364_v61 = vmax.f32 %v3330_v1, %v3332_v9  ;;  %v3365_v58 = vmax.f32 %v3331_v42, %v3333_v55 }
 0x20f   : > { %3457 = vmatpush1.bf16.msra.mxu1 %v3381_v16  ;;  %v3281_v27 = vld [vmem:[#allocation2 + $0xd0] sm:$0xff] }
 0x210   : > { %3458 = vmatprep.subr.bf16.mxu1 %v4638_v28  ;;  %v3306_v34 = vld [vmem:[#allocation2 + $0xb9] sm:$0xff]  ;;  %v3382_v40 = vpack.c.bf16 %v3364_v61, %v3363_v38  ;;  %v3543_v61 = vld [vmem:[%s5455_s28 + $0x18] sm:$0x1] }
 0x211   : > { %v3279_v62 = vld [vmem:[#allocation2 + $0xc0] sm:$0xff]  ;;  %v3334_v18 = vmax.f32 %v3278_v4, %v3306_v34  ;;  %v3282_v46 = vld [vmem:[#allocation2 + $0xd8] sm:$0xff] }
 0x212   : > { %v3309_v21 = vld [vmem:[#allocation2 + $0xd1] sm:$0xff]  ;;  %v3310_v22 = vld [vmem:[#allocation2 + $0xd9] sm:$0xff]  ;;  %v3280_v15 = vld [vmem:[#allocation2 + $0xc8] sm:$0xff] }
 0x213   : > { %v3307_v0 = vld [vmem:[#allocation2 + $0xc1] sm:$0xff]  ;;  %v3308_v50 = vld [vmem:[#allocation2 + $0xc9] sm:$0xff]  ;;  %3459 = vmatpush1.bf16.msra.mxu1 %v3382_v40  ;;  %v3366_v12 = vmax.f32 %v3332_v9, %v3334_v18  ;;  %v3337_v8 = vmax.f32 %v3281_v27, %v3309_v21  ;;  %v3338_v24 = vmax.f32 %v3282_v46, %v3310_v22 }
 0x214   : > { %v3335_v2 = vmax.f32 %v3279_v62, %v3307_v0  ;;  %v3336_v7 = vmax.f32 %v3280_v15, %v3308_v50  ;;  %3460 = vmatprep.subr.bf16.mxu1 %v4638_v28 }
 0x215   : > { %v3383_v25 = vpack.c.bf16 %v3366_v12, %v3365_v58  ;;  %v3371_v3 = vmax.f32 %v3337_v8, %v3343_v33  ;;  %v3372_v54 = vmax.f32 %v3338_v24, %v3344_v43 }
 0x216   : > { %v3367_v52 = vmax.f32 %v3333_v55, %v3335_v2  ;;  %v3368_v31 = vmax.f32 %v3334_v18, %v3336_v7  ;;  %v3369_v20 = vmax.f32 %v3335_v2, %v3337_v8  ;;  %v3370_v51 = vmax.f32 %v3336_v7, %v3338_v24 }
 0x217   : > { %3461 = vmatpush1.bf16.msra.mxu1 %v3383_v25  ;;  %v3386_v11 = vpack.c.bf16 %v3372_v54, %v3371_v3 }
 0x218   : > { %3462 = vmatprep.subr.bf16.mxu1 %v4638_v28  ;;  %v3384_v57 = vpack.c.bf16 %v3368_v31, %v3367_v52  ;;  %v3385_v49 = vpack.c.bf16 %v3370_v51, %v3369_v20 }
 0x21b   : > { %3463 = vmatpush1.bf16.msra.mxu1 %v3384_v57 }
 0x21c   : > { %3464 = vmatprep.subr.bf16.mxu1 %v4638_v28 }
 0x21f   : > { %3465 = vmatpush1.bf16.msra.mxu1 %v3385_v49 }
 0x220   : > { %3466 = vmatprep.subr.bf16.mxu1 %v4638_v28  ;;  %v4625_v28 = vld [vmem:[%s5477_s3 + $0x24] ss:$8 sps:$4 sm:$0xff]  }
 0x223   : > { %3467 = vmatpush1.bf16.msra.mxu1 %v3386_v11 }
 0x226   : > { %3473 = vmatmul.mubr.bf16.vlgmr.msra.gmra.mrb[28].mxu1 %v4619_v59 }
 0x227   : > { %3838 = vmatprep.mubr.msk.bf16.mxu1 %vm3427_vm4, %v4622_v63 }
 0x22e   : > { %3481 = vmatmul.mubr.bf16.gmra.mrb[32].mxu1 %v4624_v44 }
 0x22f   : > { %3839 = vmatprep.mubr.msk.bf16.mxu1 %vm3427_vm4, %v4625_v28 }
 0x236   : > { %3489 = vmatmul.mubr.bf16.gmra.mrb[36].mxu1 %v4627_v6 }
 0x237   : > { %3840 = vmatprep.mubr.msk.bf16.mxu1 %vm3427_vm4, %v3836_v10 }
 0x23e   : > { %3497 = vmatmul.mubr.bf16.gmra.mrb[40].mxu1 %v3835_v23 }
 0x2f9   : > { %v3474_v35 = vpop.f32.mrb[28].mxu1 }
 0x2fa   : > { %v3850_v19 = vpack.c.bf16 %v3474_v35, %v3474_v35  ;;  %v3476_v17 = vpop.f32.mrb[29].mxu1 }
 0x2fb   : > { %v3477_v26 = vpop.f32.mrb[30].mxu1 }
 0x2fc   : > { %3534 = vst.msk [vmem:[%s5455_s28] sm:$0xf] %vm3533_vm5, %v3850_v19  ;;  %v3851_v53 = vpack.c.bf16 %v3477_v26, %v3477_v26  ;;  %v3479_v13 = vpop.f32.mrb[31].mxu1 }
 0x2fe   : > { %3535 = vst.msk [vmem:[%s5455_s28 + $0x4] sm:$0xf] %vm3533_vm5, %v3851_v53 }
 0x301   : > { %v3482_v32 = vpop.f32.mrb[32].mxu1 }
 0x302   : > { %v3852_v1 = vpack.c.bf16 %v3482_v32, %v3482_v32  ;;  %v3484_v37 = vpop.f32.mrb[33].mxu1 }
 0x303   : > { %v3485_v39 = vpop.f32.mrb[34].mxu1 }
 0x304   : > { %3536 = vst.msk [vmem:[%s5455_s28 + $0x8] sm:$0xf] %vm3533_vm5, %v3852_v1  ;;  %v3853_v48 = vpack.c.bf16 %v3485_v39, %v3485_v39  ;;  %v3487_v14 = vpop.f32.mrb[35].mxu1 }
 0x306   : > { %3537 = vst.msk [vmem:[%s5455_s28 + $0xc] sm:$0xf] %vm3533_vm5, %v3853_v48 }
 0x309   : > { %v3490_v29 = vpop.f32.mrb[36].mxu1 }
 0x30a   : > { %v3854_v41 = vpack.c.bf16 %v3490_v29, %v3490_v29  ;;  %v3492_v42 = vpop.f32.mrb[37].mxu1 }
 0x30b   : > { %v3493_v9 = vpop.f32.mrb[38].mxu1 }
 0x30c   : > { %3538 = vst.msk [vmem:[%s5455_s28 + $0x10] sm:$0xf] %vm3533_vm5, %v3854_v41  ;;  %v3855_v45 = vpack.c.bf16 %v3493_v9, %v3493_v9  ;;  %v3495_v16 = vpop.f32.mrb[39].mxu1 }
 0x30e   : > { %3539 = vst.msk [vmem:[%s5455_s28 + $0x14] sm:$0xf] %vm3533_vm5, %v3855_v45 }
 0x311   : > { %v3498_v38 = vpop.f32.mrb[40].mxu1 }
 0x312   : > { %v3856_v47 = vpack.c.bf16 %v3498_v38, %v3498_v38  ;;  %v3500_v55 = vpop.f32.mrb[41].mxu1 }
 0x313   : > { %v3501_v4 = vpop.f32.mrb[42].mxu1 }
 0x314   : > { %v3544_v34 = vsel %vm3542_vm8, %v3856_v47, %v3543_v61  ;;  %v3502_v62 = vpop.f32.mrb[43].mxu1 }
 0x315   : > { %3545 = vst [vmem:[%s5455_s28 + $0x18] sm:$0x1] %v3544_v34 }
 0x316 PF: > { %s14_s15 = sadd.s32 1, %s4636_s15  }
 0x317   : > { %p11_p4 = scmp.ge.s32.totalorder %s14_s15, 4  }
 0x319   :  { %13 = sbr.rel (!%p11_p4) target bundleno = 1 (0x1), region = 66 }

</bundles_post_ra>
